<compile_context>
chip_gen: v5e
topology: v5e:2x2
jax: 0.10.0
libtpu: 0.0.40
codegen_flags: <defaults>
</compile_context>

<pallas_src>
import functools

import numpy as np

import jax
import jax.numpy as jnp
from jax.experimental import pallas as pl
from jax.experimental.pallas import tpu as pltpu


# ---------------------------------------------------------------------------
# Fused kernel: one grid step == BT samples, everything VMEM-resident.
#
# Packed operand layouts (built once in prepack_params):
#   x2  : (32, B, 96) bf16   lane = ci*32 + w  (wrapper repack)
#   W1  : (5, 96, 256) bf16  banded conv1; rows = ci*32 + w_in,
#                            cols = parity*128 + co*14 + pw, ow = 2*pw+parity
#   b1  : (1, 256) f32
#   W2  : (5, 128, 256) bf16 banded conv2; rows = ci*14 + w_in (pooled-1),
#                            cols = parity*128 + co*5 + pw2,  ow2 = 2*pw2+parity
#   b2  : (1, 256) f32
#   Wf1 : (5, 128, 120) bf16 fc1 per pooled-2 row h, rows = co*5 + pw
#                            (PyTorch NCHW .view flatten baked in)
#   Wf2 : (120, 84) bf16, Wf3 : (84, 128) bf16 (cols 10..127 zero-padded)
#   biases f32 as (1, N)
# Activation layout inside the kernel: rows = h*BT + b (h major, batch on
# sublanes), lanes = packed (channel, width) as above.
# ---------------------------------------------------------------------------
def _lenet_fused_kernel(x_ref, w1_ref, b1_ref, w2_ref, b2_ref,
                        wf1_ref, bf1_ref, wf2_ref, bf2_ref, wf3_ref, bf3_ref,
                        o_ref, *, bt):
    f32 = jnp.float32
    bf16 = jnp.bfloat16

    xs = x_ref[...]                                          # (32, bt, 96) bf16

    # ---- stage 1: conv(3->6, k=5) + ReLU + 2x2/2 max-pool ------------------
    acc1 = jnp.broadcast_to(b1_ref[...], (28 * bt, 256))     # bias-init, f32
    for kh in range(5):
        xk = xs[kh:kh + 28].reshape(28 * bt, 96)             # tile-aligned
        acc1 = acc1 + jnp.dot(xk, w1_ref[kh], preferred_element_type=f32)
    y1 = jnp.maximum(acc1, 0.0)                              # (28*bt, 256)
    y1 = jnp.maximum(y1[:, 0:128], y1[:, 128:256])           # pool over W
    y1 = y1.reshape(14, 2 * bt, 128)                         # slab pairs (h)
    p1 = jnp.maximum(y1[:, :bt, :], y1[:, bt:, :]).astype(bf16)   # (14, bt, 128)

    # ---- stage 2: conv(6->16, k=5) + ReLU + 2x2/2 max-pool -----------------
    acc2 = jnp.broadcast_to(b2_ref[...], (10 * bt, 256))
    for kh in range(5):
        pk = p1[kh:kh + 10].reshape(10 * bt, 128)
        acc2 = acc2 + jnp.dot(pk, w2_ref[kh], preferred_element_type=f32)
    y2 = jnp.maximum(acc2, 0.0)                              # (10*bt, 256)
    y2 = jnp.maximum(y2[:, 0:128], y2[:, 128:256])           # pool over W
    y2 = y2.reshape(5, 2 * bt, 128)
    p2 = jnp.maximum(y2[:, :bt, :], y2[:, bt:, :]).astype(bf16)   # (5, bt, 128)

    # ---- MLP head: 400 -> 120 -> 84 -> 10 (flatten fused into Wf1) ---------
    h = jnp.broadcast_to(bf1_ref[...], (bt, 120))
    for hr in range(5):
        h = h + jnp.dot(p2[hr], wf1_ref[hr], preferred_element_type=f32)
    h = jnp.maximum(h, 0.0).astype(bf16)
    h = jnp.maximum(jnp.dot(h, wf2_ref[...], preferred_element_type=f32)
                    + bf2_ref[...], 0.0).astype(bf16)
    out = jnp.dot(h, wf3_ref[...], preferred_element_type=f32) + bf3_ref[...]
    o_ref[...] = out.astype(o_ref.dtype)                     # (bt, 128)


# ------------------------------- wrapper -----------------------------------
def lenet_block_forward(x_nchw, packed, *, bt=8):
    """x_nchw: (B, 3, 32, 32) float32 -> (B, 10) logits."""
    assert bt % 8 == 0, "bt must be a multiple of 8 (sublane tile alignment)"
    B = x_nchw.shape[0]
    B_pad = -(-B // bt) * bt
    x = x_nchw.astype(jnp.float32)
    if B_pad != B:
        x = jnp.pad(x, ((0, B_pad - B), (0, 0), (0, 0), (0, 0)))
    # (B,3,32,32) -> (32, B, 96): h major, batch on sublanes, lane = ci*32 + w.
    x2 = jnp.transpose(x, (2, 0, 1, 3)).reshape(32, B_pad, 96)
    x2 = x2.astype(jnp.bfloat16)

    out = pl.pallas_call(
        functools.partial(_lenet_fused_kernel, bt=bt),
        out_shape=jax.ShapeDtypeStruct((B_pad, 128), jnp.float32),
        grid=(B_pad // bt,),
        in_specs=[
            pl.BlockSpec((32, bt, 96), lambda i: (0, i, 0)),      # x2
            pl.BlockSpec((5, 96, 256), lambda i: (0, 0, 0)),      # W1
            pl.BlockSpec((1, 256), lambda i: (0, 0)),             # b1
            pl.BlockSpec((5, 128, 256), lambda i: (0, 0, 0)),     # W2
            pl.BlockSpec((1, 256), lambda i: (0, 0)),             # b2
            pl.BlockSpec((5, 128, 120), lambda i: (0, 0, 0)),     # Wf1
            pl.BlockSpec((1, 120), lambda i: (0, 0)),             # bf1
            pl.BlockSpec((120, 84), lambda i: (0, 0)),            # Wf2
            pl.BlockSpec((1, 84), lambda i: (0, 0)),              # bf2
            pl.BlockSpec((84, 128), lambda i: (0, 0)),            # Wf3 (padded)
            pl.BlockSpec((1, 128), lambda i: (0, 0)),             # bf3 (padded)
        ],
        out_specs=pl.BlockSpec((bt, 128), lambda i: (i, 0)),
        compiler_params=pltpu.CompilerParams(
            dimension_semantics=("parallel",)),
    )(x2, packed["W1"], packed["b1"], packed["W2"], packed["b2"],
      packed["Wf1"], packed["bf1"], packed["Wf2"], packed["bf2"],
      packed["Wf3"], packed["bf3"])
    return out[:B, :10].astype(jnp.float32)


# ------------------------- one-time weight prepack --------------------------
def prepack_params(p):
    """One-time re-layout of PyTorch-style LeNet parameters for the kernel."""
    w_c1 = np.asarray(p["w_c1"], np.float32)   # (6, 3, 5, 5)  (co, ci, kh, kw)
    b_c1 = np.asarray(p["b_c1"], np.float32)
    w_c2 = np.asarray(p["w_c2"], np.float32)   # (16, 6, 5, 5)
    b_c2 = np.asarray(p["b_c2"], np.float32)
    w_f1 = np.asarray(p["w_fc1"], np.float32)  # (120, 400), 400 = (c, h, w)
    b_f1 = np.asarray(p["b_fc1"], np.float32)
    w_f2 = np.asarray(p["w_fc2"], np.float32)  # (84, 120)
    b_f2 = np.asarray(p["b_fc2"], np.float32)
    w_f3 = np.asarray(p["w_fc3"], np.float32)  # (10, 84)
    b_f3 = np.asarray(p["b_fc3"], np.float32)

    # conv1 banded weights, channel-folded K: row = ci*32 + w_in (K = 96),
    # col = parity*128 + co*14 + pw, output w index ow = 2*pw + parity.
    W1 = np.zeros((5, 96, 256), np.float32)
    b1 = np.zeros((1, 256), np.float32)
    pw1 = np.arange(14)
    for parity in range(2):
        ow = 2 * pw1 + parity
        for co in range(6):
            col = parity * 128 + co * 14 + pw1
            b1[0, col] = b_c1[co]
            for ci in range(3):
                for kh in range(5):
                    for kw in range(5):
                        W1[kh, ci * 32 + ow + kw, col] = w_c1[co, ci, kh, kw]

    # conv2 banded weights: rows = ci*14 + w_in (pooled-1 lane layout),
    # cols = parity*128 + co*5 + pw2, ow2 = 2*pw2 + parity.
    W2 = np.zeros((5, 128, 256), np.float32)
    b2 = np.zeros((1, 256), np.float32)
    pw2 = np.arange(5)
    for parity in range(2):
        ow2 = 2 * pw2 + parity
        for co in range(16):
            col = parity * 128 + co * 5 + pw2
            b2[0, col] = b_c2[co]
            for ci in range(6):
                for kh in range(5):
                    for kw in range(5):
                        W2[kh, ci * 14 + ow2 + kw, col] = w_c2[co, ci, kh, kw]

    # fc1: pooled-2 rows (h) with cols co*5 + pw feed fc1 directly; this bakes
    # in PyTorch's NCHW .view flatten order (index = c*25 + h*5 + w).
    Wf1 = np.zeros((5, 128, 120), np.float32)
    for h in range(5):
        for c in range(16):
            for w in range(5):
                Wf1[h, c * 5 + w, :] = w_f1[:, c * 25 + h * 5 + w]

    # fc3 padded to 128 output lanes for an unmasked lane-dense store.
    Wf3p = np.zeros((84, 128), np.float32)
    Wf3p[:, :10] = w_f3.T
    bf3p = np.zeros((1, 128), np.float32)
    bf3p[0, :10] = b_f3

    # Padding-lane invariants the kernel relies on (p1 lanes 84..127 and
    # p2 lanes 80..127 are provably zero only because these stay zero):
    assert not W1[:, :, 84:128].any() and not W1[:, :, 212:256].any()
    assert not b1[:, 84:128].any() and not b1[:, 212:256].any()
    assert not W2[:, 84:, :].any()                  # never reads junk p1 lanes
    assert not W2[:, :, 80:128].any() and not W2[:, :, 208:256].any()
    assert not b2[:, 80:128].any() and not b2[:, 208:256].any()
    assert not Wf1[:, 80:, :].any()                 # never reads junk p2 lanes

    def bf16(a):
        return jnp.asarray(a, jnp.bfloat16)

    def f32(a):
        return jnp.asarray(a, jnp.float32)

    return {
        "W1": bf16(W1), "b1": f32(b1),
        "W2": bf16(W2), "b2": f32(b2),
        "Wf1": bf16(Wf1), "bf1": f32(b_f1.reshape(1, 120)),
        "Wf2": bf16(np.ascontiguousarray(w_f2.T)), "bf2": f32(b_f2.reshape(1, 84)),
        "Wf3": bf16(Wf3p), "bf3": f32(bf3p),
    }


# ------------------------------ parameters ----------------------------------
def init_params(key):
    ks = jax.random.split(key, 10)

    def u(k, shape, fan_in):
        bound = 1.0 / (fan_in ** 0.5)
        return jax.random.uniform(k, shape, jnp.float32, -bound, bound)

    return {
        "w_c1": u(ks[0], (6, 3, 5, 5), 3 * 5 * 5),
        "b_c1": u(ks[1], (6,), 3 * 5 * 5),
        "w_c2": u(ks[2], (16, 6, 5, 5), 6 * 5 * 5),
        "b_c2": u(ks[3], (16,), 6 * 5 * 5),
        "w_fc1": u(ks[4], (120, 400), 400),
        "b_fc1": u(ks[5], (120,), 400),
        "w_fc2": u(ks[6], (84, 120), 120),
        "b_fc2": u(ks[7], (84,), 120),
        "w_fc3": u(ks[8], (10, 84), 84),
        "b_fc3": u(ks[9], (10,), 84),
    }


# --------------------------- plain-XLA reference ----------------------------
def reference_forward(x_nchw, p):
    x = jnp.transpose(x_nchw.astype(jnp.float32), (0, 2, 3, 1))   # NHWC

    def conv_valid(x, w, b):                   # w: (co, ci, kh, kw)
        kh, kw = w.shape[2], w.shape[3]
        H = x.shape[1] - kh + 1
        W = x.shape[2] - kw + 1
        out = jnp.zeros(x.shape[:1] + (H, W, w.shape[0]), jnp.float32)
        for i in range(kh):
            for j in range(kw):
                out = out + jnp.einsum("bhwc,oc->bhwo",
                                       x[:, i:i + H, j:j + W, :], w[:, :, i, j])
        return out + b

    def pool2(x):
        B, H, W, C = x.shape
        return x.reshape(B, H // 2, 2, W // 2, 2, C).max(axis=(2, 4))

    y = pool2(jnp.maximum(conv_valid(x, p["w_c1"], p["b_c1"]), 0.0))
    y = pool2(jnp.maximum(conv_valid(y, p["w_c2"], p["b_c2"]), 0.0))
    B = y.shape[0]
    flat = jnp.transpose(y, (0, 3, 1, 2)).reshape(B, -1)          # NCHW order
    h = jnp.maximum(flat @ p["w_fc1"].T + p["b_fc1"], 0.0)
    h = jnp.maximum(h @ p["w_fc2"].T + p["b_fc2"], 0.0)
    return h @ p["w_fc3"].T + p["b_fc3"]


if __name__ == "__main__":
    key = jax.random.PRNGKey(0)
    kx, kp = jax.random.split(key)
    # classic LeNet input: 3 channels, 32x32 spatial (NCHW); batch 16 = 2 steps
    # of 8 samples each (exercises the parallel grid axis).
    x = jax.random.normal(kx, (16, 3, 32, 32), jnp.float32)
    params = init_params(kp)
    packed = prepack_params(params)           # one-time weight re-layout

    fwd = jax.jit(lenet_block_forward)
    out = jax.block_until_ready(fwd(x, packed))
    assert out.shape == (16, 10) and out.dtype == jnp.float32

    # Validate against a plain-XLA f32 reference (loose tolerance covers the
    # bf16 MXU operands; accumulation in the kernel stays f32).
    with jax.default_matmul_precision("highest"):
        ref = jax.block_until_ready(jax.jit(reference_forward)(x, params))
    np.testing.assert_allclose(np.asarray(out), np.asarray(ref),
                               rtol=5e-2, atol=5e-2)
    print("KERNEL_OK")
</pallas_src>

<mosaic_0001>
module attributes {stable_mosaic.version = 11 : i64} {
  func.func @_lenet_fused_kernel(%arg0: i32, %arg1: memref<32x8x96xbf16, #tpu.memory_space<vmem>>, %arg2: memref<5x96x256xbf16, #tpu.memory_space<vmem>>, %arg3: memref<1x256xf32, #tpu.memory_space<vmem>>, %arg4: memref<5x128x256xbf16, #tpu.memory_space<vmem>>, %arg5: memref<1x256xf32, #tpu.memory_space<vmem>>, %arg6: memref<5x128x120xbf16, #tpu.memory_space<vmem>>, %arg7: memref<1x120xf32, #tpu.memory_space<vmem>>, %arg8: memref<120x84xbf16, #tpu.memory_space<vmem>>, %arg9: memref<1x84xf32, #tpu.memory_space<vmem>>, %arg10: memref<84x128xbf16, #tpu.memory_space<vmem>>, %arg11: memref<1x128xf32, #tpu.memory_space<vmem>>, %arg12: memref<8x128xf32, #tpu.memory_space<vmem>>) attributes {dimension_semantics = [#tpu.dimension_semantics<parallel>], iteration_bounds = array<i64: 2>, scalar_prefetch = 0 : i64, scratch_operands = 0 : i64, tpu.core_type = #tpu.core_type<tc>, window_params = [{transform_indices = @transform_0, window_bounds = array<i64: 32, 8, 96>}, {pipeline_mode = #tpu.pipeline_mode<synchronous>, transform_indices = @transform_1, window_bounds = array<i64: 5, 96, 256>}, {pipeline_mode = #tpu.pipeline_mode<synchronous>, transform_indices = @transform_2, window_bounds = array<i64: 1, 256>}, {pipeline_mode = #tpu.pipeline_mode<synchronous>, transform_indices = @transform_3, window_bounds = array<i64: 5, 128, 256>}, {pipeline_mode = #tpu.pipeline_mode<synchronous>, transform_indices = @transform_4, window_bounds = array<i64: 1, 256>}, {pipeline_mode = #tpu.pipeline_mode<synchronous>, transform_indices = @transform_5, window_bounds = array<i64: 5, 128, 120>}, {pipeline_mode = #tpu.pipeline_mode<synchronous>, transform_indices = @transform_6, window_bounds = array<i64: 1, 120>}, {pipeline_mode = #tpu.pipeline_mode<synchronous>, transform_indices = @transform_7, window_bounds = array<i64: 120, 84>}, {pipeline_mode = #tpu.pipeline_mode<synchronous>, transform_indices = @transform_8, window_bounds = array<i64: 1, 84>}, {pipeline_mode = #tpu.pipeline_mode<synchronous>, transform_indices = @transform_9, window_bounds = array<i64: 84, 128>}, {pipeline_mode = #tpu.pipeline_mode<synchronous>, transform_indices = @transform_10, window_bounds = array<i64: 1, 128>}, {transform_indices = @transform_11, window_bounds = array<i64: 8, 128>}]} {
    %c0 = arith.constant 0 : index
    %c0_0 = arith.constant 0 : index
    %c0_1 = arith.constant 0 : index
    %0 = vector.load %arg1[%c0, %c0_0, %c0_1] : memref<32x8x96xbf16, #tpu.memory_space<vmem>>, vector<32x8x96xbf16>
    %c0_2 = arith.constant 0 : index
    %c0_3 = arith.constant 0 : index
    %1 = vector.load %arg3[%c0_2, %c0_3] : memref<1x256xf32, #tpu.memory_space<vmem>>, vector<1x256xf32>
    %2 = vector.shape_cast %1 : vector<1x256xf32> to vector<1x256xf32>
    %3 = vector.broadcast %2 : vector<1x256xf32> to vector<224x256xf32>
    %4 = vector.extract_strided_slice %0 {offsets = [0, 0, 0], sizes = [28, 8, 96], strides = [1, 1, 1]} : vector<32x8x96xbf16> to vector<28x8x96xbf16>
    %5 = vector.shape_cast %4 : vector<28x8x96xbf16> to vector<224x96xbf16>
    %c0_4 = arith.constant 0 : index
    %c0_5 = arith.constant 0 : index
    %c0_6 = arith.constant 0 : index
    %6 = vector.load %arg2[%c0_4, %c0_5, %c0_6] : memref<5x96x256xbf16, #tpu.memory_space<vmem>>, vector<1x96x256xbf16>
    %7 = vector.shape_cast %6 : vector<1x96x256xbf16> to vector<96x256xbf16>
    %cst = arith.constant dense<0.000000e+00> : vector<224x256xf32>
    %8 = tpu.matmul %5, %7, %cst {dimension_numbers = #tpu.dot_dimension_numbers<[1], [0], [0], [1], [0, 0, 1, 1], [], []>} : vector<224x96xbf16>, vector<96x256xbf16>, vector<224x256xf32> -> vector<224x256xf32>
    %9 = arith.addf %3, %8 : vector<224x256xf32>
    %10 = vector.extract_strided_slice %0 {offsets = [1, 0, 0], sizes = [28, 8, 96], strides = [1, 1, 1]} : vector<32x8x96xbf16> to vector<28x8x96xbf16>
    %11 = vector.shape_cast %10 : vector<28x8x96xbf16> to vector<224x96xbf16>
    %c1 = arith.constant 1 : index
    %c0_7 = arith.constant 0 : index
    %c0_8 = arith.constant 0 : index
    %12 = vector.load %arg2[%c1, %c0_7, %c0_8] : memref<5x96x256xbf16, #tpu.memory_space<vmem>>, vector<1x96x256xbf16>
    %13 = vector.shape_cast %12 : vector<1x96x256xbf16> to vector<96x256xbf16>
    %cst_9 = arith.constant dense<0.000000e+00> : vector<224x256xf32>
    %14 = tpu.matmul %11, %13, %cst_9 {dimension_numbers = #tpu.dot_dimension_numbers<[1], [0], [0], [1], [0, 0, 1, 1], [], []>} : vector<224x96xbf16>, vector<96x256xbf16>, vector<224x256xf32> -> vector<224x256xf32>
    %15 = arith.addf %9, %14 : vector<224x256xf32>
    %16 = vector.extract_strided_slice %0 {offsets = [2, 0, 0], sizes = [28, 8, 96], strides = [1, 1, 1]} : vector<32x8x96xbf16> to vector<28x8x96xbf16>
    %17 = vector.shape_cast %16 : vector<28x8x96xbf16> to vector<224x96xbf16>
    %c2 = arith.constant 2 : index
    %c0_10 = arith.constant 0 : index
    %c0_11 = arith.constant 0 : index
    %18 = vector.load %arg2[%c2, %c0_10, %c0_11] : memref<5x96x256xbf16, #tpu.memory_space<vmem>>, vector<1x96x256xbf16>
    %19 = vector.shape_cast %18 : vector<1x96x256xbf16> to vector<96x256xbf16>
    %cst_12 = arith.constant dense<0.000000e+00> : vector<224x256xf32>
    %20 = tpu.matmul %17, %19, %cst_12 {dimension_numbers = #tpu.dot_dimension_numbers<[1], [0], [0], [1], [0, 0, 1, 1], [], []>} : vector<224x96xbf16>, vector<96x256xbf16>, vector<224x256xf32> -> vector<224x256xf32>
    %21 = arith.addf %15, %20 : vector<224x256xf32>
    %22 = vector.extract_strided_slice %0 {offsets = [3, 0, 0], sizes = [28, 8, 96], strides = [1, 1, 1]} : vector<32x8x96xbf16> to vector<28x8x96xbf16>
    %23 = vector.shape_cast %22 : vector<28x8x96xbf16> to vector<224x96xbf16>
    %c3 = arith.constant 3 : index
    %c0_13 = arith.constant 0 : index
    %c0_14 = arith.constant 0 : index
    %24 = vector.load %arg2[%c3, %c0_13, %c0_14] : memref<5x96x256xbf16, #tpu.memory_space<vmem>>, vector<1x96x256xbf16>
    %25 = vector.shape_cast %24 : vector<1x96x256xbf16> to vector<96x256xbf16>
    %cst_15 = arith.constant dense<0.000000e+00> : vector<224x256xf32>
    %26 = tpu.matmul %23, %25, %cst_15 {dimension_numbers = #tpu.dot_dimension_numbers<[1], [0], [0], [1], [0, 0, 1, 1], [], []>} : vector<224x96xbf16>, vector<96x256xbf16>, vector<224x256xf32> -> vector<224x256xf32>
    %27 = arith.addf %21, %26 : vector<224x256xf32>
    %28 = vector.extract_strided_slice %0 {offsets = [4, 0, 0], sizes = [28, 8, 96], strides = [1, 1, 1]} : vector<32x8x96xbf16> to vector<28x8x96xbf16>
    %29 = vector.shape_cast %28 : vector<28x8x96xbf16> to vector<224x96xbf16>
    %c4 = arith.constant 4 : index
    %c0_16 = arith.constant 0 : index
    %c0_17 = arith.constant 0 : index
    %30 = vector.load %arg2[%c4, %c0_16, %c0_17] : memref<5x96x256xbf16, #tpu.memory_space<vmem>>, vector<1x96x256xbf16>
    %31 = vector.shape_cast %30 : vector<1x96x256xbf16> to vector<96x256xbf16>
    %cst_18 = arith.constant dense<0.000000e+00> : vector<224x256xf32>
    %32 = tpu.matmul %29, %31, %cst_18 {dimension_numbers = #tpu.dot_dimension_numbers<[1], [0], [0], [1], [0, 0, 1, 1], [], []>} : vector<224x96xbf16>, vector<96x256xbf16>, vector<224x256xf32> -> vector<224x256xf32>
    %33 = arith.addf %27, %32 : vector<224x256xf32>
    %cst_19 = arith.constant 0.000000e+00 : f32
    %34 = vector.broadcast %cst_19 : f32 to vector<224x256xf32>
    %35 = arith.maximumf %33, %34 : vector<224x256xf32>
    %36 = vector.extract_strided_slice %35 {offsets = [0, 0], sizes = [224, 128], strides = [1, 1]} : vector<224x256xf32> to vector<224x128xf32>
    %37 = vector.extract_strided_slice %35 {offsets = [0, 128], sizes = [224, 128], strides = [1, 1]} : vector<224x256xf32> to vector<224x128xf32>
    %38 = arith.maximumf %36, %37 : vector<224x128xf32>
    %39 = vector.shape_cast %38 : vector<224x128xf32> to vector<14x16x128xf32>
    %40 = vector.extract_strided_slice %39 {offsets = [0, 0, 0], sizes = [14, 8, 128], strides = [1, 1, 1]} : vector<14x16x128xf32> to vector<14x8x128xf32>
    %41 = vector.extract_strided_slice %39 {offsets = [0, 8, 0], sizes = [14, 8, 128], strides = [1, 1, 1]} : vector<14x16x128xf32> to vector<14x8x128xf32>
    %42 = arith.maximumf %40, %41 : vector<14x8x128xf32>
    %43 = arith.truncf %42 : vector<14x8x128xf32> to vector<14x8x128xbf16>
    %c0_20 = arith.constant 0 : index
    %c0_21 = arith.constant 0 : index
    %44 = vector.load %arg5[%c0_20, %c0_21] : memref<1x256xf32, #tpu.memory_space<vmem>>, vector<1x256xf32>
    %45 = vector.shape_cast %44 : vector<1x256xf32> to vector<1x256xf32>
    %46 = vector.broadcast %45 : vector<1x256xf32> to vector<80x256xf32>
    %47 = vector.extract_strided_slice %43 {offsets = [0, 0, 0], sizes = [10, 8, 128], strides = [1, 1, 1]} : vector<14x8x128xbf16> to vector<10x8x128xbf16>
    %48 = vector.shape_cast %47 : vector<10x8x128xbf16> to vector<80x128xbf16>
    %c0_22 = arith.constant 0 : index
    %c0_23 = arith.constant 0 : index
    %c0_24 = arith.constant 0 : index
    %49 = vector.load %arg4[%c0_22, %c0_23, %c0_24] : memref<5x128x256xbf16, #tpu.memory_space<vmem>>, vector<1x128x256xbf16>
    %50 = vector.shape_cast %49 : vector<1x128x256xbf16> to vector<128x256xbf16>
    %cst_25 = arith.constant dense<0.000000e+00> : vector<80x256xf32>
    %51 = tpu.matmul %48, %50, %cst_25 {dimension_numbers = #tpu.dot_dimension_numbers<[1], [0], [0], [1], [0, 0, 1, 1], [], []>} : vector<80x128xbf16>, vector<128x256xbf16>, vector<80x256xf32> -> vector<80x256xf32>
    %52 = arith.addf %46, %51 : vector<80x256xf32>
    %53 = vector.extract_strided_slice %43 {offsets = [1, 0, 0], sizes = [10, 8, 128], strides = [1, 1, 1]} : vector<14x8x128xbf16> to vector<10x8x128xbf16>
    %54 = vector.shape_cast %53 : vector<10x8x128xbf16> to vector<80x128xbf16>
    %c1_26 = arith.constant 1 : index
    %c0_27 = arith.constant 0 : index
    %c0_28 = arith.constant 0 : index
    %55 = vector.load %arg4[%c1_26, %c0_27, %c0_28] : memref<5x128x256xbf16, #tpu.memory_space<vmem>>, vector<1x128x256xbf16>
    %56 = vector.shape_cast %55 : vector<1x128x256xbf16> to vector<128x256xbf16>
    %cst_29 = arith.constant dense<0.000000e+00> : vector<80x256xf32>
    %57 = tpu.matmul %54, %56, %cst_29 {dimension_numbers = #tpu.dot_dimension_numbers<[1], [0], [0], [1], [0, 0, 1, 1], [], []>} : vector<80x128xbf16>, vector<128x256xbf16>, vector<80x256xf32> -> vector<80x256xf32>
    %58 = arith.addf %52, %57 : vector<80x256xf32>
    %59 = vector.extract_strided_slice %43 {offsets = [2, 0, 0], sizes = [10, 8, 128], strides = [1, 1, 1]} : vector<14x8x128xbf16> to vector<10x8x128xbf16>
    %60 = vector.shape_cast %59 : vector<10x8x128xbf16> to vector<80x128xbf16>
    %c2_30 = arith.constant 2 : index
    %c0_31 = arith.constant 0 : index
    %c0_32 = arith.constant 0 : index
    %61 = vector.load %arg4[%c2_30, %c0_31, %c0_32] : memref<5x128x256xbf16, #tpu.memory_space<vmem>>, vector<1x128x256xbf16>
    %62 = vector.shape_cast %61 : vector<1x128x256xbf16> to vector<128x256xbf16>
    %cst_33 = arith.constant dense<0.000000e+00> : vector<80x256xf32>
    %63 = tpu.matmul %60, %62, %cst_33 {dimension_numbers = #tpu.dot_dimension_numbers<[1], [0], [0], [1], [0, 0, 1, 1], [], []>} : vector<80x128xbf16>, vector<128x256xbf16>, vector<80x256xf32> -> vector<80x256xf32>
    %64 = arith.addf %58, %63 : vector<80x256xf32>
    %65 = vector.extract_strided_slice %43 {offsets = [3, 0, 0], sizes = [10, 8, 128], strides = [1, 1, 1]} : vector<14x8x128xbf16> to vector<10x8x128xbf16>
    %66 = vector.shape_cast %65 : vector<10x8x128xbf16> to vector<80x128xbf16>
    %c3_34 = arith.constant 3 : index
    %c0_35 = arith.constant 0 : index
    %c0_36 = arith.constant 0 : index
    %67 = vector.load %arg4[%c3_34, %c0_35, %c0_36] : memref<5x128x256xbf16, #tpu.memory_space<vmem>>, vector<1x128x256xbf16>
    %68 = vector.shape_cast %67 : vector<1x128x256xbf16> to vector<128x256xbf16>
    %cst_37 = arith.constant dense<0.000000e+00> : vector<80x256xf32>
    %69 = tpu.matmul %66, %68, %cst_37 {dimension_numbers = #tpu.dot_dimension_numbers<[1], [0], [0], [1], [0, 0, 1, 1], [], []>} : vector<80x128xbf16>, vector<128x256xbf16>, vector<80x256xf32> -> vector<80x256xf32>
    %70 = arith.addf %64, %69 : vector<80x256xf32>
    %71 = vector.extract_strided_slice %43 {offsets = [4, 0, 0], sizes = [10, 8, 128], strides = [1, 1, 1]} : vector<14x8x128xbf16> to vector<10x8x128xbf16>
    %72 = vector.shape_cast %71 : vector<10x8x128xbf16> to vector<80x128xbf16>
    %c4_38 = arith.constant 4 : index
    %c0_39 = arith.constant 0 : index
    %c0_40 = arith.constant 0 : index
    %73 = vector.load %arg4[%c4_38, %c0_39, %c0_40] : memref<5x128x256xbf16, #tpu.memory_space<vmem>>, vector<1x128x256xbf16>
    %74 = vector.shape_cast %73 : vector<1x128x256xbf16> to vector<128x256xbf16>
    %cst_41 = arith.constant dense<0.000000e+00> : vector<80x256xf32>
    %75 = tpu.matmul %72, %74, %cst_41 {dimension_numbers = #tpu.dot_dimension_numbers<[1], [0], [0], [1], [0, 0, 1, 1], [], []>} : vector<80x128xbf16>, vector<128x256xbf16>, vector<80x256xf32> -> vector<80x256xf32>
    %76 = arith.addf %70, %75 : vector<80x256xf32>
    %cst_42 = arith.constant 0.000000e+00 : f32
    %77 = vector.broadcast %cst_42 : f32 to vector<80x256xf32>
    %78 = arith.maximumf %76, %77 : vector<80x256xf32>
    %79 = vector.extract_strided_slice %78 {offsets = [0, 0], sizes = [80, 128], strides = [1, 1]} : vector<80x256xf32> to vector<80x128xf32>
    %80 = vector.extract_strided_slice %78 {offsets = [0, 128], sizes = [80, 128], strides = [1, 1]} : vector<80x256xf32> to vector<80x128xf32>
    %81 = arith.maximumf %79, %80 : vector<80x128xf32>
    %82 = vector.shape_cast %81 : vector<80x128xf32> to vector<5x16x128xf32>
    %83 = vector.extract_strided_slice %82 {offsets = [0, 0, 0], sizes = [5, 8, 128], strides = [1, 1, 1]} : vector<5x16x128xf32> to vector<5x8x128xf32>
    %84 = vector.extract_strided_slice %82 {offsets = [0, 8, 0], sizes = [5, 8, 128], strides = [1, 1, 1]} : vector<5x16x128xf32> to vector<5x8x128xf32>
    %85 = arith.maximumf %83, %84 : vector<5x8x128xf32>
    %86 = arith.truncf %85 : vector<5x8x128xf32> to vector<5x8x128xbf16>
    %c0_43 = arith.constant 0 : index
    %c0_44 = arith.constant 0 : index
    %87 = vector.load %arg7[%c0_43, %c0_44] : memref<1x120xf32, #tpu.memory_space<vmem>>, vector<1x120xf32>
    %88 = vector.shape_cast %87 : vector<1x120xf32> to vector<1x120xf32>
    %89 = vector.broadcast %88 : vector<1x120xf32> to vector<8x120xf32>
    %90 = vector.extract_strided_slice %86 {offsets = [0, 0, 0], sizes = [1, 8, 128], strides = [1, 1, 1]} : vector<5x8x128xbf16> to vector<1x8x128xbf16>
    %91 = vector.shape_cast %90 : vector<1x8x128xbf16> to vector<8x128xbf16>
    %c0_45 = arith.constant 0 : index
    %c0_46 = arith.constant 0 : index
    %c0_47 = arith.constant 0 : index
    %92 = vector.load %arg6[%c0_45, %c0_46, %c0_47] : memref<5x128x120xbf16, #tpu.memory_space<vmem>>, vector<1x128x120xbf16>
    %93 = vector.shape_cast %92 : vector<1x128x120xbf16> to vector<128x120xbf16>
    %cst_48 = arith.constant dense<0.000000e+00> : vector<8x120xf32>
    %94 = tpu.matmul %91, %93, %cst_48 {dimension_numbers = #tpu.dot_dimension_numbers<[1], [0], [0], [1], [0, 0, 1, 1], [], []>} : vector<8x128xbf16>, vector<128x120xbf16>, vector<8x120xf32> -> vector<8x120xf32>
    %95 = arith.addf %89, %94 : vector<8x120xf32>
    %96 = vector.extract_strided_slice %86 {offsets = [1, 0, 0], sizes = [1, 8, 128], strides = [1, 1, 1]} : vector<5x8x128xbf16> to vector<1x8x128xbf16>
    %97 = vector.shape_cast %96 : vector<1x8x128xbf16> to vector<8x128xbf16>
    %c1_49 = arith.constant 1 : index
    %c0_50 = arith.constant 0 : index
    %c0_51 = arith.constant 0 : index
    %98 = vector.load %arg6[%c1_49, %c0_50, %c0_51] : memref<5x128x120xbf16, #tpu.memory_space<vmem>>, vector<1x128x120xbf16>
    %99 = vector.shape_cast %98 : vector<1x128x120xbf16> to vector<128x120xbf16>
    %cst_52 = arith.constant dense<0.000000e+00> : vector<8x120xf32>
    %100 = tpu.matmul %97, %99, %cst_52 {dimension_numbers = #tpu.dot_dimension_numbers<[1], [0], [0], [1], [0, 0, 1, 1], [], []>} : vector<8x128xbf16>, vector<128x120xbf16>, vector<8x120xf32> -> vector<8x120xf32>
    %101 = arith.addf %95, %100 : vector<8x120xf32>
    %102 = vector.extract_strided_slice %86 {offsets = [2, 0, 0], sizes = [1, 8, 128], strides = [1, 1, 1]} : vector<5x8x128xbf16> to vector<1x8x128xbf16>
    %103 = vector.shape_cast %102 : vector<1x8x128xbf16> to vector<8x128xbf16>
    %c2_53 = arith.constant 2 : index
    %c0_54 = arith.constant 0 : index
    %c0_55 = arith.constant 0 : index
    %104 = vector.load %arg6[%c2_53, %c0_54, %c0_55] : memref<5x128x120xbf16, #tpu.memory_space<vmem>>, vector<1x128x120xbf16>
    %105 = vector.shape_cast %104 : vector<1x128x120xbf16> to vector<128x120xbf16>
    %cst_56 = arith.constant dense<0.000000e+00> : vector<8x120xf32>
    %106 = tpu.matmul %103, %105, %cst_56 {dimension_numbers = #tpu.dot_dimension_numbers<[1], [0], [0], [1], [0, 0, 1, 1], [], []>} : vector<8x128xbf16>, vector<128x120xbf16>, vector<8x120xf32> -> vector<8x120xf32>
    %107 = arith.addf %101, %106 : vector<8x120xf32>
    %108 = vector.extract_strided_slice %86 {offsets = [3, 0, 0], sizes = [1, 8, 128], strides = [1, 1, 1]} : vector<5x8x128xbf16> to vector<1x8x128xbf16>
    %109 = vector.shape_cast %108 : vector<1x8x128xbf16> to vector<8x128xbf16>
    %c3_57 = arith.constant 3 : index
    %c0_58 = arith.constant 0 : index
    %c0_59 = arith.constant 0 : index
    %110 = vector.load %arg6[%c3_57, %c0_58, %c0_59] : memref<5x128x120xbf16, #tpu.memory_space<vmem>>, vector<1x128x120xbf16>
    %111 = vector.shape_cast %110 : vector<1x128x120xbf16> to vector<128x120xbf16>
    %cst_60 = arith.constant dense<0.000000e+00> : vector<8x120xf32>
    %112 = tpu.matmul %109, %111, %cst_60 {dimension_numbers = #tpu.dot_dimension_numbers<[1], [0], [0], [1], [0, 0, 1, 1], [], []>} : vector<8x128xbf16>, vector<128x120xbf16>, vector<8x120xf32> -> vector<8x120xf32>
    %113 = arith.addf %107, %112 : vector<8x120xf32>
    %114 = vector.extract_strided_slice %86 {offsets = [4, 0, 0], sizes = [1, 8, 128], strides = [1, 1, 1]} : vector<5x8x128xbf16> to vector<1x8x128xbf16>
    %115 = vector.shape_cast %114 : vector<1x8x128xbf16> to vector<8x128xbf16>
    %c4_61 = arith.constant 4 : index
    %c0_62 = arith.constant 0 : index
    %c0_63 = arith.constant 0 : index
    %116 = vector.load %arg6[%c4_61, %c0_62, %c0_63] : memref<5x128x120xbf16, #tpu.memory_space<vmem>>, vector<1x128x120xbf16>
    %117 = vector.shape_cast %116 : vector<1x128x120xbf16> to vector<128x120xbf16>
    %cst_64 = arith.constant dense<0.000000e+00> : vector<8x120xf32>
    %118 = tpu.matmul %115, %117, %cst_64 {dimension_numbers = #tpu.dot_dimension_numbers<[1], [0], [0], [1], [0, 0, 1, 1], [], []>} : vector<8x128xbf16>, vector<128x120xbf16>, vector<8x120xf32> -> vector<8x120xf32>
    %119 = arith.addf %113, %118 : vector<8x120xf32>
    %cst_65 = arith.constant 0.000000e+00 : f32
    %120 = vector.broadcast %cst_65 : f32 to vector<8x120xf32>
    %121 = arith.maximumf %119, %120 : vector<8x120xf32>
    %122 = arith.truncf %121 : vector<8x120xf32> to vector<8x120xbf16>
    %c0_66 = arith.constant 0 : index
    %c0_67 = arith.constant 0 : index
    %123 = vector.load %arg8[%c0_66, %c0_67] : memref<120x84xbf16, #tpu.memory_space<vmem>>, vector<120x84xbf16>
    %cst_68 = arith.constant dense<0.000000e+00> : vector<8x84xf32>
    %124 = tpu.matmul %122, %123, %cst_68 {dimension_numbers = #tpu.dot_dimension_numbers<[1], [0], [0], [1], [0, 0, 1, 1], [], []>} : vector<8x120xbf16>, vector<120x84xbf16>, vector<8x84xf32> -> vector<8x84xf32>
    %c0_69 = arith.constant 0 : index
    %c0_70 = arith.constant 0 : index
    %125 = vector.load %arg9[%c0_69, %c0_70] : memref<1x84xf32, #tpu.memory_space<vmem>>, vector<1x84xf32>
    %126 = vector.broadcast %125 : vector<1x84xf32> to vector<8x84xf32>
    %127 = arith.addf %124, %126 : vector<8x84xf32>
    %cst_71 = arith.constant 0.000000e+00 : f32
    %128 = vector.broadcast %cst_71 : f32 to vector<8x84xf32>
    %129 = arith.maximumf %127, %128 : vector<8x84xf32>
    %130 = arith.truncf %129 : vector<8x84xf32> to vector<8x84xbf16>
    %c0_72 = arith.constant 0 : index
    %c0_73 = arith.constant 0 : index
    %131 = vector.load %arg10[%c0_72, %c0_73] : memref<84x128xbf16, #tpu.memory_space<vmem>>, vector<84x128xbf16>
    %cst_74 = arith.constant dense<0.000000e+00> : vector<8x128xf32>
    %132 = tpu.matmul %130, %131, %cst_74 {dimension_numbers = #tpu.dot_dimension_numbers<[1], [0], [0], [1], [0, 0, 1, 1], [], []>} : vector<8x84xbf16>, vector<84x128xbf16>, vector<8x128xf32> -> vector<8x128xf32>
    %c0_75 = arith.constant 0 : index
    %c0_76 = arith.constant 0 : index
    %133 = vector.load %arg11[%c0_75, %c0_76] : memref<1x128xf32, #tpu.memory_space<vmem>>, vector<1x128xf32>
    %134 = vector.broadcast %133 : vector<1x128xf32> to vector<8x128xf32>
    %135 = arith.addf %132, %134 : vector<8x128xf32>
    %c0_77 = arith.constant 0 : index
    %c0_78 = arith.constant 0 : index
    %136 = vector.load %arg12[%c0_77, %c0_78] : memref<8x128xf32, #tpu.memory_space<vmem>>, vector<8x128xf32>
    tpu.vector_store %arg12[%c0_77, %c0_78], %135 {strides = array<i32>} : memref<8x128xf32, #tpu.memory_space<vmem>>, vector<8x128xf32>,
    return
  }
  func.func @transform_0(%arg0: i32) -> (i32, i32, i32) {
    %c0_i32 = arith.constant 0 : i32
    %c0_i32_0 = arith.constant 0 : i32
    %c0_i32_1 = arith.constant 0 : i32
    return %c0_i32, %arg0, %c0_i32_0 : i32, i32, i32
  }
  func.func @transform_1(%arg0: i32) -> (i32, i32, i32) {
    %c0_i32 = arith.constant 0 : i32
    %c0_i32_0 = arith.constant 0 : i32
    %c0_i32_1 = arith.constant 0 : i32
    %c0_i32_2 = arith.constant 0 : i32
    return %c0_i32, %c0_i32_0, %c0_i32_1 : i32, i32, i32
  }
  func.func @transform_2(%arg0: i32) -> (i32, i32) {
    %c0_i32 = arith.constant 0 : i32
    %c0_i32_0 = arith.constant 0 : i32
    %c0_i32_1 = arith.constant 0 : i32
    return %c0_i32, %c0_i32_0 : i32, i32
  }
  func.func @transform_3(%arg0: i32) -> (i32, i32, i32) {
    %c0_i32 = arith.constant 0 : i32
    %c0_i32_0 = arith.constant 0 : i32
    %c0_i32_1 = arith.constant 0 : i32
    %c0_i32_2 = arith.constant 0 : i32
    return %c0_i32, %c0_i32_0, %c0_i32_1 : i32, i32, i32
  }
  func.func @transform_4(%arg0: i32) -> (i32, i32) {
    %c0_i32 = arith.constant 0 : i32
    %c0_i32_0 = arith.constant 0 : i32
    %c0_i32_1 = arith.constant 0 : i32
    return %c0_i32, %c0_i32_0 : i32, i32
  }
  func.func @transform_5(%arg0: i32) -> (i32, i32, i32) {
    %c0_i32 = arith.constant 0 : i32
    %c0_i32_0 = arith.constant 0 : i32
    %c0_i32_1 = arith.constant 0 : i32
    %c0_i32_2 = arith.constant 0 : i32
    return %c0_i32, %c0_i32_0, %c0_i32_1 : i32, i32, i32
  }
  func.func @transform_6(%arg0: i32) -> (i32, i32) {
    %c0_i32 = arith.constant 0 : i32
    %c0_i32_0 = arith.constant 0 : i32
    %c0_i32_1 = arith.constant 0 : i32
    return %c0_i32, %c0_i32_0 : i32, i32
  }
  func.func @transform_7(%arg0: i32) -> (i32, i32) {
    %c0_i32 = arith.constant 0 : i32
    %c0_i32_0 = arith.constant 0 : i32
    %c0_i32_1 = arith.constant 0 : i32
    return %c0_i32, %c0_i32_0 : i32, i32
  }
  func.func @transform_8(%arg0: i32) -> (i32, i32) {
    %c0_i32 = arith.constant 0 : i32
    %c0_i32_0 = arith.constant 0 : i32
    %c0_i32_1 = arith.constant 0 : i32
    return %c0_i32, %c0_i32_0 : i32, i32
  }
  func.func @transform_9(%arg0: i32) -> (i32, i32) {
    %c0_i32 = arith.constant 0 : i32
    %c0_i32_0 = arith.constant 0 : i32
    %c0_i32_1 = arith.constant 0 : i32
    return %c0_i32, %c0_i32_0 : i32, i32
  }
  func.func @transform_10(%arg0: i32) -> (i32, i32) {
    %c0_i32 = arith.constant 0 : i32
    %c0_i32_0 = arith.constant 0 : i32
    %c0_i32_1 = arith.constant 0 : i32
    return %c0_i32, %c0_i32_0 : i32, i32
  }
  func.func @transform_11(%arg0: i32) -> (i32, i32) {
    %c0_i32 = arith.constant 0 : i32
    %c0_i32_0 = arith.constant 0 : i32
    return %arg0, %c0_i32 : i32, i32
  }
}

</mosaic_0001>

<bundles_post_ra>
// kernel: lenet_block_forward.1
= control target key start
LH: loop header
LB: loop body
LE: loop exit
PB: predicated region body
PF: predicated region fallthrough
CT: control target
= control target key end

     0   :  { %s7926_s0 = inlined_call_operand.vmem [shape: bf16[32,16,96], index: 0, kind: input, shape index: {}]   ;;  %s7927_s1 = inlined_call_operand.vmem [shape: bf16[5,96,256], index: 1, kind: input, shape index: {}]   ;;  %s7928_s2 = inlined_call_operand.vmem [shape: f32[1,256], index: 2, kind: input, shape index: {}]   ;;  %s7929_s3 = inlined_call_operand.vmem [shape: bf16[5,128,256], index: 3, kind: input, shape index: {}]   ;;  %s7930_s4 = inlined_call_operand.vmem [shape: f32[1,256], index: 4, kind: input, shape index: {}]   ;;  %s7931_s5 = inlined_call_operand.vmem [shape: bf16[5,128,120], index: 5, kind: input, shape index: {}]   ;;  %s7932_s6 = inlined_call_operand.vmem [shape: f32[1,120], index: 6, kind: input, shape index: {}]   ;;  %s7933_s7 = inlined_call_operand.vmem [shape: bf16[120,84], index: 7, kind: input, shape index: {}]   ;;  %s7934_s8 = inlined_call_operand.vmem [shape: f32[1,84], index: 8, kind: input, shape index: {}]   ;;  %s7935_s9 = inlined_call_operand.vmem [shape: bf16[84,128], index: 9, kind: input, shape index: {}]   ;;  %s7936_s10 = inlined_call_operand.vmem [shape: f32[1,128], index: 10, kind: input, shape index: {}]   ;;  %s7937_s11 = inlined_call_operand.hbm [shape: f32[16,128], index: 11, kind: output, shape index: {}]  }
   0x1   :  { %7939 = sst [smem:[#allocation59_spill]] %s7926_s0 }
   0x2   :  { %7940 = sst [smem:[#allocation60_spill]] %s7927_s1 }
   0x3   :  { %7941 = sst [smem:[#allocation61_spill]] %s7928_s2 }
   0x4   :  { %16 = vsyncpa [#allocation4], 0 }
   0x5   :  { %18 = vsyncpa [#allocation4 + $0x1], 0  ;;  %s5640_s17 = smov 0   ;;  %s5642_s18 = smov 0  }
   0x6   :  { %s5644_s19 = smov 0   ;;  %s5646_s20 = smov 0  }
   0x7 LB: > { %s7938_s21 = sadd.s32 4294967295, %s5578_s20   ;;  %s3988_s22 = sadd.s32 4294967294, %s5578_s20   ;;  %s5578_s20 = sphi %s5646_s20, %s8093_s20   ;;  %s5574_s19 = sphi %s5644_s19, %s8092_s19   ;;  %s5570_s18 = sphi %s5642_s18, %s8091_s18   ;;  %s5566_s17 = sphi %s5640_s17, %s8090_s17  }
   0x8   : > { %s5663_s23 = sadd.s32 1, %s5578_s20   ;;  %s31_s24 = sadd.s32 1, %s5574_s19 }
   0x9   : > { %s28_s25 = ssub.s32 %s5578_s20, %s5663_s23  ;;  %p38_p0 = scmp.ne.s32.totalorder %s5574_s19, %s5570_s18 }
   0xa   : > { %p29_p1 = scmp.eq.s32.totalorder %s28_s25, 0  ;;  %p39_p2 = scmp.eq.s32.totalorder %s5578_s20, 0 }
   0xb   : > { %p278_p3 = scmp.eq.s32.totalorder %s7938_s21, 1  ;;  %p283_p4 = scmp.ne.s32.totalorder %s5570_s18, %s5566_s17 }
   0xc   : > { %s5676_s26 = scalar_select %p29_p1, %s5574_s19, %s31_s24  }
   0xd   : > { %p40_p5 = por %p39_p2, %p38_p0  ;;  %p5678_p6 = por %p278_p3, %p38_p0 }
   0xe   : > { %p284_p7 = scmp.eq.s32.totalorder %s3988_s22, 1  ;;  %p3990_p9 = scmp.ge.s32.totalorder %s5578_s20, 2 }
  0x10   : > { %p5682_p8 = por %p284_p7, %p283_p4  ;;  %330 = sbr.rel (%p3990_p9) target bundleno = 63 (0x3f), region = 56 }
  0x15   : > { %333 = sbr.rel (!%p40_p5) target bundleno = 63 (0x3f), region = 60  ;;  %s335_s29 = sand.u32 (%p40_p5), 1, %s5574_s19  }
  0x16   : > { %s3992_s30 = sshll.u32 (%p40_p5), %s5578_s20, 2  ;;  %s3991_s12 = sshll.u32 (%p40_p5), %s335_s29, 7 }
  0x17   : > { %s7944_s0 = sld [smem:[#allocation59_spill]] (%p40_p5)  ;;  %s5698_s16 = scalar_lea.vmem (%p40_p5), [#allocation2], %s3991_s12 }
  0x1d   : > { %s5694_s15 = scalar_lea.vmem %s7944_s0, %s3992_s30 }
  0x1e   : > { %v356_v0 = vld [vmem:[%s5694_s15] sm:$0xf]  ;;  %v358_v1 = vld [vmem:[%s5694_s15 + $0x8] sm:$0xf]  ;;  %v360_v2 = vld [vmem:[%s5694_s15 + $0x10] sm:$0xf] }
  0x1f   : > { %357 = vst [vmem:[%s5698_s16] sm:$0xf] %v356_v0  ;;  %v362_v3 = vld [vmem:[%s5694_s15 + $0x18] sm:$0xf]  ;;  %v364_v4 = vld [vmem:[%s5694_s15 + $0x20] sm:$0xf] }
  0x20   : > { %359 = vst [vmem:[%s5698_s16 + $0x4] sm:$0xf] %v358_v1  ;;  %v366_v5 = vld [vmem:[%s5694_s15 + $0x28] sm:$0xf]  ;;  %v368_v6 = vld [vmem:[%s5694_s15 + $0x30] sm:$0xf] }
  0x21   : > { %361 = vst [vmem:[%s5698_s16 + $0x8] sm:$0xf] %v360_v2  ;;  %v370_v7 = vld [vmem:[%s5694_s15 + $0x38] sm:$0xf]  ;;  %v372_v8 = vld [vmem:[%s5694_s15 + $0x40] sm:$0xf] }
  0x22   : > { %363 = vst [vmem:[%s5698_s16 + $0xc] sm:$0xf] %v362_v3  ;;  %v374_v9 = vld [vmem:[%s5694_s15 + $0x48] sm:$0xf]  ;;  %v376_v10 = vld [vmem:[%s5694_s15 + $0x50] sm:$0xf] }
  0x23   : > { %365 = vst [vmem:[%s5698_s16 + $0x10] sm:$0xf] %v364_v4  ;;  %v378_v11 = vld [vmem:[%s5694_s15 + $0x58] sm:$0xf]  ;;  %v380_v12 = vld [vmem:[%s5694_s15 + $0x60] sm:$0xf] }
  0x24   : > { %367 = vst [vmem:[%s5698_s16 + $0x14] sm:$0xf] %v366_v5  ;;  %v382_v13 = vld [vmem:[%s5694_s15 + $0x68] sm:$0xf]  ;;  %v384_v14 = vld [vmem:[%s5694_s15 + $0x70] sm:$0xf] }
  0x25   : > { %369 = vst [vmem:[%s5698_s16 + $0x18] sm:$0xf] %v368_v6  ;;  %v386_v15 = vld [vmem:[%s5694_s15 + $0x78] sm:$0xf]  ;;  %v388_v16 = vld [vmem:[%s5694_s15 + $0x80] sm:$0xf] }
  0x26   : > { %371 = vst [vmem:[%s5698_s16 + $0x1c] sm:$0xf] %v370_v7  ;;  %v390_v17 = vld [vmem:[%s5694_s15 + $0x88] sm:$0xf]  ;;  %v392_v18 = vld [vmem:[%s5694_s15 + $0x90] sm:$0xf] }
  0x27   : > { %373 = vst [vmem:[%s5698_s16 + $0x20] sm:$0xf] %v372_v8  ;;  %v394_v19 = vld [vmem:[%s5694_s15 + $0x98] sm:$0xf]  ;;  %v396_v20 = vld [vmem:[%s5694_s15 + $0xa0] sm:$0xf] }
  0x28   : > { %375 = vst [vmem:[%s5698_s16 + $0x24] sm:$0xf] %v374_v9  ;;  %v398_v21 = vld [vmem:[%s5694_s15 + $0xa8] sm:$0xf]  ;;  %v400_v22 = vld [vmem:[%s5694_s15 + $0xb0] sm:$0xf] }
  0x29   : > { %377 = vst [vmem:[%s5698_s16 + $0x28] sm:$0xf] %v376_v10  ;;  %v402_v23 = vld [vmem:[%s5694_s15 + $0xb8] sm:$0xf]  ;;  %v404_v24 = vld [vmem:[%s5694_s15 + $0xc0] sm:$0xf] }
  0x2a   : > { %379 = vst [vmem:[%s5698_s16 + $0x2c] sm:$0xf] %v378_v11  ;;  %v406_v25 = vld [vmem:[%s5694_s15 + $0xc8] sm:$0xf]  ;;  %v408_v26 = vld [vmem:[%s5694_s15 + $0xd0] sm:$0xf] }
  0x2b   : > { %381 = vst [vmem:[%s5698_s16 + $0x30] sm:$0xf] %v380_v12  ;;  %v410_v27 = vld [vmem:[%s5694_s15 + $0xd8] sm:$0xf]  ;;  %v412_v28 = vld [vmem:[%s5694_s15 + $0xe0] sm:$0xf] }
  0x2c   : > { %383 = vst [vmem:[%s5698_s16 + $0x34] sm:$0xf] %v382_v13  ;;  %v414_v29 = vld [vmem:[%s5694_s15 + $0xe8] sm:$0xf]  ;;  %v416_v30 = vld [vmem:[%s5694_s15 + $0xf0] sm:$0xf] }
  0x2d   : > { %385 = vst [vmem:[%s5698_s16 + $0x38] sm:$0xf] %v384_v14  ;;  %v418_v31 = vld [vmem:[%s5694_s15 + $0xf8] sm:$0xf] }
  0x2e   : > { %387 = vst [vmem:[%s5698_s16 + $0x3c] sm:$0xf] %v386_v15 }
  0x2f   : > { %389 = vst [vmem:[%s5698_s16 + $0x40] sm:$0xf] %v388_v16 }
  0x30   : > { %391 = vst [vmem:[%s5698_s16 + $0x44] sm:$0xf] %v390_v17 }
  0x31   : > { %393 = vst [vmem:[%s5698_s16 + $0x48] sm:$0xf] %v392_v18 }
  0x32   : > { %395 = vst [vmem:[%s5698_s16 + $0x4c] sm:$0xf] %v394_v19 }
  0x33   : > { %397 = vst [vmem:[%s5698_s16 + $0x50] sm:$0xf] %v396_v20 }
  0x34   : > { %399 = vst [vmem:[%s5698_s16 + $0x54] sm:$0xf] %v398_v21 }
  0x35   : > { %401 = vst [vmem:[%s5698_s16 + $0x58] sm:$0xf] %v400_v22 }
  0x36   : > { %403 = vst [vmem:[%s5698_s16 + $0x5c] sm:$0xf] %v402_v23 }
  0x37   : > { %405 = vst [vmem:[%s5698_s16 + $0x60] sm:$0xf] %v404_v24 }
  0x38   : > { %407 = vst [vmem:[%s5698_s16 + $0x64] sm:$0xf] %v406_v25 }
  0x39   : > { %409 = vst [vmem:[%s5698_s16 + $0x68] sm:$0xf] %v408_v26 }
  0x3a   : > { %411 = vst [vmem:[%s5698_s16 + $0x6c] sm:$0xf] %v410_v27 }
  0x3b   : > { %413 = vst [vmem:[%s5698_s16 + $0x70] sm:$0xf] %v412_v28 }
  0x3c   : > { %415 = vst [vmem:[%s5698_s16 + $0x74] sm:$0xf] %v414_v29 }
  0x3d   : > { %417 = vst [vmem:[%s5698_s16 + $0x78] sm:$0xf] %v416_v30 }
  0x3e   : > { %419 = vst [vmem:[%s5698_s16 + $0x7c] sm:$0xf] %v418_v31 }
  0x3f PF: > { %p3993_p10 = scmp.ge.s32.totalorder %s5578_s20, 1  ;;  %p506_p11 = scmp.lt.s32.totalorder %s5578_s20, 3 }
  0x41   : > { %p507_p12 = pnand %p3993_p10, %p506_p11 }
  0x43   : > { %510 = sbr.rel (%p507_p12) target bundleno = 1639 (0x667), region = 101 }
  0x48   : > { %s7945_s1 = sld [smem:[#allocation60_spill]]  ;;  %s5906_s13 = sand.u32 1, %s5570_s18   ;;  %vm733_vm0 = vcmask 785408   ;;  %vm3818_vm1 = vcmask 1043456   ;;  %vm3889_vm2 = vcmask 1041408   ;;  %vm3814_vm3 = vcmask 982016  }
  0x49   : > { %s3994_s21 = sshll.u32 %s5906_s13, 7  ;;  %s7946_s2 = sld [smem:[#allocation61_spill]]  ;;  %vm3885_vm4 = vcmask 687104  }
  0x4a   : > { %s5924_s14 = scalar_lea.vmem [#allocation2], %s3994_s21  ;;  %s8089_s24 = sadd.s32 4294967295, %s5578_s20  }
  0x4b   : > { %s5083_s25 = sshll.u32 %s8089_s24, 3  ;;  %s5536_s30 = scalar_lea.hbm %s7937_s11, 16 }
  0x4c   : > { %s3918_s12 = scalar_lea.hbm %s7937_s11, %s5083_s25 }
  0x4d   : > { %s3922_s22 = sshll.u32 %s3918_s12, 4  ;;  %s3923_s22 = int_to_ptr.hbm [resolvable:$true] %s3922_s22 }
  0x4e   : > { %v4038_v32 = vld [vmem:[%s7945_s1 + $0x50] sm:$0xf]  ;;  %v5097_v33 = vld [vmem:[%s7945_s1 + $0x54] sm:$0xf0]  ;;  %v5096_v34 = vld [vmem:[%s7945_s1 + $0x54] sm:$0xf] }
  0x4f   : > { %v4039_v35 = vor.u32 %v5097_v33, %v4038_v32  ;;  %v4040_v36 = vld [vmem:[%s7945_s1 + $0x58] sm:$0xf0]  ;;  %v4126_v37 = vld [vmem:[%s7945_s1 + $0xb0] sm:$0xf]  ;;  %v5109_v38 = vld [vmem:[%s7945_s1 + $0xb4] sm:$0xf0] }
  0x50   : > { %v4043_v39 = vor.u32 %v5096_v34, %v4040_v36  ;;  %v4127_v40 = vor.u32 %v5109_v38, %v4126_v37  ;;  %v5108_v41 = vld [vmem:[%s7945_s1 + $0xb4] sm:$0xf]  ;;  %v4128_v42 = vld [vmem:[%s7945_s1 + $0xb8] sm:$0xf0]  ;;  %v4030_v43 = vld [vmem:[%s7945_s1 + $0x40] sm:$0xf] }
  0x51   : > { %778 = vmatpush.bf16.msra.mxu0 %v4039_v35  ;;  %v4131_v44 = vor.u32 %v5108_v41, %v4128_v42  ;;  %v5095_v45 = vld [vmem:[%s7945_s1 + $0x44] sm:$0xf0]  ;;  %v5094_v46 = vld [vmem:[%s7945_s1 + $0x44] sm:$0xf]  ;;  %v4032_v47 = vld [vmem:[%s7945_s1 + $0x48] sm:$0xf0] }
  0x52   : > { %857 = vmatpush.bf16.msra.mxu1 %v4043_v39  ;;  %1123 = vmatpush.bf16.msra.mxu2 %v4127_v40  ;;  %v4031_v48 = vor.u32 %v5095_v45, %v4030_v43  ;;  %v4035_v49 = vor.u32 %v5094_v46, %v4032_v47  ;;  %v4118_v50 = vld [vmem:[%s7945_s1 + $0xa0] sm:$0xf]  ;;  %v5107_v51 = vld [vmem:[%s7945_s1 + $0xa4] sm:$0xf0]  ;;  %v5106_v52 = vld [vmem:[%s7945_s1 + $0xa4] sm:$0xf] }
  0x53   : > { %1202 = vmatpush.bf16.msra.mxu3 %v4131_v44  ;;  %v4119_v53 = vor.u32 %v5107_v51, %v4118_v50  ;;  %v4120_v54 = vld [vmem:[%s7945_s1 + $0xa8] sm:$0xf0]  ;;  %v4022_v55 = vld [vmem:[%s7945_s1 + $0x30] sm:$0xf]  ;;  %v5093_v56 = vld [vmem:[%s7945_s1 + $0x34] sm:$0xf0] }
  0x54   : > { %v4123_v57 = vor.u32 %v5106_v52, %v4120_v54  ;;  %v5092_v58 = vld [vmem:[%s7945_s1 + $0x34] sm:$0xf]  ;;  %v4024_v59 = vld [vmem:[%s7945_s1 + $0x38] sm:$0xf0]  ;;  %v4110_v60 = vld [vmem:[%s7945_s1 + $0x90] sm:$0xf]  ;;  %v4023_v61 = vor.u32 %v5093_v56, %v4022_v55 }
  0x55   : > { %779 = vmatpush.bf16.msra.mxu0 %v4031_v48  ;;  %v5105_v62 = vld [vmem:[%s7945_s1 + $0x94] sm:$0xf0]  ;;  %v5104_v63 = vld [vmem:[%s7945_s1 + $0x94] sm:$0xf]  ;;  %v4112_v0 = vld [vmem:[%s7945_s1 + $0x98] sm:$0xf0]  ;;  %v4027_v1 = vor.u32 %v5092_v58, %v4024_v59 }
  0x56   : > { %858 = vmatpush.bf16.msra.mxu1 %v4035_v49  ;;  %1124 = vmatpush.bf16.msra.mxu2 %v4119_v53  ;;  %v4111_v2 = vor.u32 %v5105_v62, %v4110_v60  ;;  %v4014_v3 = vld [vmem:[%s7945_s1 + $0x20] sm:$0xf]  ;;  %v5091_v4 = vld [vmem:[%s7945_s1 + $0x24] sm:$0xf0]  ;;  %v5090_v5 = vld [vmem:[%s7945_s1 + $0x24] sm:$0xf]  ;;  %v4115_v6 = vor.u32 %v5104_v63, %v4112_v0 }
  0x57   : > { %1203 = vmatpush.bf16.msra.mxu3 %v4123_v57  ;;  %v4016_v7 = vld [vmem:[%s7945_s1 + $0x28] sm:$0xf0]  ;;  %v4102_v8 = vld [vmem:[%s7945_s1 + $0x80] sm:$0xf]  ;;  %v5103_v9 = vld [vmem:[%s7945_s1 + $0x84] sm:$0xf0]  ;;  %v4015_v12 = vor.u32 %v5091_v4, %v4014_v3 }
  0x58   : > { %v5102_v10 = vld [vmem:[%s7945_s1 + $0x84] sm:$0xf]  ;;  %v4104_v11 = vld [vmem:[%s7945_s1 + $0x88] sm:$0xf0]  ;;  %v4006_v13 = vld [vmem:[%s7945_s1 + $0x10] sm:$0xf]  ;;  %v4019_v14 = vor.u32 %v5090_v5, %v4016_v7  ;;  %v4103_v15 = vor.u32 %v5103_v9, %v4102_v8 }
  0x59   : > { %780 = vmatpush.bf16.msra.mxu0 %v4023_v61  ;;  %v5089_v16 = vld [vmem:[%s7945_s1 + $0x14] sm:$0xf0]  ;;  %v5088_v17 = vld [vmem:[%s7945_s1 + $0x14] sm:$0xf]  ;;  %v4008_v18 = vld [vmem:[%s7945_s1 + $0x18] sm:$0xf0]  ;;  %v4107_v19 = vor.u32 %v5102_v10, %v4104_v11 }
  0x5a   : > { %859 = vmatpush.bf16.msra.mxu1 %v4027_v1  ;;  %1125 = vmatpush.bf16.msra.mxu2 %v4111_v2  ;;  %v4094_v20 = vld [vmem:[%s7945_s1 + $0x70] sm:$0xf]  ;;  %v5101_v21 = vld [vmem:[%s7945_s1 + $0x74] sm:$0xf0]  ;;  %v5100_v22 = vld [vmem:[%s7945_s1 + $0x74] sm:$0xf]  ;;  %v4007_v26 = vor.u32 %v5089_v16, %v4006_v13  ;;  %v4011_v30 = vor.u32 %v5088_v17, %v4008_v18 }
  0x5b   : > { %1204 = vmatpush.bf16.msra.mxu3 %v4115_v6  ;;  %v4096_v23 = vld [vmem:[%s7945_s1 + $0x78] sm:$0xf0]  ;;  %v3998_v24 = vld [vmem:[%s7945_s1] sm:$0xf]  ;;  %v5087_v25 = vld [vmem:[%s7945_s1 + $0x4] sm:$0xf0]  ;;  %v4095_v31 = vor.u32 %v5101_v21, %v4094_v20 }
  0x5c   : > { %v5086_v27 = vld [vmem:[%s7945_s1 + $0x4] sm:$0xf]  ;;  %v4000_v28 = vld [vmem:[%s7945_s1 + $0x8] sm:$0xf0]  ;;  %v4086_v29 = vld [vmem:[%s7945_s1 + $0x60] sm:$0xf]  ;;  %v4099_v34 = vor.u32 %v5100_v22, %v4096_v23  ;;  %v3999_v38 = vor.u32 %v5087_v25, %v3998_v24 }
  0x5d   : > { %781 = vmatpush.bf16.msra.mxu0 %v4015_v12  ;;  %v5099_v32 = vld [vmem:[%s7945_s1 + $0x64] sm:$0xf0]  ;;  %v5098_v33 = vld [vmem:[%s7945_s1 + $0x64] sm:$0xf]  ;;  %v4088_v35 = vld [vmem:[%s7945_s1 + $0x68] sm:$0xf0]  ;;  %v4003_v41 = vor.u32 %v5086_v27, %v4000_v28 }
  0x5e   : > { %860 = vmatpush.bf16.msra.mxu1 %v4019_v14  ;;  %1126 = vmatpush.bf16.msra.mxu2 %v4103_v15  ;;  %v4214_v36 = vld [vmem:[%s7945_s1 + $0x110] sm:$0xf]  ;;  %v5121_v37 = vld [vmem:[%s7945_s1 + $0x114] sm:$0xf0]  ;;  %v5120_v39 = vld [vmem:[%s7945_s1 + $0x114] sm:$0xf]  ;;  %v4087_v42 = vor.u32 %v5099_v32, %v4086_v29  ;;  %v4091_v43 = vor.u32 %v5098_v33, %v4088_v35 }
  0x5f   : > { %1205 = vmatpush.bf16.msra.mxu3 %v4107_v19  ;;  %v4216_v40 = vld [vmem:[%s7945_s1 + $0x118] sm:$0xf0]  ;;  %v4215_v44 = vor.u32 %v5121_v37, %v4214_v36  ;;  %v5279_v46 = vld [vmem:[%s5924_s14] sm:$0xff]   ;;  %v5119_v49 = vld [vmem:[%s7945_s1 + $0x104] sm:$0xf0]  ;;  %s5530_s24 = sshra.s32 %s3923_s22, 4  ;;  %s5531_s24 = int_to_ptr.hbm [resolvable:$true] %s5530_s24 }
  0x60   : > { %v4219_v45 = vor.u32 %v5120_v39, %v4216_v40  ;;  %v5424_v47 = vld [vmem:[%s5924_s14 + $0x4] sm:$0xff]   ;;  %v4206_v48 = vld [vmem:[%s7945_s1 + $0x100] sm:$0xf]  ;;  %v4208_v52 = vld [vmem:[%s7945_s1 + $0x108] sm:$0xf0]  ;;  %p5537_p2 = scmp.lt.s32.totalorder %s5531_s24, %s7937_s11 }
  0x61   : > { %782 = vmatpush.bf16.msra.mxu0 %v4007_v26  ;;  %v5118_v50 = vld [vmem:[%s7945_s1 + $0x104] sm:$0xf]  ;;  %v4207_v51 = vor.u32 %v5119_v49, %v4206_v48  ;;  %v5945_v54 = vld [vmem:[%s5924_s14 + $0x8] sm:$0xff]   ;;  %v5959_v56 = vld [vmem:[%s5924_s14 + $0x10] sm:$0xff]  }
  0x62   : > { %861 = vmatpush.bf16.msra.mxu1 %v4011_v30  ;;  %1127 = vmatpush.bf16.msra.mxu2 %v4095_v31  ;;  %v4211_v53 = vor.u32 %v5118_v50, %v4208_v52  ;;  %v5948_v55 = vld [vmem:[%s5924_s14 + $0xc] sm:$0xff]   ;;  %v5962_v57 = vld [vmem:[%s5924_s14 + $0x14] sm:$0xff]   ;;  %v4200_v62 = vld [vmem:[%s7945_s1 + $0xf8] sm:$0xf0] }
  0x63   : > { %1206 = vmatpush.bf16.msra.mxu3 %v4099_v34  ;;  %v4198_v58 = vld [vmem:[%s7945_s1 + $0xf0] sm:$0xf]  ;;  %v5117_v59 = vld [vmem:[%s7945_s1 + $0xf4] sm:$0xf0]  ;;  %v5116_v60 = vld [vmem:[%s7945_s1 + $0xf4] sm:$0xf] }
  0x64   : > { %v4199_v61 = vor.u32 %v5117_v59, %v4198_v58  ;;  %v4203_v63 = vor.u32 %v5116_v60, %v4200_v62  ;;  %v5985_v0 = vld [vmem:[%s5924_s14 + $0x18] sm:$0xff]   ;;  %v5999_v2 = vld [vmem:[%s5924_s14 + $0x20] sm:$0xff]   ;;  %v6013_v4 = vld [vmem:[%s5924_s14 + $0x28] sm:$0xff]  }
  0x65   : > { %783 = vmatpush.bf16.msra.mxu0 %v3999_v38  ;;  %v5988_v1 = vld [vmem:[%s5924_s14 + $0x1c] sm:$0xff]   ;;  %v6002_v3 = vld [vmem:[%s5924_s14 + $0x24] sm:$0xff]   ;;  %v6016_v5 = vld [vmem:[%s5924_s14 + $0x2c] sm:$0xff]  }
  0x66   : > { %862 = vmatpush.bf16.msra.mxu1 %v4003_v41  ;;  %1128 = vmatpush.bf16.msra.mxu2 %v4087_v42  ;;  %v4190_v6 = vld [vmem:[%s7945_s1 + $0xe0] sm:$0xf]  ;;  %v5115_v7 = vld [vmem:[%s7945_s1 + $0xe4] sm:$0xf0]  ;;  %v5114_v8 = vld [vmem:[%s7945_s1 + $0xe4] sm:$0xf] }
  0x67   : > { %1207 = vmatpush.bf16.msra.mxu3 %v4091_v43  ;;  %v4191_v9 = vor.u32 %v5115_v7, %v4190_v6  ;;  %v4192_v10 = vld [vmem:[%s7945_s1 + $0xe8] sm:$0xf0]  ;;  %v6039_v12 = vld [vmem:[%s5924_s14 + $0x30] sm:$0xff]   ;;  %v6053_v14 = vld [vmem:[%s5924_s14 + $0x38] sm:$0xff]  }
  0x68   : > { %4044 = vmatmul.msk.bf16.vlgmr.msra.gmra.mxu0 %vm733_vm0, %v5279_v46  ;;  %v4195_v11 = vor.u32 %v5114_v8, %v4192_v10  ;;  %v6042_v13 = vld [vmem:[%s5924_s14 + $0x34] sm:$0xff]   ;;  %v6056_v15 = vld [vmem:[%s5924_s14 + $0x3c] sm:$0xff]   ;;  %v4182_v16 = vld [vmem:[%s7945_s1 + $0xd0] sm:$0xf] }
  0x69   : > { %1416 = vmatpush.bf16.msrb.mxu0 %v4215_v44  ;;  %4058 = vmatmul.msk.bf16.vlgmr.msra.gmra.mxu1 %vm733_vm0, %v5279_v46  ;;  %v5113_v17 = vld [vmem:[%s7945_s1 + $0xd4] sm:$0xf0]  ;;  %v5112_v18 = vld [vmem:[%s7945_s1 + $0xd4] sm:$0xf]  ;;  %v4184_v20 = vld [vmem:[%s7945_s1 + $0xd8] sm:$0xf0] }
  0x6a   : > { %1495 = vmatpush.bf16.msrb.mxu1 %v4219_v45  ;;  %4132 = vmatmul.msk.bf16.vlgmr.msra.gmra.mxu2 %vm733_vm0, %v5424_v47  ;;  %v4183_v19 = vor.u32 %v5113_v17, %v4182_v16  ;;  %v4187_v21 = vor.u32 %v5112_v18, %v4184_v20  ;;  %v585_v22 = vld [vmem:[%s7946_s2] sm:$0x3]  ;;  %v6085_v25 = vld [vmem:[%s5924_s14 + $0x44] sm:$0xff]   ;;  %v6113_v44 = vld [vmem:[%s5924_s14 + $0x4c] sm:$0xff]   ;;  %s5532_s2 = scalar_lea.hbm %s5531_s24, 8 }
  0x6b   : > { %4146 = vmatmul.msk.bf16.vlgmr.msra.gmra.mxu3 %vm733_vm0, %v5424_v47  ;;  %v6082_v24 = vld [vmem:[%s5924_s14 + $0x40] sm:$0xff]   ;;  %v6087_v27 = vperm.slane %v585_v22, 0  ;;  %v6089_v28 = vperm.slane %v585_v22, 1  ;;  %v6110_v43 = vld [vmem:[%s5924_s14 + $0x48] sm:$0xff]   ;;  %v6136_v7 = vld [vmem:[%s5924_s14 + $0x50] sm:$0xff]   ;;  %p5533_p13 = scmp.ne.s32.totalorder %s5531_s24, %s5532_s2  ;;  %p5538_p3 = scmp.lt.s32.totalorder %s5536_s30, %s5532_s2 }
  0x6c   : > { %v6139_v8 = vld [vmem:[%s5924_s14 + $0x54] sm:$0xff]   ;;  %v5111_v16 = vld [vmem:[%s7945_s1 + $0xc4] sm:$0xf0]  ;;  %v5110_v17 = vld [vmem:[%s7945_s1 + $0xc4] sm:$0xf] }
  0x6d   : > { %1417 = vmatpush.bf16.msrb.mxu0 %v4207_v51  ;;  %p5534_p0 = pnand %p5533_p13, %p5678_p6  ;;  %p5539_p4 = por %p5538_p3, %p5537_p2 }
  0x6e   : > { %1496 = vmatpush.bf16.msrb.mxu1 %v4211_v53 }
  0x6f   : > { %p5535_p1 = pneg %p5534_p0 }
  0x71   : > { %1418 = vmatpush.bf16.msrb.mxu0 %v4199_v61  ;;  %p5540_p5 = pnand %p5539_p4, %p5535_p1 }
  0x72   : > { %1497 = vmatpush.bf16.msrb.mxu1 %v4203_v63 }
  0x75   : > { %1419 = vmatpush.bf16.msrb.mxu0 %v4191_v9 }
  0x76   : > { %1498 = vmatpush.bf16.msrb.mxu1 %v4195_v11  ;;  %v4174_v11 = vld [vmem:[%s7945_s1 + $0xc0] sm:$0xf] }
  0x77   : > { %v4175_v18 = vor.u32 %v5111_v16, %v4174_v11 }
  0x78   : > { %4045 = vmatmul.msk.bf16.gmra.mxu0 %vm733_vm0, %v5945_v54 }
  0x79   : > { %4059 = vmatmul.msk.bf16.gmra.mxu1 %vm733_vm0, %v5945_v54  ;;  %1420 = vmatpush.bf16.msrb.mxu0 %v4183_v19  ;;  %v4176_v19 = vld [vmem:[%s7945_s1 + $0xc8] sm:$0xf0] }
  0x7a   : > { %4133 = vmatmul.msk.bf16.gmra.mxu2 %vm733_vm0, %v5948_v55  ;;  %1499 = vmatpush.bf16.msrb.mxu1 %v4187_v21  ;;  %v4179_v20 = vor.u32 %v5110_v17, %v4176_v19  ;;  %v4286_v17 = vld [vmem:[%s7945_s1 + $0x150] sm:$0xf] }
  0x7b   : > { %4147 = vmatmul.msk.bf16.gmra.mxu3 %vm733_vm0, %v5948_v55 }
  0x7d   : > { %1421 = vmatpush.bf16.msrb.mxu0 %v4175_v18  ;;  %v5129_v18 = vld [vmem:[%s7945_s1 + $0x154] sm:$0xf0] }
  0x7e   : > { %1500 = vmatpush.bf16.msrb.mxu1 %v4179_v20  ;;  %v4287_v19 = vor.u32 %v5129_v18, %v4286_v17  ;;  %v5128_v20 = vld [vmem:[%s7945_s1 + $0x154] sm:$0xf]  ;;  %v4262_v18 = vld [vmem:[%s7945_s1 + $0x120] sm:$0xf] }
  0x88   : > { %4046 = vmatmul.msk.bf16.gmra.mxu0 %vm733_vm0, %v5959_v56 }
  0x89   : > { %4060 = vmatmul.msk.bf16.gmra.mxu1 %vm733_vm0, %v5959_v56 }
  0x8a   : > { %4134 = vmatmul.msk.bf16.gmra.mxu2 %vm733_vm0, %v5962_v57 }
  0x8b   : > { %4148 = vmatmul.msk.bf16.gmra.mxu3 %vm733_vm0, %v5962_v57 }
  0x98   : > { %4047 = vmatmul.msk.bf16.gmra.mxu0 %vm733_vm0, %v5985_v0 }
  0x99   : > { %4061 = vmatmul.msk.bf16.gmra.mxu1 %vm733_vm0, %v5985_v0 }
  0x9a   : > { %4135 = vmatmul.msk.bf16.gmra.mxu2 %vm733_vm0, %v5988_v1 }
  0x9b   : > { %4149 = vmatmul.msk.bf16.gmra.mxu3 %vm733_vm0, %v5988_v1 }
  0xa8   : > { %4048 = vmatmul.msk.bf16.gmra.mxu0 %vm733_vm0, %v5999_v2 }
  0xa9   : > { %4062 = vmatmul.msk.bf16.gmra.mxu1 %vm733_vm0, %v5999_v2 }
  0xaa   : > { %4136 = vmatmul.msk.bf16.gmra.mxu2 %vm733_vm0, %v6002_v3 }
  0xab   : > { %4150 = vmatmul.msk.bf16.gmra.mxu3 %vm733_vm0, %v6002_v3 }
  0xb8   : > { %4049 = vmatmul.msk.bf16.gmra.mxu0 %vm733_vm0, %v6013_v4 }
  0xb9   : > { %4063 = vmatmul.msk.bf16.gmra.mxu1 %vm733_vm0, %v6013_v4 }
  0xba   : > { %4137 = vmatmul.msk.bf16.gmra.mxu2 %vm733_vm0, %v6016_v5 }
  0xbb   : > { %4151 = vmatmul.msk.bf16.gmra.mxu3 %vm733_vm0, %v6016_v5 }
  0xc8   : > { %4050 = vmatmul.msk.bf16.gmra.mxu0 %vm733_vm0, %v6039_v12 }
  0xc9   : > { %4064 = vmatmul.msk.bf16.gmra.mxu1 %vm733_vm0, %v6039_v12 }
  0xca   : > { %4138 = vmatmul.msk.bf16.gmra.mxu2 %vm733_vm0, %v6042_v13 }
  0xcb   : > { %4152 = vmatmul.msk.bf16.gmra.mxu3 %vm733_vm0, %v6042_v13 }
  0xd8   : > { %4051 = vmatmul.msk.bf16.gmra.mxu0 %vm733_vm0, %v6053_v14 }
  0xd9   : > { %4065 = vmatmul.msk.bf16.gmra.mxu1 %vm733_vm0, %v6053_v14 }
  0xda   : > { %4139 = vmatmul.msk.bf16.gmra.mxu2 %vm733_vm0, %v6056_v15 }
  0xdb   : > { %4153 = vmatmul.msk.bf16.gmra.mxu3 %vm733_vm0, %v6056_v15 }
  0xe5   : > { %v785_v23 = vpop.f32.mrf.mxu0 }
  0xe6   : > { %v864_v26 = vpop.f32.mrf.mxu1  ;;  %v934_v29 = vadd.f32 %v785_v23, %v6087_v27 }
  0xe7   : > { %v935_v30 = vadd.f32 %v864_v26, %v6089_v28 }
  0xe8   : > { %4052 = vmatmul.msk.bf16.gmra.mxu0 %vm733_vm0, %v6082_v24 }
  0xe9   : > { %4066 = vmatmul.msk.bf16.gmra.mxu1 %vm733_vm0, %v6082_v24 }
  0xea   : > { %4140 = vmatmul.msk.bf16.gmra.mxu2 %vm733_vm0, %v6085_v25 }
  0xeb   : > { %4154 = vmatmul.msk.bf16.gmra.mxu3 %vm733_vm0, %v6085_v25 }
  0xed   : > { %v1130_v31 = vpop.f32.mrf.mxu2  ;;  %v787_v34 = vpop.f32.mrf.mxu0 }
  0xee   : > { %v6101_v32 = vadd.f32 %v1130_v31, %v934_v29  ;;  %v1209_v33 = vpop.f32.mrf.mxu3  ;;  %v866_v36 = vpop.f32.mrf.mxu1  ;;  %v936_v37 = vadd.f32 %v787_v34, %v6087_v27  ;;  %v4302_v34 = vld [vmem:[%s7945_s1 + $0x170] sm:$0xf] }
  0xef   : > { %v6103_v35 = vadd.f32 %v1209_v33, %v935_v30  ;;  %v937_v38 = vadd.f32 %v866_v36, %v6089_v28  ;;  %v5133_v36 = vld [vmem:[%s7945_s1 + $0x174] sm:$0xf0] }
  0xf5   : > { %v1132_v39 = vpop.f32.mrf.mxu2  ;;  %v790_v42 = vpop.f32.mrf.mxu0 }
  0xf6   : > { %v6107_v40 = vadd.f32 %v1132_v39, %v936_v37  ;;  %v1211_v41 = vpop.f32.mrf.mxu3  ;;  %v869_v46 = vpop.f32.mrf.mxu1  ;;  %v938_v47 = vadd.f32 %v790_v42, %v6087_v27  ;;  %v5132_v37 = vld [vmem:[%s7945_s1 + $0x174] sm:$0xf]  ;;  %v4304_v39 = vld [vmem:[%s7945_s1 + $0x178] sm:$0xf0] }
  0xf7   : > { %v6115_v45 = vadd.f32 %v1211_v41, %v937_v38  ;;  %v939_v48 = vadd.f32 %v869_v46, %v6089_v28  ;;  %v4303_v38 = vor.u32 %v5133_v36, %v4302_v34  ;;  %v4307_v41 = vor.u32 %v5132_v37, %v4304_v39  ;;  %v5127_v34 = vld [vmem:[%s7945_s1 + $0x144] sm:$0xf0]  ;;  %v5126_v36 = vld [vmem:[%s7945_s1 + $0x144] sm:$0xf] }
  0xf8   : > { %4053 = vmatmul.msk.bf16.gmra.mxu0 %vm733_vm0, %v6110_v43 }
  0xf9   : > { %4067 = vmatmul.msk.bf16.gmra.mxu1 %vm733_vm0, %v6110_v43  ;;  %1709 = vmatpush.bf16.msrb.mxu2 %v4303_v38 }
  0xfa   : > { %4141 = vmatmul.msk.bf16.gmra.mxu2 %vm733_vm0, %v6113_v44  ;;  %1788 = vmatpush.bf16.msrb.mxu3 %v4307_v41 }
  0xfb   : > { %4155 = vmatmul.msk.bf16.gmra.mxu3 %vm733_vm0, %v6113_v44 }
  0xfd   : > { %v1135_v49 = vpop.f32.mrf.mxu2  ;;  %v792_v52 = vpop.f32.mrf.mxu0 }
  0xfe   : > { %v6127_v50 = vadd.f32 %v1135_v49, %v938_v47  ;;  %v1214_v51 = vpop.f32.mrf.mxu3  ;;  %v871_v58 = vpop.f32.mrf.mxu1  ;;  %v940_v59 = vadd.f32 %v792_v52, %v6087_v27  ;;  %v5131_v49 = vld [vmem:[%s7945_s1 + $0x164] sm:$0xf0] }
  0xff   : > { %v6129_v53 = vadd.f32 %v1214_v51, %v939_v48  ;;  %v941_v60 = vadd.f32 %v871_v58, %v6089_v28  ;;  %v4294_v48 = vld [vmem:[%s7945_s1 + $0x160] sm:$0xf]  ;;  %v5130_v51 = vld [vmem:[%s7945_s1 + $0x164] sm:$0xf] }
 0x105   : > { %v1137_v61 = vpop.f32.mrf.mxu2  ;;  %v795_v6 = vpop.f32.mrf.mxu0 }
 0x106   : > { %v6133_v62 = vadd.f32 %v1137_v61, %v940_v59  ;;  %v1216_v63 = vpop.f32.mrf.mxu3  ;;  %v874_v10 = vpop.f32.mrf.mxu1  ;;  %v942_v21 = vadd.f32 %v795_v6, %v6087_v27  ;;  %v6198_v61 = vld [vmem:[%s5924_s14 + $0x5c] sm:$0xff]   ;;  %v4296_v6 = vld [vmem:[%s7945_s1 + $0x168] sm:$0xf0] }
 0x107   : > { %v6141_v9 = vadd.f32 %v1216_v63, %v941_v60  ;;  %v943_v22 = vadd.f32 %v874_v10, %v6089_v28  ;;  %v6195_v60 = vld [vmem:[%s5924_s14 + $0x58] sm:$0xff]   ;;  %v4295_v63 = vor.u32 %v5131_v49, %v4294_v48  ;;  %v4299_v16 = vor.u32 %v5130_v51, %v4296_v6  ;;  %v4270_v49 = vld [vmem:[%s7945_s1 + $0x130] sm:$0xf] }
 0x108   : > { %4054 = vmatmul.msk.bf16.gmra.mxu0 %vm733_vm0, %v6136_v7  ;;  %v5125_v51 = vld [vmem:[%s7945_s1 + $0x134] sm:$0xf0] }
 0x109   : > { %4068 = vmatmul.msk.bf16.gmra.mxu1 %vm733_vm0, %v6136_v7  ;;  %1710 = vmatpush.bf16.msrb.mxu2 %v4295_v63  ;;  %v4272_v63 = vld [vmem:[%s7945_s1 + $0x138] sm:$0xf0] }
 0x10a   : > { %4142 = vmatmul.msk.bf16.gmra.mxu2 %vm733_vm0, %v6139_v8  ;;  %1789 = vmatpush.bf16.msrb.mxu3 %v4299_v16 }
 0x10b   : > { %4156 = vmatmul.msk.bf16.gmra.mxu3 %vm733_vm0, %v6139_v8 }
 0x10d   : > { %v1140_v23 = vpop.f32.mrf.mxu2  ;;  %v797_v30 = vpop.f32.mrf.mxu0  ;;  %1711 = vmatpush.bf16.msrb.mxu2 %v4287_v19  ;;  %v5123_v19 = vld [vmem:[%s7945_s1 + $0x124] sm:$0xf0] }
 0x10e   : > { %v6165_v26 = vadd.f32 %v1140_v23, %v942_v21  ;;  %v1219_v29 = vpop.f32.mrf.mxu3  ;;  %v876_v33 = vpop.f32.mrf.mxu1  ;;  %v944_v42 = vadd.f32 %v797_v30, %v6087_v27  ;;  %v4288_v21 = vld [vmem:[%s7945_s1 + $0x158] sm:$0xf0] }
 0x10f   : > { %v6167_v31 = vadd.f32 %v1219_v29, %v943_v22  ;;  %v945_v46 = vadd.f32 %v876_v33, %v6089_v28  ;;  %v4291_v22 = vor.u32 %v5128_v20, %v4288_v21  ;;  %v4278_v33 = vld [vmem:[%s7945_s1 + $0x140] sm:$0xf]  ;;  %v5122_v20 = vld [vmem:[%s7945_s1 + $0x124] sm:$0xf] }
 0x110   : > { %v4279_v41 = vor.u32 %v5127_v34, %v4278_v33  ;;  %v4263_v33 = vor.u32 %v5123_v19, %v4262_v18  ;;  %v4264_v34 = vld [vmem:[%s7945_s1 + $0x128] sm:$0xf0] }
 0x111   : > { %1790 = vmatpush.bf16.msrb.mxu3 %v4291_v22 }
 0x112   : > { %1712 = vmatpush.bf16.msrb.mxu2 %v4279_v41  ;;  %v4390_v41 = vld [vmem:[%s7945_s1 + $0x1d0] sm:$0xf] }
 0x115   : > { %v1142_v47 = vpop.f32.mrf.mxu2  ;;  %v800_v59 = vpop.f32.mrf.mxu0 }
 0x116   : > { %v6192_v52 = vadd.f32 %v1142_v47, %v944_v42  ;;  %v1221_v58 = vpop.f32.mrf.mxu3  ;;  %v879_v11 = vpop.f32.mrf.mxu1  ;;  %v946_v23 = vadd.f32 %v800_v59, %v6087_v27  ;;  %v4280_v42 = vld [vmem:[%s7945_s1 + $0x148] sm:$0xf0]  ;;  %v4271_v59 = vor.u32 %v5125_v51, %v4270_v49  ;;  %v4392_v51 = vld [vmem:[%s7945_s1 + $0x1d8] sm:$0xf0] }
 0x117   : > { %v6203_v10 = vadd.f32 %v1221_v58, %v945_v46  ;;  %v947_v29 = vadd.f32 %v879_v11, %v6089_v28  ;;  %v4283_v48 = vor.u32 %v5126_v36, %v4280_v42  ;;  %v5124_v58 = vld [vmem:[%s7945_s1 + $0x134] sm:$0xf]  ;;  %v5145_v42 = vld [vmem:[%s7945_s1 + $0x1d4] sm:$0xf0] }
 0x118   : > { %4055 = vmatmul.msk.bf16.gmra.mxu0 %vm733_vm0, %v6195_v60  ;;  %v4275_v6 = vor.u32 %v5124_v58, %v4272_v63  ;;  %1713 = vmatpush.bf16.msrb.mxu2 %v4271_v59  ;;  %v4391_v49 = vor.u32 %v5145_v42, %v4390_v41 }
 0x119   : > { %4069 = vmatmul.msk.bf16.gmra.mxu1 %vm733_vm0, %v6195_v60  ;;  %1791 = vmatpush.bf16.msrb.mxu3 %v4283_v48 }
 0x11a   : > { %4143 = vmatmul.msk.bf16.gmra.mxu2 %vm733_vm0, %v6198_v61  ;;  %2002 = vmatpush.bf16.msra.mxu0 %v4391_v49 }
 0x11b   : > { %4157 = vmatmul.msk.bf16.gmra.mxu3 %vm733_vm0, %v6198_v61 }
 0x11c   : > { %1714 = vmatpush.bf16.msrb.mxu2 %v4263_v33 }
 0x11d   : > { %v1145_v30 = vpop.f32.mrf.mxu2  ;;  %v802_v39 = vpop.f32.mrf.mxu0  ;;  %1792 = vmatpush.bf16.msrb.mxu3 %v4275_v6 }
 0x11e   : > { %v6236_v37 = vadd.f32 %v1145_v30, %v946_v23  ;;  %v1224_v38 = vpop.f32.mrf.mxu3  ;;  %v881_v47 = vpop.f32.mrf.mxu1  ;;  %v948_v11 = vadd.f32 %v802_v39, %v6087_v27  ;;  %v6272_v30 = vld [vmem:[%s5924_s14 + $0x64] sm:$0xff]   ;;  %v4267_v39 = vor.u32 %v5122_v20, %v4264_v34 }
 0x11f   : > { %v6241_v46 = vadd.f32 %v1224_v38, %v947_v29  ;;  %v949_v16 = vadd.f32 %v881_v47, %v6089_v28  ;;  %v6269_v29 = vld [vmem:[%s5924_s14 + $0x60] sm:$0xff]   ;;  %v5144_v47 = vld [vmem:[%s7945_s1 + $0x1d4] sm:$0xf] }
 0x120   : > { %v4395_v63 = vor.u32 %v5144_v47, %v4392_v51 }
 0x121   : > { %1793 = vmatpush.bf16.msrb.mxu3 %v4267_v39  ;;  %v6313_v39 = vld [vmem:[%s5924_s14 + $0x6c] sm:$0xff]  }
 0x122   : > { %2081 = vmatpush.bf16.msra.mxu1 %v4395_v63 }
 0x125   : > { %v1147_v17 = vpop.f32.mrf.mxu2  ;;  %v805_v23 = vpop.f32.mrf.mxu0 }
 0x126   : > { %v6266_v21 = vadd.f32 %v1147_v17, %v948_v11  ;;  %v1226_v22 = vpop.f32.mrf.mxu3  ;;  %v884_v38 = vpop.f32.mrf.mxu1  ;;  %v950_v48 = vadd.f32 %v805_v23, %v6087_v27 }
 0x127   : > { %v6277_v36 = vadd.f32 %v1226_v22, %v949_v16  ;;  %v951_v58 = vadd.f32 %v884_v38, %v6089_v28  ;;  %v6310_v38 = vld [vmem:[%s5924_s14 + $0x68] sm:$0xff]  }
 0x128   : > { %4056 = vmatmul.msk.bf16.gmra.mxu0 %vm733_vm0, %v6269_v29 }
 0x129   : > { %4070 = vmatmul.msk.bf16.gmra.mxu1 %vm733_vm0, %v6269_v29 }
 0x12a   : > { %4144 = vmatmul.msk.bf16.gmra.mxu2 %vm733_vm0, %v6272_v30 }
 0x12b   : > { %4158 = vmatmul.msk.bf16.gmra.mxu3 %vm733_vm0, %v6272_v30 }
 0x12d   : > { %v1150_v59 = vpop.f32.mrf.mxu2  ;;  %v807_v16 = vpop.f32.mrf.mxu0 }
 0x12e   : > { %v6301_v6 = vadd.f32 %v1150_v59, %v950_v48  ;;  %v1229_v11 = vpop.f32.mrf.mxu3  ;;  %v886_v18 = vpop.f32.mrf.mxu1  ;;  %v952_v19 = vadd.f32 %v807_v16, %v6087_v27 }
 0x12f   : > { %v6303_v17 = vadd.f32 %v1229_v11, %v951_v58  ;;  %v953_v20 = vadd.f32 %v886_v18, %v6089_v28 }
 0x135   : > { %v1152_v22 = vpop.f32.mrf.mxu2  ;;  %v810_v34 = vpop.f32.mrf.mxu0 }
 0x136   : > { %v6307_v23 = vadd.f32 %v1152_v22, %v952_v19  ;;  %v1231_v33 = vpop.f32.mrf.mxu3  ;;  %v889_v42 = vpop.f32.mrf.mxu1  ;;  %v954_v47 = vadd.f32 %v810_v34, %v6087_v27 }
 0x137   : > { %v6315_v41 = vadd.f32 %v1231_v33, %v953_v20  ;;  %v955_v48 = vadd.f32 %v889_v42, %v6089_v28 }
 0x138   : > { %4057 = vmatmul.msk.bf16.gmra.mxu0 %vm733_vm0, %v6310_v38 }
 0x139   : > { %4071 = vmatmul.msk.bf16.gmra.mxu1 %vm733_vm0, %v6310_v38 }
 0x13a   : > { %4145 = vmatmul.msk.bf16.gmra.mxu2 %vm733_vm0, %v6313_v39 }
 0x13b   : > { %4159 = vmatmul.msk.bf16.gmra.mxu3 %vm733_vm0, %v6313_v39 }
 0x13d   : > { %v1155_v49 = vpop.f32.mrf.mxu2  ;;  %v812_v59 = vpop.f32.mrf.mxu0 }
 0x13e   : > { %v6327_v51 = vadd.f32 %v1155_v49, %v954_v47  ;;  %v1234_v58 = vpop.f32.mrf.mxu3  ;;  %v891_v11 = vpop.f32.mrf.mxu1  ;;  %v956_v16 = vadd.f32 %v812_v59, %v6087_v27 }
 0x13f   : > { %v6329_v63 = vadd.f32 %v1234_v58, %v955_v48  ;;  %v957_v18 = vadd.f32 %v891_v11, %v6089_v28 }
 0x145   : > { %v1157_v19 = vpop.f32.mrf.mxu2  ;;  %v815_v33 = vpop.f32.mrf.mxu0 }
 0x146   : > { %v6333_v20 = vadd.f32 %v1157_v19, %v956_v16  ;;  %v1236_v22 = vpop.f32.mrf.mxu3  ;;  %v894_v42 = vpop.f32.mrf.mxu1  ;;  %v958_v47 = vadd.f32 %v815_v33, %v6087_v27  ;;  %v5142_v19 = vld [vmem:[%s7945_s1 + $0x1c4] sm:$0xf]  ;;  %v4384_v33 = vld [vmem:[%s7945_s1 + $0x1c8] sm:$0xf0] }
 0x147   : > { %v6335_v34 = vadd.f32 %v1236_v22, %v957_v18  ;;  %v959_v48 = vadd.f32 %v894_v42, %v6089_v28  ;;  %v4387_v42 = vor.u32 %v5142_v19, %v4384_v33 }
 0x148   : > { %7947 = vst [vmem:[#allocation6_spill] sm:$0xff] %v6333_v20  ;;  %4220 = vmatmul.msk.bf16.vlgmr.msrb.gmra.mxu0 %vm733_vm0, %v5945_v54 }
 0x149   : > { %7948 = vst [vmem:[#allocation7_spill] sm:$0xff] %v6335_v34  ;;  %4234 = vmatmul.msk.bf16.vlgmr.msrb.gmra.mxu1 %vm733_vm0, %v5945_v54  ;;  %v4382_v54 = vld [vmem:[%s7945_s1 + $0x1c0] sm:$0xf] }
 0x14a   : > { %4308 = vmatmul.msk.bf16.vlgmr.msrb.gmra.mxu2 %vm733_vm0, %v5948_v55  ;;  %2082 = vmatpush.bf16.msra.mxu1 %v4387_v42 }
 0x14b   : > { %4322 = vmatmul.msk.bf16.vlgmr.msrb.gmra.mxu3 %vm733_vm0, %v5948_v55  ;;  %v5143_v55 = vld [vmem:[%s7945_s1 + $0x1c4] sm:$0xf0] }
 0x14c   : > { %v4383_v22 = vor.u32 %v5143_v55, %v4382_v54 }
 0x14d   : > { %v1160_v49 = vpop.f32.mrf.mxu2  ;;  %v817_v11 = vpop.f32.mrf.mxu0 }
 0x14e   : > { %v6347_v58 = vadd.f32 %v1160_v49, %v958_v47  ;;  %v1239_v59 = vpop.f32.mrf.mxu3  ;;  %v896_v18 = vpop.f32.mrf.mxu1  ;;  %2003 = vmatpush.bf16.msra.mxu0 %v4383_v22  ;;  %v960_v47 = vadd.f32 %v817_v11, %v6087_v27 }
 0x14f   : > { %v6349_v16 = vadd.f32 %v1239_v59, %v959_v48  ;;  %v961_v48 = vadd.f32 %v896_v18, %v6089_v28 }
 0x150   : > { %7949 = vst [vmem:[#allocation8_spill] sm:$0xff] %v6347_v58 }
 0x151   : > { %7950 = vst [vmem:[#allocation9_spill] sm:$0xff] %v6349_v16 }
 0x155   : > { %v1162_v49 = vpop.f32.mrf.mxu2  ;;  %v820_v58 = vpop.f32.mrf.mxu0 }
 0x156   : > { %v6365_v59 = vadd.f32 %v1162_v49, %v960_v47  ;;  %v1241_v16 = vpop.f32.mrf.mxu3  ;;  %v899_v20 = vpop.f32.mrf.mxu1  ;;  %v962_v11 = vadd.f32 %v820_v58, %v6087_v27 }
 0x157   : > { %v6367_v34 = vadd.f32 %v1241_v16, %v961_v48  ;;  %v963_v18 = vadd.f32 %v899_v20, %v6089_v28 }
 0x158   : > { %4221 = vmatmul.msk.bf16.gmra.mxu0 %vm733_vm0, %v5959_v56 }
 0x159   : > { %4235 = vmatmul.msk.bf16.gmra.mxu1 %vm733_vm0, %v5959_v56 }
 0x15a   : > { %4309 = vmatmul.msk.bf16.gmra.mxu2 %vm733_vm0, %v5962_v57 }
 0x15b   : > { %4323 = vmatmul.msk.bf16.gmra.mxu3 %vm733_vm0, %v5962_v57 }
 0x15d   : > { %v1165_v54 = vpop.f32.mrf.mxu2  ;;  %v822_v19 = vpop.f32.mrf.mxu0 }
 0x15e   : > { %v6379_v16 = vadd.f32 %v1165_v54, %v962_v11  ;;  %v1244_v55 = vpop.f32.mrf.mxu3  ;;  %v901_v33 = vpop.f32.mrf.mxu1  ;;  %v964_v56 = vadd.f32 %v822_v19, %v6087_v27 }
 0x15f   : > { %v6381_v22 = vadd.f32 %v1244_v55, %v963_v18  ;;  %v965_v42 = vadd.f32 %v901_v33, %v6089_v28 }
 0x165   : > { %v1167_v47 = vpop.f32.mrf.mxu2  ;;  %v825_v49 = vpop.f32.mrf.mxu0 }
 0x166   : > { %v6385_v48 = vadd.f32 %v1167_v47, %v964_v56  ;;  %v1246_v57 = vpop.f32.mrf.mxu3  ;;  %v904_v20 = vpop.f32.mrf.mxu1  ;;  %v966_v11 = vadd.f32 %v825_v49, %v6087_v27 }
 0x167   : > { %v6387_v58 = vadd.f32 %v1246_v57, %v965_v42  ;;  %v967_v18 = vadd.f32 %v904_v20, %v6089_v28 }
 0x168   : > { %7951 = vst [vmem:[#allocation10_spill] sm:$0xff] %v6385_v48  ;;  %4222 = vmatmul.msk.bf16.gmra.mxu0 %vm733_vm0, %v5985_v0 }
 0x169   : > { %7952 = vst [vmem:[#allocation11_spill] sm:$0xff] %v6387_v58  ;;  %4236 = vmatmul.msk.bf16.gmra.mxu1 %vm733_vm0, %v5985_v0 }
 0x16a   : > { %4310 = vmatmul.msk.bf16.gmra.mxu2 %vm733_vm0, %v5988_v1 }
 0x16b   : > { %4324 = vmatmul.msk.bf16.gmra.mxu3 %vm733_vm0, %v5988_v1 }
 0x16d   : > { %v1170_v54 = vpop.f32.mrf.mxu2  ;;  %v827_v33 = vpop.f32.mrf.mxu0 }
 0x16e   : > { %v6399_v55 = vadd.f32 %v1170_v54, %v966_v11  ;;  %v1249_v19 = vpop.f32.mrf.mxu3  ;;  %v906_v42 = vpop.f32.mrf.mxu1  ;;  %v968_v0 = vadd.f32 %v827_v33, %v6087_v27  ;;  %v4374_v11 = vld [vmem:[%s7945_s1 + $0x1b0] sm:$0xf]  ;;  %v5140_v54 = vld [vmem:[%s7945_s1 + $0x1b4] sm:$0xf]  ;;  %v4376_v33 = vld [vmem:[%s7945_s1 + $0x1b8] sm:$0xf0] }
 0x16f   : > { %v6401_v56 = vadd.f32 %v1249_v19, %v967_v18  ;;  %v969_v47 = vadd.f32 %v906_v42, %v6089_v28  ;;  %v5141_v18 = vld [vmem:[%s7945_s1 + $0x1b4] sm:$0xf0]  ;;  %v4379_v42 = vor.u32 %v5140_v54, %v4376_v33 }
 0x170   : > { %v4375_v19 = vor.u32 %v5141_v18, %v4374_v11 }
 0x171   : > { %2083 = vmatpush.bf16.msra.mxu1 %v4379_v42 }
 0x172   : > { %2004 = vmatpush.bf16.msra.mxu0 %v4375_v19 }
 0x175   : > { %v1172_v57 = vpop.f32.mrf.mxu2  ;;  %v830_v48 = vpop.f32.mrf.mxu0 }
 0x176   : > { %v6405_v58 = vadd.f32 %v1172_v57, %v968_v0  ;;  %v1251_v1 = vpop.f32.mrf.mxu3  ;;  %v909_v20 = vpop.f32.mrf.mxu1  ;;  %v970_v0 = vadd.f32 %v830_v48, %v6087_v27 }
 0x177   : > { %v6407_v49 = vadd.f32 %v1251_v1, %v969_v47  ;;  %v971_v47 = vadd.f32 %v909_v20, %v6089_v28 }
 0x178   : > { %7953 = vst [vmem:[#allocation12_spill] sm:$0xff] %v6405_v58  ;;  %4223 = vmatmul.msk.bf16.gmra.mxu0 %vm733_vm0, %v5999_v2 }
 0x179   : > { %7954 = vst [vmem:[#allocation13_spill] sm:$0xff] %v6407_v49  ;;  %4237 = vmatmul.msk.bf16.gmra.mxu1 %vm733_vm0, %v5999_v2 }
 0x17a   : > { %4311 = vmatmul.msk.bf16.gmra.mxu2 %vm733_vm0, %v6002_v3 }
 0x17b   : > { %4325 = vmatmul.msk.bf16.gmra.mxu3 %vm733_vm0, %v6002_v3 }
 0x17d   : > { %v1175_v57 = vpop.f32.mrf.mxu2  ;;  %v832_v18 = vpop.f32.mrf.mxu0 }
 0x17e   : > { %v6431_v1 = vadd.f32 %v1175_v57, %v970_v0  ;;  %v1254_v11 = vpop.f32.mrf.mxu3  ;;  %v911_v2 = vpop.f32.mrf.mxu1  ;;  %v972_v33 = vadd.f32 %v832_v18, %v6087_v27 }
 0x17f   : > { %v6433_v54 = vadd.f32 %v1254_v11, %v971_v47  ;;  %v973_v49 = vadd.f32 %v911_v2, %v6089_v28 }
 0x181   : > { %7955 = vst [vmem:[#allocation14_spill] sm:$0xff] %v6433_v54 }
 0x185   : > { %v1177_v58 = vpop.f32.mrf.mxu2  ;;  %v835_v48 = vpop.f32.mrf.mxu0 }
 0x186   : > { %v6437_v3 = vadd.f32 %v1177_v58, %v972_v33  ;;  %v1256_v19 = vpop.f32.mrf.mxu3  ;;  %v914_v20 = vpop.f32.mrf.mxu1  ;;  %v974_v58 = vadd.f32 %v835_v48, %v6087_v27 }
 0x187   : > { %v6439_v42 = vadd.f32 %v1256_v19, %v973_v49  ;;  %v975_v0 = vadd.f32 %v914_v20, %v6089_v28 }
 0x188   : > { %7956 = vst [vmem:[#allocation15_spill] sm:$0xff] %v6437_v3  ;;  %4224 = vmatmul.msk.bf16.gmra.mxu0 %vm733_vm0, %v6013_v4 }
 0x189   : > { %7957 = vst [vmem:[#allocation16_spill] sm:$0xff] %v6439_v42  ;;  %4238 = vmatmul.msk.bf16.gmra.mxu1 %vm733_vm0, %v6013_v4 }
 0x18a   : > { %4312 = vmatmul.msk.bf16.gmra.mxu2 %vm733_vm0, %v6016_v5 }
 0x18b   : > { %4326 = vmatmul.msk.bf16.gmra.mxu3 %vm733_vm0, %v6016_v5 }
 0x18d   : > { %v1180_v47 = vpop.f32.mrf.mxu2  ;;  %v837_v11 = vpop.f32.mrf.mxu0 }
 0x18e   : > { %v6451_v49 = vadd.f32 %v1180_v47, %v974_v58  ;;  %v1259_v57 = vpop.f32.mrf.mxu3  ;;  %v916_v2 = vpop.f32.mrf.mxu1  ;;  %v976_v4 = vadd.f32 %v837_v11, %v6087_v27  ;;  %v4366_v58 = vld [vmem:[%s7945_s1 + $0x1a0] sm:$0xf]  ;;  %v5138_v47 = vld [vmem:[%s7945_s1 + $0x1a4] sm:$0xf]  ;;  %v4368_v11 = vld [vmem:[%s7945_s1 + $0x1a8] sm:$0xf0] }
 0x18f   : > { %v6453_v18 = vadd.f32 %v1259_v57, %v975_v0  ;;  %v977_v33 = vadd.f32 %v916_v2, %v6089_v28  ;;  %v5139_v0 = vld [vmem:[%s7945_s1 + $0x1a4] sm:$0xf0] }
 0x190   : > { %7958 = vst [vmem:[#allocation17_spill] sm:$0xff] %v6451_v49  ;;  %v4367_v57 = vor.u32 %v5139_v0, %v4366_v58 }
 0x191   : > { %7959 = vst [vmem:[#allocation18_spill] sm:$0xff] %v6453_v18 }
 0x192   : > { %2005 = vmatpush.bf16.msra.mxu0 %v4367_v57 }
 0x195   : > { %v1182_v19 = vpop.f32.mrf.mxu2  ;;  %v840_v3 = vpop.f32.mrf.mxu0 }
 0x196   : > { %v6457_v42 = vadd.f32 %v1182_v19, %v976_v4  ;;  %v1261_v5 = vpop.f32.mrf.mxu3  ;;  %v919_v20 = vpop.f32.mrf.mxu1  ;;  %v4371_v4 = vor.u32 %v5138_v47, %v4368_v11 }
 0x197   : > { %v6459_v48 = vadd.f32 %v1261_v5, %v977_v33 }
 0x198   : > { %7960 = vst [vmem:[#allocation19_spill] sm:$0xff] %v6457_v42  ;;  %4225 = vmatmul.msk.bf16.gmra.mxu0 %vm733_vm0, %v6039_v12  ;;  %2084 = vmatpush.bf16.msra.mxu1 %v4371_v4 }
 0x199   : > { %7961 = vst [vmem:[#allocation20_spill] sm:$0xff] %v6459_v48  ;;  %4239 = vmatmul.msk.bf16.gmra.mxu1 %vm733_vm0, %v6039_v12  ;;  %v978_v12 = vadd.f32 %v840_v3, %v6087_v27 }
 0x19a   : > { %4313 = vmatmul.msk.bf16.gmra.mxu2 %vm733_vm0, %v6042_v13 }
 0x19b   : > { %4327 = vmatmul.msk.bf16.gmra.mxu3 %vm733_vm0, %v6042_v13  ;;  %v979_v13 = vadd.f32 %v919_v20, %v6089_v28 }
 0x19d   : > { %v1185_v2 = vpop.f32.mrf.mxu2  ;;  %v842_v5 = vpop.f32.mrf.mxu0 }
 0x19e   : > { %v6483_v33 = vadd.f32 %v1185_v2, %v978_v12  ;;  %v1264_v19 = vpop.f32.mrf.mxu3  ;;  %v921_v42 = vpop.f32.mrf.mxu1  ;;  %v980_v3 = vadd.f32 %v842_v5, %v6087_v27 }
 0x19f   : > { %v6485_v48 = vadd.f32 %v1264_v19, %v979_v13  ;;  %v981_v58 = vadd.f32 %v921_v42, %v6089_v28 }
 0x1a5   : > { %v1187_v0 = vpop.f32.mrf.mxu2  ;;  %v845_v20 = vpop.f32.mrf.mxu0 }
 0x1a6   : > { %v6489_v18 = vadd.f32 %v1187_v0, %v980_v3  ;;  %v1266_v49 = vpop.f32.mrf.mxu3  ;;  %v924_v47 = vpop.f32.mrf.mxu1  ;;  %v982_v42 = vadd.f32 %v845_v20, %v6087_v27 }
 0x1a7   : > { %v6491_v54 = vadd.f32 %v1266_v49, %v981_v58  ;;  %v983_v12 = vadd.f32 %v924_v47, %v6089_v28 }
 0x1a8   : > { %4226 = vmatmul.msk.bf16.gmra.mxu0 %vm733_vm0, %v6053_v14 }
 0x1a9   : > { %4240 = vmatmul.msk.bf16.gmra.mxu1 %vm733_vm0, %v6053_v14 }
 0x1aa   : > { %4314 = vmatmul.msk.bf16.gmra.mxu2 %vm733_vm0, %v6056_v15 }
 0x1ab   : > { %4328 = vmatmul.msk.bf16.gmra.mxu3 %vm733_vm0, %v6056_v15 }
 0x1ad   : > { %v1190_v57 = vpop.f32.mrf.mxu2  ;;  %v847_v13 = vpop.f32.mrf.mxu0 }
 0x1ae   : > { %v6503_v49 = vadd.f32 %v1190_v57, %v982_v42  ;;  %v1269_v11 = vpop.f32.mrf.mxu3  ;;  %v926_v4 = vpop.f32.mrf.mxu1  ;;  %v984_v14 = vadd.f32 %v847_v13, %v6087_v27 }
 0x1af   : > { %v6505_v2 = vadd.f32 %v1269_v11, %v983_v12  ;;  %v985_v19 = vadd.f32 %v926_v4, %v6089_v28 }
 0x1b5   : > { %v1192_v5 = vpop.f32.mrf.mxu2  ;;  %v850_v58 = vpop.f32.mrf.mxu0 }
 0x1b6   : > { %v6509_v3 = vadd.f32 %v1192_v5, %v984_v14  ;;  %v1271_v15 = vpop.f32.mrf.mxu3  ;;  %v929_v20 = vpop.f32.mrf.mxu1  ;;  %v986_v47 = vadd.f32 %v850_v58, %v6087_v27 }
 0x1b7   : > { %v6511_v0 = vadd.f32 %v1271_v15, %v985_v19  ;;  %v987_v42 = vadd.f32 %v929_v20, %v6089_v28  ;;  %v5136_v19 = vld [vmem:[%s7945_s1 + $0x194] sm:$0xf]  ;;  %v4360_v15 = vld [vmem:[%s7945_s1 + $0x198] sm:$0xf0] }
 0x1b8   : > { %4227 = vmatmul.msk.bf16.gmra.mxu0 %vm733_vm0, %v6082_v24  ;;  %v4363_v58 = vor.u32 %v5136_v19, %v4360_v15 }
 0x1b9   : > { %7962 = vst [vmem:[#allocation21_spill] sm:$0xff] %v6511_v0  ;;  %4241 = vmatmul.msk.bf16.gmra.mxu1 %vm733_vm0, %v6082_v24  ;;  %v4358_v24 = vld [vmem:[%s7945_s1 + $0x190] sm:$0xf] }
 0x1ba   : > { %4315 = vmatmul.msk.bf16.gmra.mxu2 %vm733_vm0, %v6085_v25  ;;  %2085 = vmatpush.bf16.msra.mxu1 %v4363_v58 }
 0x1bb   : > { %4329 = vmatmul.msk.bf16.gmra.mxu3 %vm733_vm0, %v6085_v25  ;;  %v5137_v25 = vld [vmem:[%s7945_s1 + $0x194] sm:$0xf0] }
 0x1bc   : > { %v4359_v5 = vor.u32 %v5137_v25, %v4358_v24 }
 0x1bd   : > { %v1195_v12 = vpop.f32.mrf.mxu2  ;;  %v852_v13 = vpop.f32.mrf.mxu0 }
 0x1be   : > { %v6523_v57 = vadd.f32 %v1195_v12, %v986_v47  ;;  %v1274_v11 = vpop.f32.mrf.mxu3  ;;  %v931_v14 = vpop.f32.mrf.mxu1  ;;  %2006 = vmatpush.bf16.msra.mxu0 %v4359_v5  ;;  %v988_v20 = vadd.f32 %v852_v13, %v6087_v27 }
 0x1bf   : > { %v6525_v4 = vadd.f32 %v1274_v11, %v987_v42  ;;  %v989_v47 = vadd.f32 %v931_v14, %v6089_v28 }
 0x1c0   : > { %7963 = vst [vmem:[#allocation22_spill] sm:$0xff] %v6523_v57 }
 0x1c1   : > { %7964 = vst [vmem:[#allocation23_spill] sm:$0xff] %v6525_v4 }
 0x1c5   : > { %v1197_v42 = vpop.f32.mrf.mxu2  ;;  %v1423_v4 = vpop.f32.mrf.mxu0 }
 0x1c6   : > { %v6541_v12 = vadd.f32 %v1197_v42, %v988_v20  ;;  %v1276_v11 = vpop.f32.mrf.mxu3  ;;  %v1572_v24 = vadd.f32 %v1423_v4, %v6101_v32  ;;  %v1502_v25 = vpop.f32.mrf.mxu1 }
 0x1c7   : > { %v6543_v57 = vadd.f32 %v1276_v11, %v989_v47  ;;  %v1573_v0 = vadd.f32 %v1502_v25, %v6103_v35 }
 0x1c8   : > { %4228 = vmatmul.msk.bf16.gmra.mxu0 %vm733_vm0, %v6110_v43 }
 0x1c9   : > { %4242 = vmatmul.msk.bf16.gmra.mxu1 %vm733_vm0, %v6110_v43 }
 0x1ca   : > { %4316 = vmatmul.msk.bf16.gmra.mxu2 %vm733_vm0, %v6113_v44 }
 0x1cb   : > { %4330 = vmatmul.msk.bf16.gmra.mxu3 %vm733_vm0, %v6113_v44 }
 0x1cd   : > { %v1716_v27 = vpop.f32.mrf.mxu2  ;;  %v1425_v32 = vpop.f32.mrf.mxu0 }
 0x1ce   : > { %v6555_v28 = vadd.f32 %v1716_v27, %v1572_v24  ;;  %v1795_v13 = vpop.f32.mrf.mxu3  ;;  %v1574_v35 = vadd.f32 %v1425_v32, %v6107_v40  ;;  %v1504_v14 = vpop.f32.mrf.mxu1 }
 0x1cf   : > { %v6557_v4 = vadd.f32 %v1795_v13, %v1573_v0  ;;  %v1575_v19 = vadd.f32 %v1504_v14, %v6115_v45 }
 0x1d5   : > { %v1718_v5 = vpop.f32.mrf.mxu2  ;;  %v1428_v58 = vpop.f32.mrf.mxu0 }
 0x1d6   : > { %v6561_v43 = vadd.f32 %v1718_v5, %v1574_v35  ;;  %v1797_v15 = vpop.f32.mrf.mxu3  ;;  %v1576_v44 = vadd.f32 %v1428_v58, %v6127_v50  ;;  %v1507_v47 = vpop.f32.mrf.mxu1 }
 0x1d7   : > { %v6563_v20 = vadd.f32 %v1797_v15, %v1575_v19  ;;  %v1577_v42 = vadd.f32 %v1507_v47, %v6129_v53  ;;  %v4350_v19 = vld [vmem:[%s7945_s1 + $0x180] sm:$0xf] }
 0x1d8   : > { %4229 = vmatmul.msk.bf16.gmra.mxu0 %vm733_vm0, %v6136_v7 }
 0x1d9   : > { %4243 = vmatmul.msk.bf16.gmra.mxu1 %vm733_vm0, %v6136_v7 }
 0x1da   : > { %4317 = vmatmul.msk.bf16.gmra.mxu2 %vm733_vm0, %v6139_v8 }
 0x1db   : > { %4331 = vmatmul.msk.bf16.gmra.mxu3 %vm733_vm0, %v6139_v8 }
 0x1dd   : > { %v1721_v40 = vpop.f32.mrf.mxu2  ;;  %v1430_v50 = vpop.f32.mrf.mxu0 }
 0x1de   : > { %v6575_v45 = vadd.f32 %v1721_v40, %v1576_v44  ;;  %v1800_v0 = vpop.f32.mrf.mxu3  ;;  %v1578_v53 = vadd.f32 %v1430_v50, %v6133_v62  ;;  %v1509_v24 = vpop.f32.mrf.mxu1  ;;  %v5135_v62 = vld [vmem:[%s7945_s1 + $0x184] sm:$0xf0] }
 0x1df   : > { %v6577_v11 = vadd.f32 %v1800_v0, %v1577_v42  ;;  %v1579_v25 = vadd.f32 %v1509_v24, %v6141_v9  ;;  %v5134_v9 = vld [vmem:[%s7945_s1 + $0x184] sm:$0xf]  ;;  %v4351_v15 = vor.u32 %v5135_v62, %v4350_v19 }
 0x1e1   : > { %2007 = vmatpush.bf16.msra.mxu0 %v4351_v15  ;;  %v5161_v15 = vld [vmem:[%s7929_s3 + $0x74] sm:$0xf0] }
 0x1e5   : > { %v1723_v27 = vpop.f32.mrf.mxu2  ;;  %v1433_v32 = vpop.f32.mrf.mxu0 }
 0x1e6   : > { %v6581_v7 = vadd.f32 %v1723_v27, %v1578_v53  ;;  %v1802_v13 = vpop.f32.mrf.mxu3  ;;  %v6586_v8 = vadd.f32 %v1433_v32, %v6165_v26  ;;  %v1512_v14 = vpop.f32.mrf.mxu1  ;;  %v4352_v26 = vld [vmem:[%s7945_s1 + $0x188] sm:$0xf0]  ;;  %s3908_s1 = scalar_lea.sflag [#allocation4], %s5906_s13 }
 0x1e7   : > { %v6583_v35 = vadd.f32 %v1802_v13, %v1579_v25  ;;  %v6598_v5 = vadd.f32 %v1512_v14, %v6167_v31  ;;  %v4355_v58 = vor.u32 %v5134_v9, %v4352_v26 }
 0x1e8   : > { %4230 = vmatmul.msk.bf16.gmra.mxu0 %vm733_vm0, %v6195_v60 }
 0x1e9   : > { %4244 = vmatmul.msk.bf16.gmra.mxu1 %vm733_vm0, %v6195_v60 }
 0x1ea   : > { %4318 = vmatmul.msk.bf16.gmra.mxu2 %vm733_vm0, %v6198_v61  ;;  %2086 = vmatpush.bf16.msra.mxu1 %v4355_v58 }
 0x1eb   : > { %4332 = vmatmul.msk.bf16.gmra.mxu3 %vm733_vm0, %v6198_v61 }
 0x1ed   : > { %v6611_v31 = vpop.f32.mrf.mxu2  ;;  %v1435_v47 = vpop.f32.mrf.mxu0 }
 0x1ee   : > { %v6613_v44 = vpop.f32.mrf.mxu3  ;;  %v6616_v42 = vadd.f32 %v1435_v47, %v6192_v52  ;;  %v1514_v40 = vpop.f32.mrf.mxu1 }
 0x1ef   : > { %v6619_v0 = vadd.f32 %v1514_v40, %v6203_v10 }
 0x1f5   : > { %v6621_v60 = vpop.f32.mrf.mxu2  ;;  %v1438_v53 = vpop.f32.mrf.mxu0 }
 0x1f6   : > { %v6623_v50 = vpop.f32.mrf.mxu3  ;;  %v6626_v61 = vadd.f32 %v1438_v53, %v6236_v37  ;;  %v1517_v24 = vpop.f32.mrf.mxu1 }
 0x1f7   : > { %v6629_v25 = vadd.f32 %v1517_v24, %v6241_v46 }
 0x1f8   : > { %4231 = vmatmul.msk.bf16.gmra.mxu0 %vm733_vm0, %v6269_v29 }
 0x1f9   : > { %4245 = vmatmul.msk.bf16.gmra.mxu1 %vm733_vm0, %v6269_v29 }
 0x1fa   : > { %4319 = vmatmul.msk.bf16.gmra.mxu2 %vm733_vm0, %v6272_v30 }
 0x1fb   : > { %4333 = vmatmul.msk.bf16.gmra.mxu3 %vm733_vm0, %v6272_v30 }
 0x1fd   : > { %v6639_v52 = vpop.f32.mrf.mxu2  ;;  %v1440_v37 = vpop.f32.mrf.mxu0 }
 0x1fe   : > { %v6641_v10 = vpop.f32.mrf.mxu3  ;;  %v6644_v46 = vadd.f32 %v1440_v37, %v6266_v21  ;;  %v1519_v27 = vpop.f32.mrf.mxu1  ;;  %v6694_v37 = vld [vmem:[%s5924_s14 + $0x70] sm:$0xff]  }
 0x1ff   : > { %v6647_v13 = vadd.f32 %v1519_v27, %v6277_v36  ;;  %v5461_v27 = vld [vmem:[%s5924_s14 + $0x74] sm:$0xff]  }
 0x205   : > { %v6649_v32 = vpop.f32.mrf.mxu2  ;;  %v1443_v14 = vpop.f32.mrf.mxu0 }
 0x206   : > { %v6651_v29 = vpop.f32.mrf.mxu3  ;;  %v6654_v19 = vadd.f32 %v1443_v14, %v6301_v6  ;;  %v1522_v30 = vpop.f32.mrf.mxu1 }
 0x207   : > { %v6657_v62 = vadd.f32 %v1522_v30, %v6303_v17 }
 0x208   : > { %4232 = vmatmul.msk.bf16.gmra.mxu0 %vm733_vm0, %v6310_v38 }
 0x209   : > { %4246 = vmatmul.msk.bf16.gmra.mxu1 %vm733_vm0, %v6310_v38  ;;  %v4482_v38 = vld [vmem:[%s7929_s3 + $0x70] sm:$0xf] }
 0x20a   : > { %4320 = vmatmul.msk.bf16.gmra.mxu2 %vm733_vm0, %v6313_v39  ;;  %v4483_v58 = vor.u32 %v5161_v15, %v4482_v38  ;;  %v7969_v38 = vld [vmem:[#allocation6_spill] sm:$0xff] }
 0x20b   : > { %4334 = vmatmul.msk.bf16.gmra.mxu3 %vm733_vm0, %v6313_v39  ;;  %v5160_v39 = vld [vmem:[%s7929_s3 + $0x74] sm:$0xf] }
 0x20c   : > { %2458 = vmatpush.bf16.msra.mxu2 %v4483_v58 }
 0x20d   : > { %v6667_v21 = vpop.f32.mrf.mxu2  ;;  %v1445_v6 = vpop.f32.mrf.mxu0 }
 0x20e   : > { %v6669_v36 = vpop.f32.mrf.mxu3  ;;  %v6672_v17 = vadd.f32 %v1445_v6, %v6307_v23  ;;  %v1524_v9 = vpop.f32.mrf.mxu1  ;;  %v4484_v23 = vld [vmem:[%s7929_s3 + $0x78] sm:$0xf0] }
 0x20f   : > { %v6684_v26 = vadd.f32 %v1524_v9, %v6315_v41  ;;  %v4487_v47 = vor.u32 %v5160_v39, %v4484_v23  ;;  %v7970_v39 = vld [vmem:[#allocation7_spill] sm:$0xff] }
 0x211   : > { %2492 = vmatpush.bf16.msra.mxu3 %v4487_v47 }
 0x215   : > { %v6689_v40 = vpop.f32.mrf.mxu2  ;;  %v1448_v24 = vpop.f32.mrf.mxu0 }
 0x216   : > { %v6691_v53 = vpop.f32.mrf.mxu3  ;;  %v6698_v14 = vadd.f32 %v1448_v24, %v6327_v51  ;;  %v1527_v41 = vpop.f32.mrf.mxu1 }
 0x217   : > { %v6701_v30 = vadd.f32 %v1527_v41, %v6329_v63  ;;  %v7973_v41 = vld [vmem:[#allocation8_spill] sm:$0xff] }
 0x218   : > { %7965 = vst [vmem:[#allocation24_spill] sm:$0xff] %v6698_v14  ;;  %4233 = vmatmul.msk.bf16.gmra.mxu0 %vm733_vm0, %v6694_v37 }
 0x219   : > { %7966 = vst [vmem:[#allocation25_spill] sm:$0xff] %v6701_v30  ;;  %4247 = vmatmul.msk.bf16.gmra.mxu1 %vm733_vm0, %v6694_v37 }
 0x21a   : > { %4321 = vmatmul.msk.bf16.gmra.mxu2 %vm733_vm0, %v5461_v27 }
 0x21b   : > { %4335 = vmatmul.msk.bf16.gmra.mxu3 %vm733_vm0, %v5461_v27 }
 0x21d   : > { %v6709_v6 = vpop.f32.mrf.mxu2  ;;  %v1450_v51 = vpop.f32.mrf.mxu0 }
 0x21e   : > { %7967 = vst [vmem:[#allocation26_spill] sm:$0xff] %v6709_v6  ;;  %v6711_v9 = vpop.f32.mrf.mxu3  ;;  %v6714_v15 = vadd.f32 %v1450_v51, %v7969_v38  ;;  %v1529_v63 = vpop.f32.mrf.mxu1  ;;  %v7975_v6 = vld [vmem:[#allocation9_spill] sm:$0xff]  ;;  %v4474_v51 = vld [vmem:[%s7929_s3 + $0x60] sm:$0xf] }
 0x21f   : > { %7968 = vst [vmem:[#allocation27_spill] sm:$0xff] %v6711_v9  ;;  %v6717_v58 = vadd.f32 %v1529_v63, %v7970_v39  ;;  %v5504_v9 = vld [vmem:[%s5924_s14 + $0x10] sm:$0xff]   ;;  %v5159_v38 = vld [vmem:[%s7929_s3 + $0x64] sm:$0xf0]  ;;  %v5158_v63 = vld [vmem:[%s7929_s3 + $0x64] sm:$0xf] }
 0x220   : > { %v4475_v39 = vor.u32 %v5159_v38, %v4474_v51 }
 0x221   : > { %7971 = vst [vmem:[#allocation6_spill] sm:$0xff] %v6717_v58 }
 0x222   : > { %2459 = vmatpush.bf16.msra.mxu2 %v4475_v39 }
 0x225   : > { %v6719_v23 = vpop.f32.mrf.mxu2  ;;  %v1453_v24 = vpop.f32.mrf.mxu0 }
 0x226   : > { %v6721_v47 = vpop.f32.mrf.mxu3  ;;  %v6724_v30 = vadd.f32 %v1453_v24, %v7973_v41  ;;  %v1532_v27 = vpop.f32.mrf.mxu1 }
 0x227   : > { %7972 = vst [vmem:[#allocation7_spill] sm:$0xff] %v6721_v47  ;;  %v6727_v14 = vadd.f32 %v1532_v27, %v7975_v6  ;;  %v4476_v6 = vld [vmem:[%s7929_s3 + $0x68] sm:$0xf0] }
 0x228   : > { %7974 = vst [vmem:[#allocation8_spill] sm:$0xff] %v6724_v30  ;;  %4396 = vmatmul.msk.bf16.vlgmr.msra.gmra.mxu0 %vm733_vm0, %v5504_v9  ;;  %v4479_v24 = vor.u32 %v5158_v63, %v4476_v6 }
 0x229   : > { %7976 = vst [vmem:[#allocation9_spill] sm:$0xff] %v6727_v14  ;;  %4410 = vmatmul.msk.bf16.vlgmr.msra.gmra.mxu1 %vm733_vm0, %v5504_v9 }
 0x22a   : > { %2493 = vmatpush.bf16.msra.mxu3 %v4479_v24  ;;  %v5505_v24 = vld [vmem:[%s5924_s14 + $0x18] sm:$0xff]  }
 0x22d   : > { %v6744_v9 = vpop.f32.mrf.mxu2  ;;  %v1455_v27 = vpop.f32.mrf.mxu0 }
 0x22e   : > { %v6746_v41 = vpop.f32.mrf.mxu3  ;;  %v6749_v14 = vadd.f32 %v1455_v27, %v6365_v59  ;;  %v1534_v30 = vpop.f32.mrf.mxu1  ;;  %v7982_v27 = vld [vmem:[#allocation10_spill] sm:$0xff] }
 0x22f   : > { %v6752_v47 = vadd.f32 %v1534_v30, %v6367_v34 }
 0x235   : > { %v6754_v51 = vpop.f32.mrf.mxu2  ;;  %v1458_v58 = vpop.f32.mrf.mxu0 }
 0x236   : > { %v6756_v38 = vpop.f32.mrf.mxu3  ;;  %v6759_v63 = vadd.f32 %v1458_v58, %v6379_v16  ;;  %v1537_v39 = vpop.f32.mrf.mxu1  ;;  %v7984_v58 = vld [vmem:[#allocation11_spill] sm:$0xff] }
 0x237   : > { %7977 = vst [vmem:[#allocation28_spill] sm:$0xff] %v6756_v38  ;;  %v6762_v6 = vadd.f32 %v1537_v39, %v6381_v22 }
 0x238   : > { %7978 = vst [vmem:[#allocation29_spill] sm:$0xff] %v6759_v63  ;;  %4397 = vmatmul.msk.bf16.gmra.mxu0 %vm733_vm0, %v5505_v24 }
 0x239   : > { %7979 = vst [vmem:[#allocation30_spill] sm:$0xff] %v6762_v6  ;;  %4411 = vmatmul.msk.bf16.gmra.mxu1 %vm733_vm0, %v5505_v24 }
 0x23d   : > { %v6767_v59 = vpop.f32.mrf.mxu2  ;;  %v1460_v30 = vpop.f32.mrf.mxu0 }
 0x23e   : > { %7980 = vst [vmem:[#allocation31_spill] sm:$0xff] %v6767_v59  ;;  %v6769_v34 = vpop.f32.mrf.mxu3  ;;  %v6772_v38 = vadd.f32 %v1460_v30, %v7982_v27  ;;  %v1539_v16 = vpop.f32.mrf.mxu1  ;;  %v5157_v30 = vld [vmem:[%s7929_s3 + $0x54] sm:$0xf0]  ;;  %v5156_v27 = vld [vmem:[%s7929_s3 + $0x54] sm:$0xf] }
 0x23f   : > { %7981 = vst [vmem:[#allocation32_spill] sm:$0xff] %v6769_v34  ;;  %v6775_v63 = vadd.f32 %v1539_v16, %v7984_v58  ;;  %v4466_v34 = vld [vmem:[%s7929_s3 + $0x50] sm:$0xf] }
 0x240   : > { %7983 = vst [vmem:[#allocation10_spill] sm:$0xff] %v6772_v38  ;;  %v4467_v58 = vor.u32 %v5157_v30, %v4466_v34 }
 0x241   : > { %7985 = vst [vmem:[#allocation11_spill] sm:$0xff] %v6775_v63 }
 0x242   : > { %2460 = vmatpush.bf16.msra.mxu2 %v4467_v58 }
 0x245   : > { %v6777_v22 = vpop.f32.mrf.mxu2  ;;  %v1463_v6 = vpop.f32.mrf.mxu0 }
 0x246   : > { %7986 = vst [vmem:[#allocation33_spill] sm:$0xff] %v6777_v22  ;;  %v6779_v39 = vpop.f32.mrf.mxu3  ;;  %v6782_v24 = vadd.f32 %v1463_v6, %v6399_v55  ;;  %v1542_v59 = vpop.f32.mrf.mxu1  ;;  %v4468_v55 = vld [vmem:[%s7929_s3 + $0x58] sm:$0xf0]  ;;  %v5506_v6 = vld [vmem:[%s5924_s14 + $0x20] sm:$0xff]  }
 0x247   : > { %7987 = vst [vmem:[#allocation34_spill] sm:$0xff] %v6779_v39  ;;  %v6794_v16 = vadd.f32 %v1542_v59, %v6401_v56  ;;  %v7992_v59 = vld [vmem:[#allocation12_spill] sm:$0xff] }
 0x248   : > { %7988 = vst [vmem:[#allocation35_spill] sm:$0xff] %v6782_v24  ;;  %4398 = vmatmul.msk.bf16.gmra.mxu0 %vm733_vm0, %v5506_v6  ;;  %v4471_v24 = vor.u32 %v5156_v27, %v4468_v55 }
 0x249   : > { %7989 = vst [vmem:[#allocation36_spill] sm:$0xff] %v6794_v16  ;;  %4412 = vmatmul.msk.bf16.gmra.mxu1 %vm733_vm0, %v5506_v6  ;;  %v7993_v16 = vld [vmem:[#allocation13_spill] sm:$0xff]  ;;  %v7998_v6 = vld [vmem:[#allocation14_spill] sm:$0xff] }
 0x24a   : > { %2494 = vmatpush.bf16.msra.mxu3 %v4471_v24 }
 0x24d   : > { %v6802_v39 = vpop.f32.mrf.mxu2  ;;  %v1465_v56 = vpop.f32.mrf.mxu0 }
 0x24e   : > { %7990 = vst [vmem:[#allocation37_spill] sm:$0xff] %v6802_v39  ;;  %v6804_v63 = vpop.f32.mrf.mxu3  ;;  %v6807_v34 = vadd.f32 %v1465_v56, %v7992_v59  ;;  %v1544_v30 = vpop.f32.mrf.mxu1 }
 0x24f   : > { %7991 = vst [vmem:[#allocation38_spill] sm:$0xff] %v6804_v63  ;;  %v6810_v22 = vadd.f32 %v1544_v30, %v7993_v16  ;;  %v5507_v63 = vld [vmem:[%s5924_s14 + $0x28] sm:$0xff]   ;;  %v8002_v30 = vld [vmem:[#allocation15_spill] sm:$0xff] }
 0x251   : > { %7994 = vst [vmem:[#allocation12_spill] sm:$0xff] %v6810_v22 }
 0x255   : > { %v6812_v38 = vpop.f32.mrf.mxu2  ;;  %v1468_v55 = vpop.f32.mrf.mxu0 }
 0x256   : > { %7995 = vst [vmem:[#allocation13_spill] sm:$0xff] %v6812_v38  ;;  %v6814_v27 = vpop.f32.mrf.mxu3  ;;  %v6817_v58 = vadd.f32 %v1468_v55, %v6431_v1  ;;  %v1547_v24 = vpop.f32.mrf.mxu1  ;;  %v8004_v1 = vld [vmem:[#allocation16_spill] sm:$0xff] }
 0x257   : > { %7996 = vst [vmem:[#allocation39_spill] sm:$0xff] %v6814_v27  ;;  %v6820_v39 = vadd.f32 %v1547_v24, %v7998_v6  ;;  %v4458_v24 = vld [vmem:[%s7929_s3 + $0x40] sm:$0xf]  ;;  %v5154_v6 = vld [vmem:[%s7929_s3 + $0x44] sm:$0xf] }
 0x258   : > { %7997 = vst [vmem:[#allocation40_spill] sm:$0xff] %v6817_v58  ;;  %4399 = vmatmul.msk.bf16.gmra.mxu0 %vm733_vm0, %v5507_v63  ;;  %v8009_v58 = vld [vmem:[#allocation18_spill] sm:$0xff] }
 0x259   : > { %7999 = vst [vmem:[#allocation14_spill] sm:$0xff] %v6820_v39  ;;  %4413 = vmatmul.msk.bf16.gmra.mxu1 %vm733_vm0, %v5507_v63  ;;  %v5155_v63 = vld [vmem:[%s7929_s3 + $0x44] sm:$0xf0] }
 0x25d   : > { %v6825_v56 = vpop.f32.mrf.mxu2  ;;  %v1470_v59 = vpop.f32.mrf.mxu0 }
 0x25e   : > { %8000 = vst [vmem:[#allocation41_spill] sm:$0xff] %v6825_v56  ;;  %v6827_v16 = vpop.f32.mrf.mxu3  ;;  %v6830_v27 = vadd.f32 %v1470_v59, %v8002_v30  ;;  %v1549_v22 = vpop.f32.mrf.mxu1  ;;  %v4460_v59 = vld [vmem:[%s7929_s3 + $0x48] sm:$0xf0] }
 0x25f   : > { %8001 = vst [vmem:[#allocation42_spill] sm:$0xff] %v6827_v16  ;;  %v6833_v55 = vadd.f32 %v1549_v22, %v8004_v1  ;;  %v4459_v16 = vor.u32 %v5155_v63, %v4458_v24  ;;  %v4463_v30 = vor.u32 %v5154_v6, %v4460_v59  ;;  %v5508_v24 = vld [vmem:[%s5924_s14 + $0x30] sm:$0xff]   ;;  %v8013_v59 = vld [vmem:[#allocation19_spill] sm:$0xff] }
 0x260   : > { %8003 = vst [vmem:[#allocation15_spill] sm:$0xff] %v6830_v27  ;;  %v8007_v27 = vld [vmem:[#allocation17_spill] sm:$0xff] }
 0x261   : > { %8005 = vst [vmem:[#allocation16_spill] sm:$0xff] %v6833_v55  ;;  %2461 = vmatpush.bf16.msra.mxu2 %v4459_v16  ;;  %2495 = vmatpush.bf16.msra.mxu3 %v4463_v30 }
 0x265   : > { %v6847_v22 = vpop.f32.mrf.mxu2  ;;  %v1473_v55 = vpop.f32.mrf.mxu0 }
 0x266   : > { %v6849_v1 = vpop.f32.mrf.mxu3  ;;  %v6852_v39 = vadd.f32 %v1473_v55, %v8007_v27  ;;  %v1552_v56 = vpop.f32.mrf.mxu1  ;;  %v8014_v55 = vld [vmem:[#allocation20_spill] sm:$0xff] }
 0x267   : > { %8006 = vst [vmem:[#allocation43_spill] sm:$0xff] %v6849_v1  ;;  %v6855_v38 = vadd.f32 %v1552_v56, %v8009_v58 }
 0x268   : > { %8008 = vst [vmem:[#allocation17_spill] sm:$0xff] %v6852_v39  ;;  %4400 = vmatmul.msk.bf16.gmra.mxu0 %vm733_vm0, %v5508_v24 }
 0x269   : > { %8010 = vst [vmem:[#allocation18_spill] sm:$0xff] %v6855_v38  ;;  %4414 = vmatmul.msk.bf16.gmra.mxu1 %vm733_vm0, %v5508_v24 }
 0x26d   : > { %v6860_v16 = vpop.f32.mrf.mxu2  ;;  %v1475_v6 = vpop.f32.mrf.mxu0 }
 0x26e   : > { %8011 = vst [vmem:[#allocation44_spill] sm:$0xff] %v6860_v16  ;;  %v6862_v63 = vpop.f32.mrf.mxu3  ;;  %v6865_v30 = vadd.f32 %v1475_v6, %v8013_v59  ;;  %v1554_v27 = vpop.f32.mrf.mxu1 }
 0x26f   : > { %8012 = vst [vmem:[#allocation45_spill] sm:$0xff] %v6862_v63  ;;  %v6868_v39 = vadd.f32 %v1554_v27, %v8014_v55  ;;  %v5509_v63 = vld [vmem:[%s5924_s14 + $0x38] sm:$0xff]  }
 0x275   : > { %v6870_v58 = vpop.f32.mrf.mxu2  ;;  %v1478_v38 = vpop.f32.mrf.mxu0 }
 0x276   : > { %v6872_v56 = vpop.f32.mrf.mxu3  ;;  %v6875_v1 = vadd.f32 %v1478_v38, %v6483_v33  ;;  %v1557_v24 = vpop.f32.mrf.mxu1  ;;  %v5153_v33 = vld [vmem:[%s7929_s3 + $0x34] sm:$0xf0]  ;;  %v5152_v38 = vld [vmem:[%s7929_s3 + $0x34] sm:$0xf] }
 0x277   : > { %8015 = vst [vmem:[#allocation19_spill] sm:$0xff] %v6872_v56  ;;  %v6878_v16 = vadd.f32 %v1557_v24, %v6485_v48  ;;  %v4450_v48 = vld [vmem:[%s7929_s3 + $0x30] sm:$0xf] }
 0x278   : > { %8016 = vst [vmem:[#allocation20_spill] sm:$0xff] %v6875_v1  ;;  %4401 = vmatmul.msk.bf16.gmra.mxu0 %vm733_vm0, %v5509_v63  ;;  %v4451_v24 = vor.u32 %v5153_v33, %v4450_v48 }
 0x279   : > { %8017 = vst [vmem:[#allocation46_spill] sm:$0xff] %v6878_v16  ;;  %4415 = vmatmul.msk.bf16.gmra.mxu1 %vm733_vm0, %v5509_v63 }
 0x27a   : > { %2462 = vmatpush.bf16.msra.mxu2 %v4451_v24 }
 0x27d   : > { %v6883_v6 = vpop.f32.mrf.mxu2  ;;  %v1480_v27 = vpop.f32.mrf.mxu0 }
 0x27e   : > { %8018 = vst [vmem:[#allocation47_spill] sm:$0xff] %v6883_v6  ;;  %v6885_v59 = vpop.f32.mrf.mxu3  ;;  %v6888_v55 = vadd.f32 %v1480_v27, %v6489_v18  ;;  %v1559_v56 = vpop.f32.mrf.mxu1  ;;  %v4452_v18 = vld [vmem:[%s7929_s3 + $0x38] sm:$0xf0] }
 0x27f   : > { %8019 = vst [vmem:[#allocation48_spill] sm:$0xff] %v6885_v59  ;;  %v6900_v63 = vadd.f32 %v1559_v56, %v6491_v54  ;;  %v4455_v27 = vor.u32 %v5152_v38, %v4452_v18  ;;  %v5510_v56 = vld [vmem:[%s5924_s14 + $0x40] sm:$0xff]  }
 0x280   : > { %8020 = vst [vmem:[#allocation49_spill] sm:$0xff] %v6888_v55 }
 0x281   : > { %8021 = vst [vmem:[#allocation50_spill] sm:$0xff] %v6900_v63  ;;  %2496 = vmatpush.bf16.msra.mxu3 %v4455_v27  ;;  %v5511_v63 = vld [vmem:[%s5924_s14 + $0x48] sm:$0xff]  }
 0x285   : > { %v6905_v55 = vpop.f32.mrf.mxu2  ;;  %v1483_v16 = vpop.f32.mrf.mxu0 }
 0x286   : > { %v6907_v59 = vpop.f32.mrf.mxu3  ;;  %v6910_v6 = vadd.f32 %v1483_v16, %v6503_v49  ;;  %v1562_v1 = vpop.f32.mrf.mxu1  ;;  %v8028_v16 = vld [vmem:[#allocation21_spill] sm:$0xff] }
 0x287   : > { %8022 = vst [vmem:[#allocation51_spill] sm:$0xff] %v6907_v59  ;;  %v6913_v54 = vadd.f32 %v1562_v1, %v6505_v2  ;;  %v8033_v59 = vld [vmem:[#allocation23_spill] sm:$0xff] }
 0x288   : > { %8023 = vst [vmem:[#allocation52_spill] sm:$0xff] %v6910_v6  ;;  %4402 = vmatmul.msk.bf16.gmra.mxu0 %vm733_vm0, %v5510_v56 }
 0x289   : > { %8024 = vst [vmem:[#allocation53_spill] sm:$0xff] %v6913_v54  ;;  %4416 = vmatmul.msk.bf16.gmra.mxu1 %vm733_vm0, %v5510_v56  ;;  %v8032_v54 = vld [vmem:[#allocation22_spill] sm:$0xff] }
 0x28d   : > { %v6918_v48 = vpop.f32.mrf.mxu2  ;;  %v1485_v38 = vpop.f32.mrf.mxu0 }
 0x28e   : > { %8025 = vst [vmem:[#allocation54_spill] sm:$0xff] %v6918_v48  ;;  %v6920_v33 = vpop.f32.mrf.mxu3  ;;  %v6923_v24 = vadd.f32 %v1485_v38, %v6509_v3  ;;  %v1564_v49 = vpop.f32.mrf.mxu1  ;;  %v4442_v3 = vld [vmem:[%s7929_s3 + $0x20] sm:$0xf]  ;;  %v5151_v38 = vld [vmem:[%s7929_s3 + $0x24] sm:$0xf0] }
 0x28f   : > { %8026 = vst [vmem:[#allocation55_spill] sm:$0xff] %v6920_v33  ;;  %v6926_v18 = vadd.f32 %v1564_v49, %v8028_v16  ;;  %v4443_v16 = vor.u32 %v5151_v38, %v4442_v3  ;;  %v5149_v3 = vld [vmem:[%s7929_s3 + $0x14] sm:$0xf0] }
 0x290   : > { %8027 = vst [vmem:[#allocation56_spill] sm:$0xff] %v6923_v24 }
 0x291   : > { %8029 = vst [vmem:[#allocation21_spill] sm:$0xff] %v6926_v18  ;;  %2463 = vmatpush.bf16.msra.mxu2 %v4443_v16 }
 0x295   : > { %v6928_v2 = vpop.f32.mrf.mxu2  ;;  %v1488_v27 = vpop.f32.mrf.mxu0 }
 0x296   : > { %8030 = vst [vmem:[#allocation57_spill] sm:$0xff] %v6928_v2  ;;  %v6930_v1 = vpop.f32.mrf.mxu3  ;;  %v1624_v6 = vadd.f32 %v1488_v27, %v8032_v54  ;;  %v1567_v56 = vpop.f32.mrf.mxu1  ;;  %v5150_v54 = vld [vmem:[%s7929_s3 + $0x24] sm:$0xf] }
 0x297   : > { %8031 = vst [vmem:[#allocation58_spill] sm:$0xff] %v6930_v1  ;;  %v1625_v48 = vadd.f32 %v1567_v56, %v8033_v59  ;;  %v4444_v59 = vld [vmem:[%s7929_s3 + $0x28] sm:$0xf0] }
 0x298   : > { %4403 = vmatmul.msk.bf16.gmra.mxu0 %vm733_vm0, %v5511_v63  ;;  %v4447_v1 = vor.u32 %v5150_v54, %v4444_v59  ;;  %v5512_v59 = vld [vmem:[%s5924_s14 + $0x50] sm:$0xff]  }
 0x299   : > { %4417 = vmatmul.msk.bf16.gmra.mxu1 %vm733_vm0, %v5511_v63 }
 0x29a   : > { %2497 = vmatpush.bf16.msra.mxu3 %v4447_v1 }
 0x29d   : > { %v1781_v49 = vpop.f32.mrf.mxu2  ;;  %v1490_v56 = vpop.f32.mrf.mxu0 }
 0x29e   : > { %v6949_v27 = vadd.f32 %v1781_v49, %v1624_v6  ;;  %v1860_v63 = vpop.f32.mrf.mxu3  ;;  %v6954_v2 = vadd.f32 %v1490_v56, %v6541_v12  ;;  %v1569_v24 = vpop.f32.mrf.mxu1  ;;  %v4434_v6 = vld [vmem:[%s7929_s3 + $0x10] sm:$0xf]  ;;  %v5148_v12 = vld [vmem:[%s7929_s3 + $0x14] sm:$0xf]  ;;  %v5147_v56 = vld [vmem:[%s7929_s3 + $0x4] sm:$0xf0] }
 0x29f   : > { %v6951_v18 = vadd.f32 %v1860_v63, %v1625_v48  ;;  %v6957_v33 = vadd.f32 %v1569_v24, %v6543_v57  ;;  %v4435_v38 = vor.u32 %v5149_v3, %v4434_v6  ;;  %v4436_v57 = vld [vmem:[%s7929_s3 + $0x18] sm:$0xf0]  ;;  %v4426_v63 = vld [vmem:[%s7929_s3] sm:$0xf]  ;;  %v4428_v3 = vld [vmem:[%s7929_s3 + $0x8] sm:$0xf0] }
 0x2a0   : > { %8034 = vst [vmem:[#allocation22_spill] sm:$0xff] %v6954_v2  ;;  %v4439_v54 = vor.u32 %v5148_v12, %v4436_v57 }
 0x2a1   : > { %8035 = vst [vmem:[#allocation23_spill] sm:$0xff] %v6957_v33  ;;  %2464 = vmatpush.bf16.msra.mxu2 %v4435_v38 }
 0x2a2   : > { %2498 = vmatpush.bf16.msra.mxu3 %v4439_v54 }
 0x2a5   : > { %v2009_v48 = vpop.f32.mrf.mxu0 }
 0x2a6   : > { %v2158_v24 = vadd.f32 %v2009_v48, %v6555_v28  ;;  %v2088_v1 = vpop.f32.mrf.mxu1  ;;  %v4427_v28 = vor.u32 %v5147_v56, %v4426_v63 }
 0x2a7   : > { %v2159_v49 = vadd.f32 %v2088_v1, %v6557_v4  ;;  %v5146_v4 = vld [vmem:[%s7929_s3 + $0x4] sm:$0xf] }
 0x2a8   : > { %v2214_v16 = vmax.f32 %v2158_v24, 0.0  ;;  %4404 = vmatmul.msk.bf16.gmra.mxu0 %vm733_vm0, %v5512_v59  ;;  %v4431_v12 = vor.u32 %v5146_v4, %v4428_v3  ;;  %2465 = vmatpush.bf16.msra.mxu2 %v4427_v28 }
 0x2a9   : > { %v2215_v6 = vmax.f32 %v2159_v49, 0.0  ;;  %4418 = vmatmul.msk.bf16.gmra.mxu1 %vm733_vm0, %v5512_v59 }
 0x2aa   : > { %2499 = vmatpush.bf16.msra.mxu3 %v4431_v12 }
 0x2ab   : > { %v2270_v48 = vmax.f32 %v2214_v16, %v2215_v6  ;;  %v5513_v6 = vld [vmem:[%s5924_s14 + $0x58] sm:$0xff]  }
 0x2ad   : > { %v2011_v38 = vpop.f32.mrf.mxu0 }
 0x2ae   : > { %v2160_v57 = vadd.f32 %v2011_v38, %v6561_v43  ;;  %v2090_v24 = vpop.f32.mrf.mxu1 }
 0x2af   : > { %v2161_v1 = vadd.f32 %v2090_v24, %v6563_v20 }
 0x2b0   : > { %v2216_v54 = vmax.f32 %v2160_v57, 0.0 }
 0x2b1   : > { %v2217_v49 = vmax.f32 %v2161_v1, 0.0 }
 0x2b3   : > { %v2271_v59 = vmax.f32 %v2216_v54, %v2217_v49 }
 0x2b5   : > { %v2298_v63 = vmax.f32 %v2270_v48, %v2271_v59  ;;  %v2014_v56 = vpop.f32.mrf.mxu0 }
 0x2b6   : > { %v2162_v33 = vadd.f32 %v2014_v56, %v6575_v45  ;;  %v2093_v2 = vpop.f32.mrf.mxu1 }
 0x2b7   : > { %v2163_v4 = vadd.f32 %v2093_v2, %v6577_v11  ;;  %v1873_v11 = vadd.f32 %v6611_v31, %v6586_v8  ;;  %v2312_v2 = vpack.c.bf16 %v2298_v63, %v2298_v63  ;;  %v5209_v8 = vld [vmem:[%s7929_s3 + $0x1f4] sm:$0xf0] }
 0x2b8   : > { %v2218_v16 = vmax.f32 %v2162_v33, 0.0  ;;  %4405 = vmatmul.msk.bf16.gmra.mxu0 %vm733_vm0, %v5513_v6  ;;  %v1874_v33 = vadd.f32 %v6613_v44, %v6598_v5 }
 0x2b9   : > { %v2219_v28 = vmax.f32 %v2163_v4, 0.0  ;;  %4419 = vmatmul.msk.bf16.gmra.mxu1 %vm733_vm0, %v5513_v6  ;;  %v5514_v4 = vld [vmem:[%s5924_s14 + $0x60] sm:$0xff]   ;;  %v2358_v5 = vunpack.c.l.b16 %v2312_v2  ;;  %v4724_v6 = vld [vmem:[%s7929_s3 + $0x1f8] sm:$0xf0] }
 0x2bb   : > { %v2272_v43 = vmax.f32 %v2218_v16, %v2219_v28  ;;  %v5208_v16 = vld [vmem:[%s7929_s3 + $0x1f4] sm:$0xf] }
 0x2bc   : > { %v4727_v28 = vor.u32 %v5208_v16, %v4724_v6 }
 0x2bd   : > { %v2016_v3 = vpop.f32.mrf.mxu0 }
 0x2be   : > { %v2164_v20 = vadd.f32 %v2016_v3, %v6581_v7  ;;  %v2095_v12 = vpop.f32.mrf.mxu1  ;;  %3067 = vmatpush.bf16.msrb.mxu1 %v4727_v28 }
 0x2bf   : > { %v2165_v48 = vadd.f32 %v2095_v12, %v6583_v35  ;;  %v4722_v35 = vld [vmem:[%s7929_s3 + $0x1f0] sm:$0xf]  ;;  %v4714_v12 = vld [vmem:[%s7929_s3 + $0x1e0] sm:$0xf] }
 0x2c0   : > { %v2220_v38 = vmax.f32 %v2164_v20, 0.0  ;;  %v4723_v63 = vor.u32 %v5209_v8, %v4722_v35  ;;  %v1875_v20 = vadd.f32 %v6621_v60, %v6616_v42  ;;  %v4716_v60 = vld [vmem:[%s7929_s3 + $0x1e8] sm:$0xf0]  ;;  %v1877_v35 = vadd.f32 %v6639_v52, %v6626_v61  ;;  %v4698_v8 = vld [vmem:[%s7929_s3 + $0x1c0] sm:$0xf] }
 0x2c1   : > { %v2221_v45 = vmax.f32 %v2165_v48, 0.0  ;;  %v5207_v48 = vld [vmem:[%s7929_s3 + $0x1e4] sm:$0xf0]  ;;  %v4700_v52 = vld [vmem:[%s7929_s3 + $0x1c8] sm:$0xf0] }
 0x2c2   : > { %3033 = vmatpush.bf16.msrb.mxu0 %v4723_v63  ;;  %v4715_v42 = vor.u32 %v5207_v48, %v4714_v12  ;;  %v1878_v63 = vadd.f32 %v6641_v10, %v6629_v25  ;;  %v4690_v25 = vld [vmem:[%s7929_s3 + $0x1b0] sm:$0xf]  ;;  %v5201_v10 = vld [vmem:[%s7929_s3 + $0x1b4] sm:$0xf0] }
 0x2c3   : > { %v2273_v57 = vmax.f32 %v2220_v38, %v2221_v45  ;;  %v5206_v38 = vld [vmem:[%s7929_s3 + $0x1e4] sm:$0xf]  ;;  %v1876_v45 = vadd.f32 %v6623_v50, %v6619_v0  ;;  %v5205_v0 = vld [vmem:[%s7929_s3 + $0x1d4] sm:$0xf0] }
 0x2c4   : > { %v4719_v2 = vor.u32 %v5206_v38, %v4716_v60  ;;  %v5200_v60 = vld [vmem:[%s7929_s3 + $0x1b4] sm:$0xf] }
 0x2c5   : > { %v2299_v24 = vmax.f32 %v2272_v43, %v2273_v57  ;;  %v2019_v1 = vpop.f32.mrf.mxu0 }
 0x2c6   : > { %v2166_v54 = vadd.f32 %v2019_v1, %v1873_v11  ;;  %v2098_v49 = vpop.f32.mrf.mxu1  ;;  %3034 = vmatpush.bf16.msrb.mxu0 %v4715_v42  ;;  %3068 = vmatpush.bf16.msrb.mxu1 %v4719_v2  ;;  %v4691_v42 = vor.u32 %v5201_v10, %v4690_v25 }
 0x2c7   : > { %v2313_v59 = vpack.c.bf16 %v2299_v24, %v2299_v24  ;;  %v2167_v7 = vadd.f32 %v2098_v49, %v1874_v33 }
 0x2c8   : > { %v2222_v56 = vmax.f32 %v2166_v54, 0.0  ;;  %4406 = vmatmul.msk.bf16.gmra.mxu0 %vm733_vm0, %v5514_v4  ;;  %v4706_v54 = vld [vmem:[%s7929_s3 + $0x1d0] sm:$0xf] }
 0x2c9   : > { %v7009_v31 = vunpack.c.l.b16 %v2313_v59  ;;  %v2223_v44 = vmax.f32 %v2167_v7, 0.0  ;;  %4420 = vmatmul.msk.bf16.gmra.mxu1 %vm733_vm0, %v5514_v4  ;;  %v4707_v49 = vor.u32 %v5205_v0, %v4706_v54  ;;  %v5204_v59 = vld [vmem:[%s7929_s3 + $0x1d4] sm:$0xf]  ;;  %v4708_v7 = vld [vmem:[%s7929_s3 + $0x1d8] sm:$0xf0] }
 0x2ca   : > { %v4682_v54 = vld [vmem:[%s7929_s3 + $0x1a0] sm:$0xf]  ;;  %v5199_v0 = vld [vmem:[%s7929_s3 + $0x1a4] sm:$0xf0] }
 0x2cb   : > { %v2368_v43 = vpack.c.b16 %v7009_v31, %v2358_v5  ;;  %v2274_v3 = vmax.f32 %v2222_v56, %v2223_v44  ;;  %v4711_v56 = vor.u32 %v5204_v59, %v4708_v7  ;;  %3035 = vmatpush.bf16.msrb.mxu0 %v4707_v49  ;;  %v5203_v5 = vld [vmem:[%s7929_s3 + $0x1c4] sm:$0xf0]  ;;  %v5202_v44 = vld [vmem:[%s7929_s3 + $0x1c4] sm:$0xf]  ;;  %v4683_v59 = vor.u32 %v5199_v0, %v4682_v54  ;;  %v4562_v54 = vld [vmem:[%s7929_s3 + $0xf0] sm:$0xf] }
 0x2cc   : > { %v4699_v61 = vor.u32 %v5203_v5, %v4698_v8  ;;  %v4674_v8 = vld [vmem:[%s7929_s3 + $0x190] sm:$0xf] }
 0x2cd   : > { %2466 = vmatmul.bf16.vlgmr.msra.gmra.mxu2 %v2368_v43  ;;  %2500 = vmatmul.bf16.vlgmr.msra.gmra.mxu3 %v2368_v43  ;;  %v2021_v57 = vpop.f32.mrf.mxu0 }
 0x2ce   : > { %v2168_v11 = vadd.f32 %v2021_v57, %v1875_v20  ;;  %v2100_v33 = vpop.f32.mrf.mxu1  ;;  %3069 = vmatpush.bf16.msrb.mxu1 %v4711_v56  ;;  %v4703_v20 = vor.u32 %v5202_v44, %v4700_v52  ;;  %v5196_v44 = vld [vmem:[%s7929_s3 + $0x194] sm:$0xf]  ;;  %v4666_v52 = vld [vmem:[%s7929_s3 + $0x180] sm:$0xf] }
 0x2cf   : > { %v2169_v24 = vadd.f32 %v2100_v33, %v1876_v45  ;;  %3036 = vmatpush.bf16.msrb.mxu0 %v4699_v61  ;;  %v5515_v45 = vld [vmem:[%s5924_s14 + $0x68] sm:$0xff]   ;;  %v1881_v61 = vadd.f32 %v6667_v21, %v6654_v19 }
 0x2d0   : > { %v2224_v1 = vmax.f32 %v2168_v11, 0.0  ;;  %v4692_v11 = vld [vmem:[%s7929_s3 + $0x1b8] sm:$0xf0]  ;;  %v4668_v19 = vld [vmem:[%s7929_s3 + $0x188] sm:$0xf0] }
 0x2d1   : > { %v2225_v50 = vmax.f32 %v2169_v24, 0.0  ;;  %v4695_v33 = vor.u32 %v5200_v60, %v4692_v11 }
 0x2d2   : > { %3070 = vmatpush.bf16.msrb.mxu1 %v4703_v20  ;;  %v1882_v20 = vadd.f32 %v6669_v36, %v6657_v62 }
 0x2d3   : > { %v2275_v4 = vmax.f32 %v2224_v1, %v2225_v50  ;;  %3037 = vmatpush.bf16.msrb.mxu0 %v4691_v42  ;;  %v1879_v1 = vadd.f32 %v6649_v32, %v6644_v46  ;;  %v5198_v50 = vld [vmem:[%s7929_s3 + $0x1a4] sm:$0xf]  ;;  %v4684_v46 = vld [vmem:[%s7929_s3 + $0x1a8] sm:$0xf0] }
 0x2d4   : > { %v4687_v56 = vor.u32 %v5198_v50, %v4684_v46  ;;  %v8036_v46 = vld [vmem:[#allocation24_spill] sm:$0xff] }
 0x2d5   : > { %v2300_v16 = vmax.f32 %v2274_v3, %v2275_v4  ;;  %v2024_v6 = vpop.f32.mrf.mxu0 }
 0x2d6   : > { %v2170_v28 = vadd.f32 %v2024_v6, %v1877_v35  ;;  %v2103_v43 = vpop.f32.mrf.mxu1  ;;  %3071 = vmatpush.bf16.msrb.mxu1 %v4695_v33  ;;  %v1883_v33 = vadd.f32 %v6689_v40, %v6672_v17  ;;  %v5176_v17 = vld [vmem:[%s7929_s3 + $0xf4] sm:$0xf] }
 0x2d7   : > { %v2314_v12 = vpack.c.bf16 %v2300_v16, %v2300_v16  ;;  %v2171_v48 = vadd.f32 %v2103_v43, %v1878_v63  ;;  %3038 = vmatpush.bf16.msrb.mxu0 %v4683_v59  ;;  %v4676_v63 = vld [vmem:[%s7929_s3 + $0x198] sm:$0xf0]  ;;  %v5194_v43 = vld [vmem:[%s7929_s3 + $0x184] sm:$0xf] }
 0x2d8   : > { %v2226_v38 = vmax.f32 %v2170_v28, 0.0  ;;  %4407 = vmatmul.msk.bf16.gmra.mxu0 %vm733_vm0, %v5515_v45  ;;  %v4679_v16 = vor.u32 %v5196_v44, %v4676_v63  ;;  %v5195_v28 = vld [vmem:[%s7929_s3 + $0x184] sm:$0xf0]  ;;  %v4671_v25 = vor.u32 %v5194_v43, %v4668_v19 }
 0x2d9   : > { %v2360_v3 = vunpack.c.l.b16 %v2314_v12  ;;  %v2227_v57 = vmax.f32 %v2171_v48, 0.0  ;;  %4421 = vmatmul.msk.bf16.gmra.mxu1 %vm733_vm0, %v5515_v45 }
 0x2da   : > { %3072 = vmatpush.bf16.msrb.mxu1 %v4687_v56  ;;  %v8038_v56 = vld [vmem:[#allocation25_spill] sm:$0xff] }
 0x2db   : > { %v7079_v2 = vpack.c.b16 %v2360_v3, %v7009_v31  ;;  %v2276_v24 = vmax.f32 %v2226_v38, %v2227_v57  ;;  %v1880_v31 = vadd.f32 %v6651_v29, %v6647_v13  ;;  %v5197_v13 = vld [vmem:[%s7929_s3 + $0x194] sm:$0xf0]  ;;  %v4667_v38 = vor.u32 %v5195_v28, %v4666_v52 }
 0x2dc   : > { %v4675_v5 = vor.u32 %v5197_v13, %v4674_v8 }
 0x2dd   : > { %v2026_v49 = vpop.f32.mrf.mxu0 }
 0x2de   : > { %v2172_v32 = vadd.f32 %v2026_v49, %v1879_v1  ;;  %v2105_v7 = vpop.f32.mrf.mxu1  ;;  %3039 = vmatpush.bf16.msrb.mxu0 %v4675_v5  ;;  %3073 = vmatpush.bf16.msrb.mxu1 %v4679_v16 }
 0x2df   : > { %v2173_v4 = vadd.f32 %v2105_v7, %v1880_v31 }
 0x2e0   : > { %v2228_v35 = vmax.f32 %v2172_v32, 0.0  ;;  %v8037_v32 = vld [vmem:[#allocation26_spill] sm:$0xff] }
 0x2e1   : > { %v2229_v29 = vmax.f32 %v2173_v4, 0.0  ;;  %v1885_v7 = vadd.f32 %v8037_v32, %v8036_v46  ;;  %v8039_v4 = vld [vmem:[#allocation27_spill] sm:$0xff]  ;;  %v5172_v32 = vld [vmem:[%s7929_s3 + $0xd4] sm:$0xf] }
 0x2e2   : > { %3040 = vmatpush.bf16.msrb.mxu0 %v4667_v38  ;;  %3074 = vmatpush.bf16.msrb.mxu1 %v4671_v25  ;;  %v1887_v38 = vadd.f32 %v6719_v23, %v6714_v15  ;;  %v8041_v25 = vld [vmem:[#allocation7_spill] sm:$0xff]  ;;  %v8043_v23 = vld [vmem:[#allocation9_spill] sm:$0xff] }
 0x2e3   : > { %v2277_v6 = vmax.f32 %v2228_v35, %v2229_v29  ;;  %v1886_v35 = vadd.f32 %v8039_v4, %v8038_v56  ;;  %v5356_v29 = vld [vmem:[%s5924_s14 + $0x78] sm:$0xff]   ;;  %s3995_s14 = sshll.u32 %s5906_s13, 3 }
 0x2e4   : > { %v4548_v4 = vld [vmem:[%s7929_s3 + $0xd8] sm:$0xf0]  ;;  %s551_s21 = scalar_lea.vmem [#allocation3], %s3995_s14 }
 0x2e5   : > { %v2301_v12 = vmax.f32 %v2276_v24, %v2277_v6  ;;  %v2029_v48 = vpop.f32.mrf.mxu0  ;;  %v1884_v24 = vadd.f32 %v6691_v53, %v6684_v26  ;;  %s3920_s16 = sshll.u32 %s551_s21, 4  ;;  %s3921_s16 = int_to_ptr.vmem [resolvable:$true] %s3920_s16 }
 0x2e6   : > { %v2174_v21 = vadd.f32 %v2029_v48, %v1881_v61  ;;  %v2108_v45 = vpop.f32.mrf.mxu1  ;;  %v5174_v48 = vld [vmem:[%s7929_s3 + $0xe4] sm:$0xf] }
 0x2e7   : > { %v2315_v10 = vpack.c.bf16 %v2301_v12, %v2301_v12  ;;  %v2175_v57 = vadd.f32 %v2108_v45, %v1882_v20  ;;  %v4554_v20 = vld [vmem:[%s7929_s3 + $0xe0] sm:$0xf]  ;;  %v5175_v12 = vld [vmem:[%s7929_s3 + $0xe4] sm:$0xf0]  ;;  %v8040_v45 = vld [vmem:[#allocation6_spill] sm:$0xff] }
 0x2e8   : > { %v2230_v42 = vmax.f32 %v2174_v21, 0.0  ;;  %4408 = vmatmul.msk.bf16.gmra.mxu0 %vm733_vm0, %v6694_v37  ;;  %v4555_v19 = vor.u32 %v5175_v12, %v4554_v20  ;;  %v4556_v21 = vld [vmem:[%s7929_s3 + $0xe8] sm:$0xf0] }
 0x2e9   : > { %v2361_v60 = vunpack.c.l.b16 %v2315_v10  ;;  %v2231_v62 = vmax.f32 %v2175_v57, 0.0  ;;  %4422 = vmatmul.msk.bf16.gmra.mxu1 %vm733_vm0, %v6694_v37  ;;  %v5177_v37 = vld [vmem:[%s7929_s3 + $0xf4] sm:$0xf0]  ;;  %v1888_v10 = vadd.f32 %v8041_v25, %v8040_v45  ;;  %v8045_v12 = vld [vmem:[#allocation29_spill] sm:$0xff] }
 0x2ea   : > { %v4563_v53 = vor.u32 %v5177_v37, %v4562_v54  ;;  %v8042_v54 = vld [vmem:[#allocation8_spill] sm:$0xff]  ;;  %v1890_v37 = vadd.f32 %v6746_v41, %v8043_v23  ;;  %v5173_v41 = vld [vmem:[%s7929_s3 + $0xd4] sm:$0xf0]  ;;  %v5168_v23 = vld [vmem:[%s7929_s3 + $0xb4] sm:$0xf] }
 0x2eb   : > { %v2278_v36 = vmax.f32 %v2230_v42, %v2231_v62  ;;  %v7129_v11 = vpack.c.b16 %v2361_v60, %v2360_v3  ;;  %v4564_v3 = vld [vmem:[%s7929_s3 + $0xf8] sm:$0xf0]  ;;  %v4559_v42 = vor.u32 %v5174_v48, %v4556_v21  ;;  %v1889_v15 = vadd.f32 %v6744_v9, %v8042_v54  ;;  %v4546_v9 = vld [vmem:[%s7929_s3 + $0xd0] sm:$0xf]  ;;  %v8048_v21 = vld [vmem:[#allocation32_spill] sm:$0xff] }
 0x2ec   : > { %v4567_v50 = vor.u32 %v5176_v17, %v4564_v3  ;;  %2655 = vmatpush.bf16.msrb.mxu2 %v4563_v53  ;;  %v4547_v56 = vor.u32 %v5173_v41, %v4546_v9  ;;  %v8046_v48 = vld [vmem:[#allocation31_spill] sm:$0xff] }
 0x2ed   : > { %2471 = vmatmul.bf16.gmra.mxu2 %v7129_v11  ;;  %2505 = vmatmul.bf16.gmra.mxu3 %v7129_v11  ;;  %v2031_v1 = vpop.f32.mrf.mxu0  ;;  %v5169_v54 = vld [vmem:[%s7929_s3 + $0xb4] sm:$0xf0] }
 0x2ee   : > { %v2176_v40 = vadd.f32 %v2031_v1, %v1883_v33  ;;  %v2110_v26 = vpop.f32.mrf.mxu1  ;;  %2689 = vmatpush.bf16.msrb.mxu3 %v4567_v50 }
 0x2ef   : > { %v2177_v0 = vadd.f32 %v2110_v26, %v1884_v24 }
 0x2f0   : > { %v2232_v31 = vmax.f32 %v2176_v40, 0.0  ;;  %2656 = vmatpush.bf16.msrb.mxu2 %v4555_v19  ;;  %v8047_v19 = vld [vmem:[#allocation30_spill] sm:$0xff] }
 0x2f1   : > { %v2233_v49 = vmax.f32 %v2177_v0, 0.0  ;;  %v1894_v45 = vadd.f32 %v8048_v21, %v8047_v19  ;;  %v5166_v19 = vld [vmem:[%s7929_s3 + $0xa4] sm:$0xf]  ;;  %v8057_v21 = vld [vmem:[#allocation13_spill] sm:$0xff] }
 0x2f2   : > { %2690 = vmatpush.bf16.msrb.mxu3 %v4559_v42 }
 0x2f3   : > { %v2279_v59 = vmax.f32 %v2232_v31, %v2233_v49 }
 0x2f4   : > { %2657 = vmatpush.bf16.msrb.mxu2 %v4547_v56 }
 0x2f5   : > { %v2302_v8 = vmax.f32 %v2278_v36, %v2279_v59  ;;  %v2034_v13 = vpop.f32.mrf.mxu0 }
 0x2f6   : > { %v2178_v5 = vadd.f32 %v2034_v13, %v1885_v7  ;;  %v2113_v44 = vpop.f32.mrf.mxu1  ;;  %v1891_v7 = vadd.f32 %v6754_v51, %v6749_v14  ;;  %v8044_v13 = vld [vmem:[#allocation28_spill] sm:$0xff]  ;;  %v4551_v51 = vor.u32 %v5172_v32, %v4548_v4 }
 0x2f7   : > { %v2316_v63 = vpack.c.bf16 %v2302_v8, %v2302_v8  ;;  %v2179_v16 = vadd.f32 %v2113_v44, %v1886_v35  ;;  %v4538_v35 = vld [vmem:[%s7929_s3 + $0xc0] sm:$0xf]  ;;  %v5171_v8 = vld [vmem:[%s7929_s3 + $0xc4] sm:$0xf0]  ;;  %v4540_v44 = vld [vmem:[%s7929_s3 + $0xc8] sm:$0xf0] }
 0x2f8   : > { %v2234_v6 = vmax.f32 %v2178_v5, 0.0  ;;  %4409 = vmatmul.msk.bf16.gmra.mxu0 %vm733_vm0, %v5356_v29  ;;  %v5170_v5 = vld [vmem:[%s7929_s3 + $0xc4] sm:$0xf]  ;;  %2691 = vmatpush.bf16.msrb.mxu3 %v4551_v51 }
 0x2f9   : > { %v2362_v61 = vunpack.c.l.b16 %v2316_v63  ;;  %v2235_v52 = vmax.f32 %v2179_v16, 0.0  ;;  %4423 = vmatmul.msk.bf16.gmra.mxu1 %vm733_vm0, %v5356_v29  ;;  %v1892_v29 = vadd.f32 %v8044_v13, %v6752_v47  ;;  %v4543_v47 = vor.u32 %v5170_v5, %v4540_v44 }
 0x2fb   : > { %v7156_v28 = vpack.c.b16 %v2362_v61, %v2361_v60  ;;  %v2280_v43 = vmax.f32 %v2234_v6, %v2235_v52  ;;  %v4539_v6 = vor.u32 %v5171_v8, %v4538_v35  ;;  %v8053_v35 = vld [vmem:[#allocation35_spill] sm:$0xff]  ;;  %v8054_v8 = vld [vmem:[#allocation37_spill] sm:$0xff] }
 0x2fc   : > { %2692 = vmatpush.bf16.msrb.mxu3 %v4543_v47  ;;  %v1897_v13 = vadd.f32 %v8054_v8, %v8053_v35 }
 0x2fd   : > { %v2036_v57 = vpop.f32.mrf.mxu0  ;;  %2658 = vmatpush.bf16.msrb.mxu2 %v4539_v6 }
 0x2fe   : > { %v2180_v60 = vadd.f32 %v2036_v57, %v1887_v38  ;;  %v2115_v62 = vpop.f32.mrf.mxu1  ;;  %v1893_v38 = vadd.f32 %v8046_v48, %v8045_v12  ;;  %v4522_v48 = vld [vmem:[%s7929_s3 + $0xa0] sm:$0xf] }
 0x2ff   : > { %v2181_v36 = vadd.f32 %v2115_v62, %v1888_v10 }
 0x300   : > { %v2236_v33 = vmax.f32 %v2180_v60, 0.0 }
 0x301   : > { %v2237_v24 = vmax.f32 %v2181_v36, 0.0 }
 0x303   : > { %v2281_v1 = vmax.f32 %v2236_v33, %v2237_v24 }
 0x305   : > { %v2303_v17 = vmax.f32 %v2280_v43, %v2281_v1  ;;  %v2039_v40 = vpop.f32.mrf.mxu0  ;;  %v4530_v1 = vld [vmem:[%s7929_s3 + $0xb0] sm:$0xf] }
 0x306   : > { %v2182_v26 = vadd.f32 %v2039_v40, %v1889_v15  ;;  %v2118_v53 = vpop.f32.mrf.mxu1  ;;  %v4531_v15 = vor.u32 %v5169_v54, %v4530_v1  ;;  %v4516_v1 = vld [vmem:[%s7929_s3 + $0x98] sm:$0xf0] }
 0x307   : > { %v2317_v3 = vpack.c.bf16 %v2303_v17, %v2303_v17  ;;  %v2183_v0 = vadd.f32 %v2118_v53, %v1890_v37  ;;  %v4532_v37 = vld [vmem:[%s7929_s3 + $0xb8] sm:$0xf0]  ;;  %v8049_v53 = vld [vmem:[#allocation10_spill] sm:$0xff] }
 0x308   : > { %v2238_v50 = vmax.f32 %v2182_v26, 0.0  ;;  %3041 = vmatmul.bf16.vlgmr.msrb.gmra.mxu0 %v7156_v28  ;;  %v4535_v26 = vor.u32 %v5168_v23, %v4532_v37  ;;  %2659 = vmatpush.bf16.msrb.mxu2 %v4531_v15 }
 0x309   : > { %v2363_v31 = vunpack.c.l.b16 %v2317_v3  ;;  %v2239_v49 = vmax.f32 %v2183_v0, 0.0  ;;  %3075 = vmatmul.bf16.vlgmr.msrb.gmra.mxu1 %v7156_v28  ;;  %v8050_v3 = vld [vmem:[#allocation33_spill] sm:$0xff] }
 0x30a   : > { %v1895_v0 = vadd.f32 %v8050_v3, %v8049_v53  ;;  %2693 = vmatpush.bf16.msrb.mxu3 %v4535_v26 }
 0x30b   : > { %v7180_v59 = vpack.c.b16 %v2363_v31, %v2362_v61  ;;  %v2282_v46 = vmax.f32 %v2238_v50, %v2239_v49  ;;  %v8051_v50 = vld [vmem:[#allocation11_spill] sm:$0xff]  ;;  %v8052_v49 = vld [vmem:[#allocation34_spill] sm:$0xff] }
 0x30d   : > { %2476 = vmatmul.bf16.gmra.mxu2 %v7180_v59  ;;  %2510 = vmatmul.bf16.gmra.mxu3 %v7180_v59  ;;  %v2041_v14 = vpop.f32.mrf.mxu0 }
 0x30e   : > { %v2184_v63 = vadd.f32 %v2041_v14, %v1891_v7  ;;  %v2120_v16 = vpop.f32.mrf.mxu1  ;;  %v8056_v14 = vld [vmem:[#allocation38_spill] sm:$0xff] }
 0x30f   : > { %v2185_v61 = vadd.f32 %v2120_v16, %v1892_v29  ;;  %v8055_v29 = vld [vmem:[#allocation36_spill] sm:$0xff] }
 0x310   : > { %v2240_v52 = vmax.f32 %v2184_v63, 0.0  ;;  %v1898_v51 = vadd.f32 %v8056_v14, %v8055_v29  ;;  %v5163_v29 = vld [vmem:[%s7929_s3 + $0x84] sm:$0xf0] }
 0x311   : > { %v2241_v43 = vmax.f32 %v2185_v61, 0.0 }
 0x313   : > { %v2283_v20 = vmax.f32 %v2240_v52, %v2241_v43 }
 0x315   : > { %v2304_v25 = vmax.f32 %v2282_v46, %v2283_v20  ;;  %v2044_v10 = vpop.f32.mrf.mxu0  ;;  %v1896_v46 = vadd.f32 %v8052_v49, %v8051_v50  ;;  %v8061_v50 = vld [vmem:[#allocation41_spill] sm:$0xff] }
 0x316   : > { %v2186_v57 = vadd.f32 %v2044_v10, %v1893_v38  ;;  %v2123_v42 = vpop.f32.mrf.mxu1  ;;  %v5167_v38 = vld [vmem:[%s7929_s3 + $0xa4] sm:$0xf0]  ;;  %v4524_v10 = vld [vmem:[%s7929_s3 + $0xa8] sm:$0xf0] }
 0x317   : > { %v2318_v60 = vpack.c.bf16 %v2304_v25, %v2304_v25  ;;  %v2187_v62 = vadd.f32 %v2123_v42, %v1894_v45  ;;  %v1899_v45 = vadd.f32 %v8057_v21, %v6807_v34  ;;  %v4523_v25 = vor.u32 %v5167_v38, %v4522_v48  ;;  %v5165_v42 = vld [vmem:[%s7929_s3 + $0x94] sm:$0xf0]  ;;  %v4642_v21 = vld [vmem:[%s7929_s3 + $0x170] sm:$0xf] }
 0x318   : > { %v2242_v36 = vmax.f32 %v2186_v57, 0.0  ;;  %v4514_v57 = vld [vmem:[%s7929_s3 + $0x90] sm:$0xf]  ;;  %v8066_v48 = vld [vmem:[#allocation43_spill] sm:$0xff] }
 0x319   : > { %v2364_v33 = vunpack.c.l.b16 %v2318_v60  ;;  %v2243_v24 = vmax.f32 %v2187_v62, 0.0  ;;  %v8058_v60 = vld [vmem:[#allocation12_spill] sm:$0xff]  ;;  %v8059_v62 = vld [vmem:[#allocation39_spill] sm:$0xff]  ;;  %2660 = vmatpush.bf16.msrb.mxu2 %v4523_v25  ;;  %v4515_v23 = vor.u32 %v5165_v42, %v4514_v57 }
 0x31a   : > { %v4644_v57 = vld [vmem:[%s7929_s3 + $0x178] sm:$0xf0] }
 0x31b   : > { %v2284_v17 = vmax.f32 %v2242_v36, %v2243_v24  ;;  %v7228_v40 = vpack.c.b16 %v2364_v33, %v2363_v31  ;;  %v1900_v36 = vadd.f32 %v8059_v62, %v8058_v60  ;;  %v5164_v24 = vld [vmem:[%s7929_s3 + $0x94] sm:$0xf] }
 0x31d   : > { %3046 = vmatmul.bf16.gmra.mxu0 %v7228_v40  ;;  %3080 = vmatmul.bf16.gmra.mxu1 %v7228_v40  ;;  %v2046_v9 = vpop.f32.mrf.mxu0 }
 0x31e   : > { %v2188_v41 = vadd.f32 %v2046_v9, %v1895_v0  ;;  %v2125_v32 = vpop.f32.mrf.mxu1  ;;  %2661 = vmatpush.bf16.msrb.mxu2 %v4515_v23  ;;  %v8060_v0 = vld [vmem:[#allocation40_spill] sm:$0xff]  ;;  %v8063_v9 = vld [vmem:[#allocation42_spill] sm:$0xff] }
 0x31f   : > { %v2189_v7 = vadd.f32 %v2125_v32, %v1896_v46  ;;  %v1901_v49 = vadd.f32 %v8061_v50, %v8060_v0  ;;  %v8062_v46 = vld [vmem:[#allocation14_spill] sm:$0xff] }
 0x320   : > { %v2244_v56 = vmax.f32 %v2188_v41, 0.0  ;;  %v1902_v41 = vadd.f32 %v8063_v9, %v8062_v46 }
 0x321   : > { %v2245_v31 = vmax.f32 %v2189_v7, 0.0 }
 0x323   : > { %v2285_v4 = vmax.f32 %v2244_v56, %v2245_v31 }
 0x325   : > { %v2305_v5 = vmax.f32 %v2284_v17, %v2285_v4  ;;  %v2049_v44 = vpop.f32.mrf.mxu0  ;;  %v4519_v17 = vor.u32 %v5164_v24, %v4516_v1  ;;  %v8068_v24 = vld [vmem:[#allocation44_spill] sm:$0xff] }
 0x326   : > { %v2190_v63 = vadd.f32 %v2049_v44, %v1897_v13  ;;  %v2128_v16 = vpop.f32.mrf.mxu1  ;;  %v4506_v13 = vld [vmem:[%s7929_s3 + $0x80] sm:$0xf]  ;;  %v5162_v44 = vld [vmem:[%s7929_s3 + $0x84] sm:$0xf] }
 0x327   : > { %v2319_v6 = vpack.c.bf16 %v2305_v5, %v2305_v5  ;;  %v2191_v61 = vadd.f32 %v2128_v16, %v1898_v51  ;;  %v4507_v5 = vor.u32 %v5163_v29, %v4506_v13 }
 0x328   : > { %v2246_v47 = vmax.f32 %v2190_v63, 0.0  ;;  %v4508_v63 = vld [vmem:[%s7929_s3 + $0x88] sm:$0xf0] }
 0x329   : > { %v2365_v52 = vunpack.c.l.b16 %v2319_v6  ;;  %v2247_v43 = vmax.f32 %v2191_v61, 0.0  ;;  %v4511_v16 = vor.u32 %v5162_v44, %v4508_v63  ;;  %2662 = vmatpush.bf16.msrb.mxu2 %v4507_v5 }
 0x32b   : > { %v7240_v20 = vpack.c.b16 %v2365_v52, %v2364_v33  ;;  %v2286_v12 = vmax.f32 %v2246_v47, %v2247_v43  ;;  %v4527_v33 = vor.u32 %v5166_v19, %v4524_v10  ;;  %v8064_v47 = vld [vmem:[#allocation15_spill] sm:$0xff] }
 0x32c   : > { %v1903_v43 = vadd.f32 %v6847_v22, %v8064_v47  ;;  %v5192_v22 = vld [vmem:[%s7929_s3 + $0x174] sm:$0xf] }
 0x32d   : > { %2481 = vmatmul.bf16.gmra.mxu2 %v7240_v20  ;;  %2515 = vmatmul.bf16.gmra.mxu3 %v7240_v20  ;;  %v2051_v34 = vpop.f32.mrf.mxu0  ;;  %v4647_v60 = vor.u32 %v5192_v22, %v4644_v57 }
 0x32e   : > { %v2192_v54 = vadd.f32 %v2051_v34, %v1899_v45  ;;  %v2130_v15 = vpop.f32.mrf.mxu1  ;;  %2694 = vmatpush.bf16.msrb.mxu3 %v4527_v33  ;;  %v8067_v33 = vld [vmem:[#allocation17_spill] sm:$0xff] }
 0x32f   : > { %v2193_v37 = vadd.f32 %v2130_v15, %v1900_v36  ;;  %v1905_v1 = vadd.f32 %v8068_v24, %v8067_v33  ;;  %v8070_v15 = vld [vmem:[#allocation45_spill] sm:$0xff] }
 0x330   : > { %v2248_v26 = vmax.f32 %v2192_v54, 0.0  ;;  %v8069_v54 = vld [vmem:[#allocation18_spill] sm:$0xff] }
 0x331   : > { %v2249_v53 = vmax.f32 %v2193_v37, 0.0  ;;  %v1906_v23 = vadd.f32 %v8070_v15, %v8069_v54  ;;  %v5187_v54 = vld [vmem:[%s7929_s3 + $0x144] sm:$0xf0]  ;;  %v5186_v15 = vld [vmem:[%s7929_s3 + $0x144] sm:$0xf] }
 0x332   : > { %2695 = vmatpush.bf16.msrb.mxu3 %v4519_v17 }
 0x333   : > { %v2287_v3 = vmax.f32 %v2248_v26, %v2249_v53 }
 0x335   : > { %v2306_v32 = vmax.f32 %v2286_v12, %v2287_v3  ;;  %v2054_v7 = vpop.f32.mrf.mxu0  ;;  %v8065_v12 = vld [vmem:[#allocation16_spill] sm:$0xff] }
 0x336   : > { %v2194_v56 = vadd.f32 %v2054_v7, %v1901_v49  ;;  %v2133_v31 = vpop.f32.mrf.mxu1  ;;  %2696 = vmatpush.bf16.msrb.mxu3 %v4511_v16  ;;  %v1904_v38 = vadd.f32 %v8066_v48, %v8065_v12  ;;  %v5191_v7 = vld [vmem:[%s7929_s3 + $0x164] sm:$0xf0]  ;;  %v8072_v16 = vld [vmem:[#allocation20_spill] sm:$0xff] }
 0x337   : > { %v2320_v4 = vpack.c.bf16 %v2306_v32, %v2306_v32  ;;  %v2195_v35 = vadd.f32 %v2133_v31, %v1902_v41  ;;  %v4634_v32 = vld [vmem:[%s7929_s3 + $0x160] sm:$0xf]  ;;  %v1907_v31 = vadd.f32 %v6870_v58, %v6865_v30 }
 0x338   : > { %v2250_v8 = vmax.f32 %v2194_v56, 0.0  ;;  %v5190_v56 = vld [vmem:[%s7929_s3 + $0x164] sm:$0xf] }
 0x339   : > { %v2366_v14 = vunpack.c.l.b16 %v2320_v4  ;;  %v2251_v51 = vmax.f32 %v2195_v35, 0.0  ;;  %v4635_v4 = vor.u32 %v5191_v7, %v4634_v32  ;;  %v4636_v35 = vld [vmem:[%s7929_s3 + $0x168] sm:$0xf0]  ;;  %v8075_v12 = vld [vmem:[#allocation48_spill] sm:$0xff] }
 0x33a   : > { %2878 = vmatpush.bf16.msra.mxu3 %v4647_v60  ;;  %v4628_v60 = vld [vmem:[%s7929_s3 + $0x158] sm:$0xf0] }
 0x33b   : > { %v2288_v6 = vmax.f32 %v2250_v8, %v2251_v51  ;;  %v7288_v61 = vpack.c.b16 %v2366_v14, %v2365_v52  ;;  %v5193_v52 = vld [vmem:[%s7929_s3 + $0x174] sm:$0xf0] }
 0x33c   : > { %v4643_v10 = vor.u32 %v5193_v52, %v4642_v21  ;;  %v8071_v8 = vld [vmem:[#allocation19_spill] sm:$0xff] }
 0x33d   : > { %3051 = vmatmul.bf16.gmra.mxu0 %v7288_v61  ;;  %3085 = vmatmul.bf16.gmra.mxu1 %v7288_v61  ;;  %v2056_v19 = vpop.f32.mrf.mxu0  ;;  %v1908_v13 = vadd.f32 %v8071_v8, %v6868_v39  ;;  %v8081_v8 = vld [vmem:[#allocation53_spill] sm:$0xff] }
 0x33e   : > { %v2196_v45 = vadd.f32 %v2056_v19, %v1903_v43  ;;  %v2135_v25 = vpop.f32.mrf.mxu1  ;;  %2844 = vmatpush.bf16.msra.mxu2 %v4643_v10  ;;  %v8074_v43 = vld [vmem:[#allocation46_spill] sm:$0xff] }
 0x33f   : > { %v2197_v42 = vadd.f32 %v2135_v25, %v1904_v38  ;;  %v1910_v39 = vadd.f32 %v8075_v12, %v8074_v43  ;;  %v5189_v25 = vld [vmem:[%s7929_s3 + $0x154] sm:$0xf0]  ;;  %v5188_v10 = vld [vmem:[%s7929_s3 + $0x154] sm:$0xf]  ;;  %v4612_v43 = vld [vmem:[%s7929_s3 + $0x138] sm:$0xf0] }
 0x340   : > { %v2252_v62 = vmax.f32 %v2196_v45, 0.0  ;;  %v4626_v45 = vld [vmem:[%s7929_s3 + $0x150] sm:$0xf] }
 0x341   : > { %v2253_v36 = vmax.f32 %v2197_v42, 0.0  ;;  %v4627_v42 = vor.u32 %v5189_v25, %v4626_v45  ;;  %v8085_v45 = vld [vmem:[#allocation21_spill] sm:$0xff]  ;;  %v8086_v25 = vld [vmem:[#allocation58_spill] sm:$0xff] }
 0x342   : > { %2845 = vmatpush.bf16.msra.mxu2 %v4635_v4  ;;  %v8080_v4 = vld [vmem:[#allocation54_spill] sm:$0xff] }
 0x343   : > { %v2289_v34 = vmax.f32 %v2252_v62, %v2253_v36 }
 0x345   : > { %v2307_v37 = vmax.f32 %v2288_v6, %v2289_v34  ;;  %v2059_v17 = vpop.f32.mrf.mxu0  ;;  %v8073_v6 = vld [vmem:[#allocation47_spill] sm:$0xff]  ;;  %v4631_v34 = vor.u32 %v5188_v10, %v4628_v60  ;;  %v1916_v10 = vadd.f32 %v8086_v25, %v8085_v45  ;;  %v4802_v25 = vld [vmem:[%s7929_s3 + $0x270] sm:$0xf] }
 0x346   : > { %v2198_v26 = vadd.f32 %v2059_v17, %v1905_v1  ;;  %v2138_v53 = vpop.f32.mrf.mxu1  ;;  %v1909_v47 = vadd.f32 %v8073_v6, %v8072_v16  ;;  %2846 = vmatpush.bf16.msra.mxu2 %v4627_v42  ;;  %v4618_v1 = vld [vmem:[%s7929_s3 + $0x140] sm:$0xf]  ;;  %v5184_v16 = vld [vmem:[%s7929_s3 + $0x134] sm:$0xf] }
 0x347   : > { %v2321_v3 = vpack.c.bf16 %v2307_v37, %v2307_v37  ;;  %v2199_v0 = vadd.f32 %v2138_v53, %v1906_v23  ;;  %v8076_v23 = vld [vmem:[#allocation49_spill] sm:$0xff]  ;;  %v4619_v17 = vor.u32 %v5187_v54, %v4618_v1  ;;  %v8077_v53 = vld [vmem:[#allocation50_spill] sm:$0xff] }
 0x348   : > { %v2254_v50 = vmax.f32 %v2198_v26, 0.0  ;;  %v1911_v37 = vadd.f32 %v6905_v55, %v8076_v23  ;;  %v4620_v26 = vld [vmem:[%s7929_s3 + $0x148] sm:$0xf0] }
 0x349   : > { %v2367_v49 = vunpack.c.l.b16 %v2321_v3  ;;  %v2255_v46 = vmax.f32 %v2199_v0, 0.0  ;;  %v8078_v3 = vld [vmem:[#allocation51_spill] sm:$0xff] }
 0x34a   : > { %v1912_v0 = vadd.f32 %v8078_v3, %v8077_v53  ;;  %2847 = vmatpush.bf16.msra.mxu2 %v4619_v17 }
 0x34b   : > { %v7312_v9 = vpack.c.b16 %v2367_v49, %v2366_v14  ;;  %v2290_v41 = vmax.f32 %v2254_v50, %v2255_v46  ;;  %v4639_v14 = vor.u32 %v5190_v56, %v4636_v35 }
 0x34d   : > { %2486 = vmatmul.bf16.gmra.mxu2 %v7312_v9  ;;  %2520 = vmatmul.bf16.gmra.mxu3 %v7312_v9  ;;  %v2061_v29 = vpop.f32.mrf.mxu0 }
 0x34e   : > { %v2200_v51 = vadd.f32 %v2061_v29, %v1907_v31  ;;  %v2140_v5 = vpop.f32.mrf.mxu1  ;;  %2879 = vmatpush.bf16.msra.mxu3 %v4639_v14  ;;  %v8079_v31 = vld [vmem:[#allocation52_spill] sm:$0xff] }
 0x34f   : > { %v2201_v44 = vadd.f32 %v2140_v5, %v1908_v13  ;;  %v1913_v35 = vadd.f32 %v8080_v4, %v8079_v31  ;;  %v8082_v13 = vld [vmem:[#allocation55_spill] sm:$0xff] }
 0x350   : > { %v2256_v30 = vmax.f32 %v2200_v51, 0.0 }
 0x351   : > { %v2257_v58 = vmax.f32 %v2201_v44, 0.0 }
 0x352   : > { %2880 = vmatpush.bf16.msra.mxu3 %v4631_v34  ;;  %v5182_v34 = vld [vmem:[%s7929_s3 + $0x124] sm:$0xf] }
 0x353   : > { %v2291_v63 = vmax.f32 %v2256_v30, %v2257_v58  ;;  %v4610_v58 = vld [vmem:[%s7929_s3 + $0x130] sm:$0xf] }
 0x355   : > { %v2308_v48 = vmax.f32 %v2290_v41, %v2291_v63  ;;  %v2064_v38 = vpop.f32.mrf.mxu0  ;;  %v5185_v63 = vld [vmem:[%s7929_s3 + $0x134] sm:$0xf0] }
 0x356   : > { %v2202_v19 = vadd.f32 %v2064_v38, %v1909_v47  ;;  %v2143_v21 = vpop.f32.mrf.mxu1  ;;  %v4611_v47 = vor.u32 %v5185_v63, %v4610_v58 }
 0x357   : > { %v2322_v52 = vpack.c.bf16 %v2308_v48, %v2308_v48  ;;  %v2203_v22 = vadd.f32 %v2143_v21, %v1910_v39  ;;  %v4615_v48 = vor.u32 %v5184_v16, %v4612_v43  ;;  %v8083_v21 = vld [vmem:[#allocation56_spill] sm:$0xff] }
 0x358   : > { %v2258_v57 = vmax.f32 %v2202_v19, 0.0  ;;  %2848 = vmatpush.bf16.msra.mxu2 %v4611_v47  ;;  %v4586_v16 = vld [vmem:[%s7929_s3 + $0x100] sm:$0xf] }
 0x359   : > { %v2564_v62 = vunpack.c.l.b16 %v2322_v52  ;;  %v2259_v36 = vmax.f32 %v2203_v22, 0.0  ;;  %v8084_v52 = vld [vmem:[#allocation57_spill] sm:$0xff] }
 0x35a   : > { %v1915_v22 = vadd.f32 %v8084_v52, %v8083_v21 }
 0x35b   : > { %v2292_v33 = vmax.f32 %v2258_v57, %v2259_v36  ;;  %v7348_v24 = vpack.c.b16 %v2564_v62, %v2367_v49  ;;  %v4623_v49 = vor.u32 %v5186_v15, %v4620_v26  ;;  %v4602_v36 = vld [vmem:[%s7929_s3 + $0x120] sm:$0xf] }
 0x35d   : > { %2663 = vmatmul.bf16.vlgmr.msrb.gmra.mxu2 %v7079_v2  ;;  %2697 = vmatmul.bf16.vlgmr.msrb.gmra.mxu3 %v7079_v2  ;;  %v2066_v50 = vpop.f32.mrf.mxu0  ;;  %v1914_v2 = vadd.f32 %v8082_v13, %v8081_v8  ;;  %v8087_v13 = vld [vmem:[#allocation22_spill] sm:$0xff] }
 0x35e   : > { %3056 = vmatmul.bf16.gmra.mxu0 %v7348_v24  ;;  %3090 = vmatmul.bf16.gmra.mxu1 %v7348_v24  ;;  %v2204_v55 = vadd.f32 %v2066_v50, %v1911_v37  ;;  %v2145_v46 = vpop.f32.mrf.mxu1 }
 0x35f   : > { %v2205_v41 = vadd.f32 %v2145_v46, %v1912_v0  ;;  %2881 = vmatpush.bf16.msra.mxu3 %v4623_v49 }
 0x360   : > { %v2260_v32 = vmax.f32 %v2204_v55, 0.0  ;;  %v1783_v55 = vpop.f32.mrf.mxu2 }
 0x361   : > { %v2261_v7 = vmax.f32 %v2205_v41, 0.0 }
 0x363   : > { %v2293_v56 = vmax.f32 %v2260_v32, %v2261_v7  ;;  %2882 = vmatpush.bf16.msra.mxu3 %v4615_v48  ;;  %v4594_v32 = vld [vmem:[%s7929_s3 + $0x110] sm:$0xf]  ;;  %v5181_v7 = vld [vmem:[%s7929_s3 + $0x114] sm:$0xf0] }
 0x364   : > { %v4595_v31 = vor.u32 %v5181_v7, %v4594_v32 }
 0x365   : > { %v2309_v29 = vmax.f32 %v2292_v33, %v2293_v56  ;;  %v2069_v14 = vpop.f32.mrf.mxu0  ;;  %v1862_v56 = vpop.f32.mrf.mxu3 }
 0x366   : > { %v2206_v51 = vadd.f32 %v2069_v14, %v1913_v35  ;;  %v2148_v5 = vpop.f32.mrf.mxu1 }
 0x367   : > { %v2323_v44 = vpack.c.bf16 %v2309_v29, %v2309_v29  ;;  %v2207_v30 = vadd.f32 %v2148_v5, %v1914_v2  ;;  %v1919_v2 = vadd.f32 %v1783_v55, %v8087_v13  ;;  %v8088_v29 = vld [vmem:[#allocation23_spill] sm:$0xff]  ;;  %v5218_v55 = vld [vmem:[%s7929_s3 + $0x244] sm:$0xf] }
 0x368   : > { %v2262_v6 = vmax.f32 %v2206_v51, 0.0  ;;  %v1920_v14 = vadd.f32 %v1862_v56, %v8088_v29  ;;  %v7436_v21 = vpop.f32.mrf.mxu2  ;;  %v4772_v13 = vld [vmem:[%s7929_s3 + $0x238] sm:$0xf0] }
 0x369   : > { %v2263_v12 = vmax.f32 %v2207_v30, 0.0  ;;  %v2761_v39 = vunpack.c.l.b16 %v2323_v44 }
 0x36b   : > { %v2294_v38 = vmax.f32 %v2262_v6, %v2263_v12  ;;  %v7386_v19 = vpack.c.b16 %v2761_v39, %v2564_v62  ;;  %v5183_v62 = vld [vmem:[%s7929_s3 + $0x124] sm:$0xf0]  ;;  %v4588_v12 = vld [vmem:[%s7929_s3 + $0x108] sm:$0xf0] }
 0x36c   : > { %v4603_v1 = vor.u32 %v5183_v62, %v4602_v36  ;;  %v5179_v6 = vld [vmem:[%s7929_s3 + $0x104] sm:$0xf0] }
 0x36d   : > { %2668 = vmatmul.bf16.gmra.mxu2 %v7156_v28  ;;  %2702 = vmatmul.bf16.gmra.mxu3 %v7156_v28  ;;  %v2071_v57 = vpop.f32.mrf.mxu0  ;;  %v4604_v28 = vld [vmem:[%s7929_s3 + $0x128] sm:$0xf0]  ;;  %v4587_v43 = vor.u32 %v5179_v6, %v4586_v16  ;;  %v7438_v52 = vpop.f32.mrf.mxu3  ;;  %v5223_v62 = vld [vmem:[%s7929_s3 + $0x264] sm:$0xf0] }
 0x36e   : > { %v2208_v42 = vadd.f32 %v2071_v57, %v1915_v22  ;;  %v2150_v60 = vpop.f32.mrf.mxu1  ;;  %v4607_v15 = vor.u32 %v5182_v34, %v4604_v28  ;;  %2849 = vmatpush.bf16.msra.mxu2 %v4603_v1  ;;  %v5224_v57 = vld [vmem:[%s7929_s3 + $0x274] sm:$0xf]  ;;  %v5222_v34 = vld [vmem:[%s7929_s3 + $0x264] sm:$0xf] }
 0x36f   : > { %v2209_v33 = vadd.f32 %v2150_v60, %v1916_v10  ;;  %v5225_v10 = vld [vmem:[%s7929_s3 + $0x274] sm:$0xf0]  ;;  %v4804_v60 = vld [vmem:[%s7929_s3 + $0x278] sm:$0xf0] }
 0x370   : > { %v2264_v54 = vmax.f32 %v2208_v42, 0.0  ;;  %2883 = vmatpush.bf16.msra.mxu3 %v4607_v15  ;;  %v4803_v42 = vor.u32 %v5225_v10, %v4802_v25  ;;  %v4807_v36 = vor.u32 %v5224_v57, %v4804_v60 }
 0x371   : > { %v2265_v23 = vmax.f32 %v2209_v33, 0.0  ;;  %v7465_v33 = vpop.f32.mrf.mxu2 }
 0x372   : > { %2850 = vmatpush.bf16.msra.mxu2 %v4595_v31 }
 0x373   : > { %v2295_v37 = vmax.f32 %v2264_v54, %v2265_v23  ;;  %v4796_v54 = vld [vmem:[%s7929_s3 + $0x268] sm:$0xf0] }
 0x374   : > { %v4799_v15 = vor.u32 %v5222_v34, %v4796_v54  ;;  %v5210_v34 = vld [vmem:[%s7929_s3 + $0x204] sm:$0xf]  ;;  %v4748_v54 = vld [vmem:[%s7929_s3 + $0x208] sm:$0xf0] }
 0x375   : > { %v2310_v17 = vmax.f32 %v2294_v38, %v2295_v37  ;;  %v2074_v26 = vpop.f32.mrf.mxu0  ;;  %v7467_v1 = vpop.f32.mrf.mxu3 }
 0x376   : > { %v2210_v53 = vadd.f32 %v2074_v26, %v6949_v27  ;;  %v2153_v3 = vpop.f32.mrf.mxu1  ;;  %v5180_v27 = vld [vmem:[%s7929_s3 + $0x114] sm:$0xf]  ;;  %2851 = vmatpush.bf16.msra.mxu2 %v4587_v43  ;;  %v5221_v26 = vld [vmem:[%s7929_s3 + $0x254] sm:$0xf0] }
 0x377   : > { %v2324_v0 = vpack.c.bf16 %v2310_v17, %v2310_v17  ;;  %v2211_v50 = vadd.f32 %v2153_v3, %v6951_v18  ;;  %v4596_v18 = vld [vmem:[%s7929_s3 + $0x118] sm:$0xf0]  ;;  %v4786_v17 = vld [vmem:[%s7929_s3 + $0x250] sm:$0xf]  ;;  %v5213_v43 = vld [vmem:[%s7929_s3 + $0x214] sm:$0xf0] }
 0x378   : > { %v2266_v49 = vmax.f32 %v2210_v53, 0.0  ;;  %v4599_v8 = vor.u32 %v5180_v27, %v4596_v18  ;;  %v5220_v53 = vld [vmem:[%s7929_s3 + $0x254] sm:$0xf]  ;;  %v4787_v3 = vor.u32 %v5221_v26, %v4786_v17  ;;  %v4770_v18 = vld [vmem:[%s7929_s3 + $0x230] sm:$0xf] }
 0x379   : > { %v2267_v46 = vmax.f32 %v2211_v50, 0.0  ;;  %v2950_v41 = vunpack.c.l.b16 %v2324_v0  ;;  %v7472_v23 = vpop.f32.mrf.mxu2  ;;  %v4788_v0 = vld [vmem:[%s7929_s3 + $0x258] sm:$0xf0] }
 0x37a   : > { %2884 = vmatpush.bf16.msra.mxu3 %v4599_v8  ;;  %3222 = vmatpush.bf16.msrb.mxu2 %v4803_v42  ;;  %v4791_v50 = vor.u32 %v5220_v53, %v4788_v0 }
 0x37b   : > { %v2296_v4 = vmax.f32 %v2266_v49, %v2267_v46  ;;  %v2951_v35 = vpack.c.b16 %v2950_v41, %v2761_v39  ;;  %v5219_v49 = vld [vmem:[%s7929_s3 + $0x244] sm:$0xf0] }
 0x37d   : > { %2673 = vmatmul.bf16.gmra.mxu2 %v7228_v40  ;;  %2707 = vmatmul.bf16.gmra.mxu3 %v7228_v40  ;;  %v2076_v51 = vpop.f32.mrf.mxu0  ;;  %v5178_v40 = vld [vmem:[%s7929_s3 + $0x104] sm:$0xf]  ;;  %v7474_v37 = vpop.f32.mrf.mxu3 }
 0x37e   : > { %3061 = vmatmul.bf16.gmra.mxu0 %v2951_v35  ;;  %3095 = vmatmul.bf16.gmra.mxu1 %v2951_v35  ;;  %v2212_v5 = vadd.f32 %v2076_v51, %v1919_v2  ;;  %v2155_v44 = vpop.f32.mrf.mxu1  ;;  %v4591_v39 = vor.u32 %v5178_v40, %v4588_v12  ;;  %v5216_v35 = vld [vmem:[%s7929_s3 + $0x234] sm:$0xf]  ;;  %v5215_v51 = vld [vmem:[%s7929_s3 + $0x224] sm:$0xf0] }
 0x37f   : > { %v2213_v30 = vadd.f32 %v2155_v44, %v1920_v14  ;;  %v4775_v2 = vor.u32 %v5216_v35, %v4772_v13  ;;  %v4762_v14 = vld [vmem:[%s7929_s3 + $0x220] sm:$0xf]  ;;  %v5212_v12 = vld [vmem:[%s7929_s3 + $0x214] sm:$0xf] }
 0x380   : > { %v2268_v58 = vmax.f32 %v2212_v5, 0.0  ;;  %2885 = vmatpush.bf16.msra.mxu3 %v4591_v39  ;;  %v5214_v5 = vld [vmem:[%s7929_s3 + $0x224] sm:$0xf] }
 0x381   : > { %v2269_v63 = vmax.f32 %v2213_v30, 0.0  ;;  %v7502_v32 = vpop.f32.mrf.mxu2 }
 0x383   : > { %v2297_v47 = vmax.f32 %v2268_v58, %v2269_v63  ;;  %v4763_v58 = vor.u32 %v5215_v51, %v4762_v14  ;;  %v4764_v63 = vld [vmem:[%s7929_s3 + $0x228] sm:$0xf0] }
 0x384   : > { %3256 = vmatpush.bf16.msrb.mxu3 %v4807_v36  ;;  %v4767_v16 = vor.u32 %v5214_v5, %v4764_v63 }
 0x385   : > { %v2311_v48 = vmax.f32 %v2296_v4, %v2297_v47  ;;  %v7504_v7 = vpop.f32.mrf.mxu3  ;;  %v5217_v4 = vld [vmem:[%s7929_s3 + $0x234] sm:$0xf0]  ;;  %v4754_v47 = vld [vmem:[%s7929_s3 + $0x210] sm:$0xf] }
 0x386   : > { %v4771_v8 = vor.u32 %v5217_v4, %v4770_v18  ;;  %v4755_v39 = vor.u32 %v5213_v43, %v4754_v47 }
 0x387   : > { %v2325_v38 = vpack.c.bf16 %v2311_v48, %v2311_v48  ;;  %v4756_v48 = vld [vmem:[%s7929_s3 + $0x218] sm:$0xf0] }
 0x388   : > { %3257 = vmatpush.bf16.msrb.mxu3 %v4799_v15  ;;  %v4751_v15 = vor.u32 %v5210_v34, %v4748_v54 }
 0x389   : > { %v3139_v22 = vunpack.c.l.b16 %v2325_v38  ;;  %v4759_v38 = vor.u32 %v5212_v12, %v4756_v48 }
 0x38b   : > { %v7440_v45 = vpack.c.b16 %v3139_v22, %v2950_v41  ;;  %v4780_v41 = vld [vmem:[%s7929_s3 + $0x248] sm:$0xf0]  ;;  %v2326_v22 = vld [vmem:[%s7930_s4] sm:$0x3] }
 0x38c   : > { %3258 = vmatpush.bf16.msrb.mxu3 %v4791_v50  ;;  %v4783_v56 = vor.u32 %v5218_v55, %v4780_v41  ;;  %v7567_v25 = vperm.slane %v2326_v22, 0  ;;  %v7569_v10 = vperm.slane %v2326_v22, 1 }
 0x38d   : > { %2678 = vmatmul.bf16.gmra.mxu2 %v7288_v61  ;;  %2712 = vmatmul.bf16.gmra.mxu3 %v7288_v61  ;;  %v4794_v61 = vld [vmem:[%s7929_s3 + $0x260] sm:$0xf] }
 0x38e   : > { %v4795_v28 = vor.u32 %v5223_v62, %v4794_v61  ;;  %v4746_v61 = vld [vmem:[%s7929_s3 + $0x200] sm:$0xf]  ;;  %v5211_v62 = vld [vmem:[%s7929_s3 + $0x204] sm:$0xf0]  ;;  %v2526_v0 = vadd.f32 %v7436_v21, %v7567_v25  ;;  %v2527_v50 = vadd.f32 %v7438_v52, %v7569_v10  ;;  %v2530_v18 = vadd.f32 %v7472_v23, %v7567_v25 }
 0x38f   : > { %v2531_v4 = vadd.f32 %v7474_v37, %v7569_v10 }
 0x390   : > { %3223 = vmatpush.bf16.msrb.mxu2 %v4795_v28  ;;  %3259 = vmatpush.bf16.msrb.mxu3 %v4783_v56  ;;  %v7506_v31 = vpop.f32.mrf.mxu2  ;;  %v7508_v27 = vpop.f32.mrf.mxu3  ;;  %v4747_v28 = vor.u32 %v5211_v62, %v4746_v61 }
 0x391   : > { %v2534_v14 = vadd.f32 %v7506_v31, %v7567_v25  ;;  %v2535_v51 = vadd.f32 %v7508_v27, %v7569_v10 }
 0x394   : > { %3224 = vmatpush.bf16.msrb.mxu2 %v4787_v3  ;;  %3260 = vmatpush.bf16.msrb.mxu3 %v4775_v2 }
 0x398   : > { %v7526_v29 = vpop.f32.mrf.mxu3  ;;  %3261 = vmatpush.bf16.msrb.mxu3 %v4767_v16 }
 0x39c   : > { %3262 = vmatpush.bf16.msrb.mxu3 %v4759_v38 }
 0x39d   : > { %2683 = vmatmul.bf16.gmra.mxu2 %v7348_v24  ;;  %2717 = vmatmul.bf16.gmra.mxu3 %v7348_v24  ;;  %v4778_v24 = vld [vmem:[%s7929_s3 + $0x240] sm:$0xf] }
 0x39e   : > { %v4779_v46 = vor.u32 %v5219_v49, %v4778_v24 }
 0x3a0   : > { %3225 = vmatpush.bf16.msrb.mxu2 %v4779_v46  ;;  %3263 = vmatpush.bf16.msrb.mxu3 %v4751_v15 }
 0x3a4   : > { %3226 = vmatpush.bf16.msrb.mxu2 %v4771_v8 }
 0x3a8   : > { %3227 = vmatpush.bf16.msrb.mxu2 %v4763_v58 }
 0x3ac   : > { %3228 = vmatpush.bf16.msrb.mxu2 %v4755_v39 }
 0x3ad   : > { %2852 = vmatmul.bf16.vlgmr.msra.gmra.mxu2 %v7129_v11  ;;  %2886 = vmatmul.bf16.vlgmr.msra.gmra.mxu3 %v7129_v11  ;;  %v7524_v11 = vpop.f32.mrf.mxu2 }
 0x3b0   : > { %v7541_v30 = vpop.f32.mrf.mxu3  ;;  %3229 = vmatpush.bf16.msrb.mxu2 %v4747_v28 }
 0x3b5   : > { %v7539_v44 = vpop.f32.mrf.mxu2 }
 0x3b6   : > { %v2538_v47 = vadd.f32 %v7539_v44, %v7567_v25 }
 0x3b8   : > { %v7548_v40 = vpop.f32.mrf.mxu3 }
 0x3bd   : > { %2857 = vmatmul.bf16.gmra.mxu2 %v7180_v59  ;;  %2891 = vmatmul.bf16.gmra.mxu3 %v7180_v59  ;;  %v7546_v6 = vpop.f32.mrf.mxu2 }
 0x3cd   : > { %2862 = vmatmul.bf16.gmra.mxu2 %v7240_v20  ;;  %2896 = vmatmul.bf16.gmra.mxu3 %v7240_v20 }
 0x3d0   : > { %v2487_v57 = vpop.f32.mrf.mxu2  ;;  %v2521_v42 = vpop.f32.mrf.mxu3 }
 0x3d1   : > { %v2542_v60 = vadd.f32 %v2487_v57, %v7567_v25  ;;  %v2543_v36 = vadd.f32 %v2521_v42, %v7569_v10 }
 0x3d8   : > { %v2489_v17 = vpop.f32.mrf.mxu2  ;;  %v2523_v26 = vpop.f32.mrf.mxu3 }
 0x3d9   : > { %v7586_v53 = vadd.f32 %v2489_v17, %v7567_v25  ;;  %v2545_v3 = vadd.f32 %v2523_v26, %v7569_v10 }
 0x3dd   : > { %2867 = vmatmul.bf16.gmra.mxu2 %v7312_v9  ;;  %2901 = vmatmul.bf16.gmra.mxu3 %v7312_v9 }
 0x3e0   : > { %v2664_v24 = vpop.f32.mrf.mxu2  ;;  %v2698_v49 = vpop.f32.mrf.mxu3 }
 0x3e1   : > { %v2723_v55 = vadd.f32 %v2664_v24, %v2526_v0  ;;  %v2724_v46 = vadd.f32 %v2698_v49, %v2527_v50  ;;  %v2533_v24 = vadd.f32 %v7504_v7, %v7569_v10  ;;  %v2536_v7 = vadd.f32 %v7524_v11, %v7567_v25  ;;  %v5249_v11 = vld [vmem:[%s7931_s5 + $0xb8] sm:$0xff] }
 0x3e2   : > { %3576 = vmatpush.bf16.msra.mxu2 %v5249_v11  ;;  %v5254_v11 = vld [vmem:[%s7931_s5 + $0xe0] sm:$0xff] }
 0x3e8   : > { %v2666_v41 = vpop.f32.mrf.mxu2  ;;  %v2700_v56 = vpop.f32.mrf.mxu3 }
 0x3ed   : > { %2872 = vmatmul.bf16.gmra.mxu2 %v7386_v19  ;;  %2906 = vmatmul.bf16.gmra.mxu3 %v7386_v19 }
 0x3f0   : > { %v2669_v21 = vpop.f32.mrf.mxu2  ;;  %v2703_v35 = vpop.f32.mrf.mxu3 }
 0x3f1   : > { %v2727_v8 = vadd.f32 %v2669_v21, %v2530_v18  ;;  %v2728_v52 = vadd.f32 %v2703_v35, %v2531_v4 }
 0x3f8   : > { %v2671_v13 = vpop.f32.mrf.mxu2  ;;  %v2705_v2 = vpop.f32.mrf.mxu3 }
 0x3fd   : > { %3230 = vmatmul.bf16.vlgmr.msrb.gmra.mxu2 %v7180_v59  ;;  %3264 = vmatmul.bf16.vlgmr.msrb.gmra.mxu3 %v7180_v59  ;;  %v2539_v59 = vadd.f32 %v7541_v30, %v7569_v10 }
 0x400   : > { %v2674_v23 = vpop.f32.mrf.mxu2  ;;  %v2708_v5 = vpop.f32.mrf.mxu3 }
 0x401   : > { %v2731_v58 = vadd.f32 %v2674_v23, %v2534_v14  ;;  %v2732_v37 = vadd.f32 %v2708_v5, %v2535_v51 }
 0x408   : > { %v2676_v63 = vpop.f32.mrf.mxu2  ;;  %v2710_v16 = vpop.f32.mrf.mxu3 }
 0x40d   : > { %3235 = vmatmul.bf16.gmra.mxu2 %v7240_v20  ;;  %3269 = vmatmul.bf16.gmra.mxu3 %v7240_v20 }
 0x410   : > { %v2679_v31 = vpop.f32.mrf.mxu2  ;;  %v2713_v43 = vpop.f32.mrf.mxu3 }
 0x411   : > { %v7613_v12 = vadd.f32 %v2679_v31, %v2538_v47  ;;  %v7615_v27 = vadd.f32 %v2713_v43, %v2539_v59  ;;  %v5229_v43 = vld [vmem:[%s7931_s5 + $0x18] sm:$0xff] }
 0x418   : > { %v7617_v39 = vpop.f32.mrf.mxu2  ;;  %v7619_v48 = vpop.f32.mrf.mxu3 }
 0x41d   : > { %3240 = vmatmul.bf16.gmra.mxu2 %v7312_v9  ;;  %3274 = vmatmul.bf16.gmra.mxu3 %v7312_v9 }
 0x420   : > { %v2684_v20 = vpop.f32.mrf.mxu2  ;;  %v2718_v38 = vpop.f32.mrf.mxu3 }
 0x421   : > { %v7623_v44 = vadd.f32 %v2684_v20, %v2542_v60  ;;  %v7625_v22 = vadd.f32 %v2718_v38, %v2543_v36  ;;  %v2528_v60 = vadd.f32 %v7465_v33, %v7567_v25  ;;  %v2529_v36 = vadd.f32 %v7467_v1, %v7569_v10  ;;  %v5248_v20 = vld [vmem:[%s7931_s5 + $0xb0] sm:$0xff] }
 0x422   : > { %v2532_v1 = vadd.f32 %v7502_v32, %v7567_v25  ;;  %v5233_v32 = vld [vmem:[%s7931_s5 + $0x38] sm:$0xff]  ;;  %v5256_v38 = vld [vmem:[%s7931_s5 + $0xf0] sm:$0xff]  ;;  %3577 = vmatpush.bf16.msra.mxu2 %v5248_v20 }
 0x423   : > { %v2725_v28 = vadd.f32 %v2666_v41, %v2528_v60  ;;  %v2726_v54 = vadd.f32 %v2700_v56, %v2529_v36  ;;  %3418 = vmatpush.bf16.msra.mxu0 %v5233_v32  ;;  %v5239_v60 = vld [vmem:[%s7931_s5 + $0x68] sm:$0xff]  ;;  %v5226_v36 = vld [vmem:[%s7931_s5] sm:$0xff]  ;;  %v5244_v20 = vld [vmem:[%s7931_s5 + $0x90] sm:$0xff] }
 0x424   : > { %v2729_v49 = vadd.f32 %v2671_v13, %v2532_v1  ;;  %v5255_v1 = vld [vmem:[%s7931_s5 + $0xe8] sm:$0xff] }
 0x428   : > { %v7627_v30 = vpop.f32.mrf.mxu2  ;;  %v2720_v57 = vpop.f32.mrf.mxu3 }
 0x429   : > { %v7629_v42 = vadd.f32 %v2720_v57, %v2545_v3 }
 0x42d   : > { %3245 = vmatmul.bf16.gmra.mxu2 %v7386_v19  ;;  %3279 = vmatmul.bf16.gmra.mxu3 %v7386_v19 }
 0x430   : > { %v2853_v61 = vpop.f32.mrf.mxu2  ;;  %v2887_v62 = vpop.f32.mrf.mxu3 }
 0x431   : > { %v7633_v34 = vadd.f32 %v2853_v61, %v2723_v55  ;;  %v7635_v9 = vadd.f32 %v2887_v62, %v2724_v46  ;;  %v2730_v55 = vadd.f32 %v2705_v2, %v2533_v24  ;;  %v5232_v2 = vld [vmem:[%s7931_s5 + $0x30] sm:$0xff]  ;;  %v5227_v62 = vld [vmem:[%s7931_s5 + $0x8] sm:$0xff]  ;;  %v3042_v24 = vpop.f32.mrf.mxu0 }
 0x432   : > { %3419 = vmatpush.bf16.msra.mxu0 %v5232_v2 }
 0x438   : > { %v2855_v15 = vpop.f32.mrf.mxu2  ;;  %v2889_v17 = vpop.f32.mrf.mxu3 }
 0x439   : > { %v7641_v26 = vadd.f32 %v2855_v15, %v2725_v28  ;;  %v7643_v3 = vadd.f32 %v2889_v17, %v2726_v54  ;;  %v5238_v28 = vld [vmem:[%s7931_s5 + $0x60] sm:$0xff] }
 0x43d   : > { %3250 = vmatmul.bf16.gmra.mxu2 %v7440_v45  ;;  %3284 = vmatmul.bf16.gmra.mxu3 %v7440_v45 }
 0x440   : > { %v2858_v19 = vpop.f32.mrf.mxu2  ;;  %v2892_v0 = vpop.f32.mrf.mxu3 }
 0x441   : > { %v7647_v50 = vadd.f32 %v2858_v19, %v2727_v8  ;;  %v7649_v33 = vadd.f32 %v2892_v0, %v2728_v52  ;;  %v2537_v8 = vadd.f32 %v7526_v29, %v7569_v10  ;;  %v2733_v52 = vadd.f32 %v2676_v63, %v2536_v7  ;;  %v5257_v29 = vld [vmem:[%s7931_s5 + $0xf8] sm:$0xff]  ;;  %v5230_v63 = vld [vmem:[%s7931_s5 + $0x20] sm:$0xff]  ;;  %v5247_v0 = vld [vmem:[%s7931_s5 + $0xa8] sm:$0xff] }
 0x442   : > { %3655 = vmatpush.bf16.msra.mxu3 %v5257_v29  ;;  %3578 = vmatpush.bf16.msra.mxu2 %v5247_v0  ;;  %v5235_v7 = vld [vmem:[%s7931_s5 + $0x48] sm:$0xff] }
 0x443   : > { %v2734_v13 = vadd.f32 %v2710_v16, %v2537_v8  ;;  %v3044_v8 = vpop.f32.mrf.mxu0 }
 0x446   : > { %3656 = vmatpush.bf16.msra.mxu3 %v5256_v38 }
 0x448   : > { %v2860_v46 = vpop.f32.mrf.mxu2  ;;  %v2894_v41 = vpop.f32.mrf.mxu3 }
 0x449   : > { %v7655_v56 = vadd.f32 %v2860_v46, %v2729_v49  ;;  %v7657_v18 = vadd.f32 %v2894_v41, %v2730_v55  ;;  %v3076_v49 = vpop.f32.mrf.mxu1  ;;  %v2741_v55 = vadd.f32 %v7627_v30, %v7586_v53  ;;  %v5236_v46 = vld [vmem:[%s7931_s5 + $0x50] sm:$0xff]  ;;  %v3101_v53 = vadd.f32 %v3042_v24, %v7633_v34  ;;  %v5245_v34 = vld [vmem:[%s7931_s5 + $0x98] sm:$0xff]  ;;  %v5242_v24 = vld [vmem:[%s7931_s5 + $0x80] sm:$0xff] }
 0x44a   : > { %3657 = vmatpush.bf16.msra.mxu3 %v5255_v1  ;;  %v3102_v30 = vadd.f32 %v3076_v49, %v7635_v9 }
 0x44b   : > { %v3047_v9 = vpop.f32.mrf.mxu0 }
 0x44c   : > { %v3105_v0 = vadd.f32 %v3047_v9, %v7647_v50  ;;  %v5265_v50 = vld [vmem:[%s7931_s5 + $0x138] sm:$0xff] }
 0x44e   : > { %3658 = vmatpush.bf16.msra.mxu3 %v5254_v11 }
 0x450   : > { %v2863_v45 = vpop.f32.mrf.mxu2  ;;  %v2897_v4 = vpop.f32.mrf.mxu3 }
 0x451   : > { %v7659_v21 = vadd.f32 %v2863_v45, %v2731_v58  ;;  %v7661_v35 = vadd.f32 %v2897_v4, %v2732_v37  ;;  %v5231_v58 = vld [vmem:[%s7931_s5 + $0x28] sm:$0xff]  ;;  %v5241_v37 = vld [vmem:[%s7931_s5 + $0x78] sm:$0xff] }
 0x452   : > { %3497 = vmatpush.bf16.msra.mxu1 %v5241_v37  ;;  %3420 = vmatpush.bf16.msra.mxu0 %v5231_v58 }
 0x456   : > { %3421 = vmatpush.bf16.msra.mxu0 %v5230_v63 }
 0x458   : > { %v2865_v14 = vpop.f32.mrf.mxu2  ;;  %v2899_v51 = vpop.f32.mrf.mxu3 }
 0x459   : > { %v7673_v23 = vadd.f32 %v2865_v14, %v2733_v52  ;;  %v7675_v5 = vadd.f32 %v2899_v51, %v2734_v13  ;;  %v3078_v52 = vpop.f32.mrf.mxu1  ;;  %v5234_v13 = vld [vmem:[%s7931_s5 + $0x40] sm:$0xff] }
 0x45a   : > { %3422 = vmatpush.bf16.msra.mxu0 %v5229_v43  ;;  %v3104_v43 = vadd.f32 %v3078_v52, %v7643_v3 }
 0x460   : > { %v2868_v16 = vpop.f32.mrf.mxu2  ;;  %v2902_v47 = vpop.f32.mrf.mxu3 }
 0x461   : > { %v7693_v59 = vadd.f32 %v2868_v16, %v7613_v12  ;;  %v7696_v31 = vadd.f32 %v2902_v47, %v7615_v27  ;;  %v5240_v12 = vld [vmem:[%s7931_s5 + $0x70] sm:$0xff]  ;;  %v3081_v37 = vpop.f32.mrf.mxu1  ;;  %v5253_v16 = vld [vmem:[%s7931_s5 + $0xd8] sm:$0xff]  ;;  %v3103_v47 = vadd.f32 %v3044_v8, %v7641_v26  ;;  %v3049_v26 = vpop.f32.mrf.mxu0  ;;  %v5251_v8 = vld [vmem:[%s7931_s5 + $0xc8] sm:$0xff] }
 0x462   : > { %v5228_v27 = vld [vmem:[%s7931_s5 + $0x10] sm:$0xff]  ;;  %3498 = vmatpush.bf16.msra.mxu1 %v5240_v12  ;;  %3659 = vmatpush.bf16.msra.mxu3 %v5253_v16  ;;  %v3106_v1 = vadd.f32 %v3081_v37, %v7649_v33  ;;  %v5262_v16 = vld [vmem:[%s7931_s5 + $0x120] sm:$0xff] }
 0x463   : > { %3423 = vmatpush.bf16.msra.mxu0 %v5228_v27 }
 0x466   : > { %3499 = vmatpush.bf16.msra.mxu1 %v5239_v60 }
 0x467   : > { %3424 = vmatpush.bf16.msra.mxu0 %v5227_v62 }
 0x468   : > { %v7713_v57 = vpop.f32.mrf.mxu2  ;;  %v7715_v61 = vpop.f32.mrf.mxu3 }
 0x469   : > { %v3083_v3 = vpop.f32.mrf.mxu1  ;;  %v3052_v52 = vpop.f32.mrf.mxu0 }
 0x46a   : > { %3500 = vmatpush.bf16.msra.mxu1 %v5238_v28  ;;  %v5243_v28 = vld [vmem:[%s7931_s5 + $0x88] sm:$0xff] }
 0x46b   : > { %3425 = vmatpush.bf16.msra.mxu0 %v5226_v36 }
 0x46f   : > { %3734 = vmatpush.bf16.msrb.mxu0 %v5265_v50  ;;  %v5258_v50 = vld [vmem:[%s7931_s5 + $0x100] sm:$0xff] }
 0x470   : > { %v2873_v54 = vpop.f32.mrf.mxu2  ;;  %v2907_v15 = vpop.f32.mrf.mxu3 }
 0x471   : > { %v7730_v17 = vadd.f32 %v2873_v54, %v7623_v44  ;;  %v7733_v19 = vadd.f32 %v2907_v15, %v7625_v22  ;;  %v5237_v44 = vld [vmem:[%s7931_s5 + $0x58] sm:$0xff]  ;;  %v5246_v22 = vld [vmem:[%s7931_s5 + $0xa0] sm:$0xff] }
 0x472   : > { %3501 = vmatpush.bf16.msra.mxu1 %v5237_v44  ;;  %3579 = vmatpush.bf16.msra.mxu2 %v5246_v22 }
 0x476   : > { %3502 = vmatpush.bf16.msra.mxu1 %v5236_v46  ;;  %3580 = vmatpush.bf16.msra.mxu2 %v5245_v34  ;;  %v5263_v34 = vld [vmem:[%s7931_s5 + $0x128] sm:$0xff] }
 0x478   : > { %v2875_v41 = vpop.f32.mrf.mxu2  ;;  %v2909_v45 = vpop.f32.mrf.mxu3 }
 0x479   : > { %v7752_v4 = vadd.f32 %v2875_v41, %v2741_v55  ;;  %v7755_v32 = vadd.f32 %v2909_v45, %v7629_v42  ;;  %v5252_v41 = vld [vmem:[%s7931_s5 + $0xd0] sm:$0xff] }
 0x47a   : > { %3503 = vmatpush.bf16.msra.mxu1 %v5235_v7  ;;  %3581 = vmatpush.bf16.msra.mxu2 %v5244_v20 }
 0x47b   : > { %3660 = vmatpush.bf16.msra.mxu3 %v5252_v41 }
 0x47e   : > { %3504 = vmatpush.bf16.msra.mxu1 %v5234_v13  ;;  %3582 = vmatpush.bf16.msra.mxu2 %v5243_v28  ;;  %v3108_v13 = vadd.f32 %v3083_v3, %v7657_v18  ;;  %v3109_v18 = vadd.f32 %v3052_v52, %v7659_v21 }
 0x47f   : > { %3661 = vmatpush.bf16.msra.mxu3 %v5251_v8 }
 0x480   : > { %v3231_v2 = vpop.f32.mrf.mxu2  ;;  %v3265_v14 = vpop.f32.mrf.mxu3 }
 0x481   : > { %v3290_v42 = vadd.f32 %v3231_v2, %v3101_v53  ;;  %v3291_v51 = vadd.f32 %v3265_v14, %v3102_v30  ;;  %v3086_v53 = vpop.f32.mrf.mxu1  ;;  %v3107_v30 = vadd.f32 %v3049_v26, %v7655_v56  ;;  %v5264_v2 = vld [vmem:[%s7931_s5 + $0x130] sm:$0xff] }
 0x482   : > { %3583 = vmatpush.bf16.msra.mxu2 %v5242_v24  ;;  %3735 = vmatpush.bf16.msrb.mxu0 %v5264_v2  ;;  %v3110_v37 = vadd.f32 %v3086_v53, %v7661_v35  ;;  %v5261_v35 = vld [vmem:[%s7931_s5 + $0x118] sm:$0xff]  ;;  %v5260_v26 = vld [vmem:[%s7931_s5 + $0x110] sm:$0xff] }
 0x483   : > { %v3310_v29 = vmax.f32 %v3290_v42, 0.0  ;;  %v3311_v58 = vmax.f32 %v3291_v51, 0.0 }
 0x485   : > { %v3330_v63 = vmax.f32 %v3310_v29, %v3311_v58 }
 0x486   : > { %3736 = vmatpush.bf16.msrb.mxu0 %v5263_v34 }
 0x488   : > { %v3233_v38 = vpop.f32.mrf.mxu2  ;;  %v3267_v12 = vpop.f32.mrf.mxu3 }
 0x489   : > { %v3292_v27 = vadd.f32 %v3233_v38, %v3103_v47  ;;  %v3293_v62 = vadd.f32 %v3267_v12, %v3104_v43 }
 0x48a   : > { %3737 = vmatpush.bf16.msrb.mxu0 %v5262_v16 }
 0x48b   : > { %v3312_v60 = vmax.f32 %v3292_v27, 0.0  ;;  %v3313_v36 = vmax.f32 %v3293_v62, 0.0  ;;  %v3054_v27 = vpop.f32.mrf.mxu0  ;;  %v3088_v62 = vpop.f32.mrf.mxu1 }
 0x48c   : > { %v3111_v28 = vadd.f32 %v3054_v27, %v7673_v23 }
 0x48d   : > { %v3331_v54 = vmax.f32 %v3312_v60, %v3313_v36 }
 0x48e   : > { %3738 = vmatpush.bf16.msrb.mxu0 %v5261_v35 }
 0x48f   : > { %v3340_v15 = vmax.f32 %v3330_v63, %v3331_v54  ;;  %v5250_v63 = vld [vmem:[%s7931_s5 + $0xc0] sm:$0xff]  ;;  %v3112_v54 = vadd.f32 %v3088_v62, %v7675_v5  ;;  %v2540_v5 = vadd.f32 %v7546_v6, %v7567_v25 }
 0x490   : > { %v3236_v49 = vpop.f32.mrf.mxu2  ;;  %v3270_v44 = vpop.f32.mrf.mxu3  ;;  %3662 = vmatpush.bf16.msra.mxu3 %v5250_v63 }
 0x491   : > { %v3345_v22 = vpack.c.bf16 %v3340_v15, %v3340_v15  ;;  %v3294_v55 = vadd.f32 %v3236_v49, %v3105_v0  ;;  %v3295_v46 = vadd.f32 %v3270_v44, %v3106_v1 }
 0x492   : > { %3739 = vmatpush.bf16.msrb.mxu0 %v5260_v26 }
 0x493   : > { %v3314_v45 = vmax.f32 %v3294_v55, 0.0  ;;  %v3315_v7 = vmax.f32 %v3295_v46, 0.0  ;;  %3426 = vmatmul.bf16.vlgmr.msra.gmra.mxu0 %v3345_v22  ;;  %v3057_v24 = vpop.f32.mrf.mxu0  ;;  %v3091_v49 = vpop.f32.mrf.mxu1  ;;  %v5259_v55 = vld [vmem:[%s7931_s5 + $0x108] sm:$0xff]  ;;  %v2541_v46 = vadd.f32 %v7548_v40, %v7569_v10 }
 0x495   : > { %v3332_v33 = vmax.f32 %v3314_v45, %v3315_v7  ;;  %v3113_v45 = vadd.f32 %v3057_v24, %v7693_v59  ;;  %v3114_v7 = vadd.f32 %v3091_v49, %v7696_v31  ;;  %v2738_v53 = vadd.f32 %v7619_v48, %v2541_v46  ;;  %v3764_v24 = vld [vmem:[%s7933_s7 + $0x38] sm:$0xf] }
 0x496   : > { %3740 = vmatpush.bf16.msrb.mxu0 %v5259_v55  ;;  %v3798_v49 = vunpack.c.l.b16 %v3764_v24  ;;  %v5271_v55 = vld [vmem:[%s7933_s7 + $0x28] sm:$0xff]  ;;  %v5269_v46 = vld [vmem:[%s7933_s7 + $0x18] sm:$0xff] }
 0x497   : > { %v2927_v10 = vadd.f32 %v7715_v61, %v2738_v53 }
 0x498   : > { %v3238_v14 = vpop.f32.mrf.mxu2  ;;  %v3272_v42 = vpop.f32.mrf.mxu3 }
 0x499   : > { %v3296_v51 = vadd.f32 %v3238_v14, %v3107_v30  ;;  %v3297_v11 = vadd.f32 %v3272_v42, %v3108_v13 }
 0x49a   : > { %3741 = vmatpush.bf16.msrb.mxu0 %v5258_v50  ;;  %v5266_v50 = vld [vmem:[%s7933_s7] sm:$0xff] }
 0x49b   : > { %v3316_v29 = vmax.f32 %v3296_v51, 0.0  ;;  %v3317_v58 = vmax.f32 %v3297_v11, 0.0  ;;  %v3059_v13 = vpop.f32.mrf.mxu0  ;;  %v3093_v2 = vpop.f32.mrf.mxu1 }
 0x49d   : > { %v3333_v9 = vmax.f32 %v3316_v29, %v3317_v58 }
 0x49f   : > { %v3341_v56 = vmax.f32 %v3332_v33, %v3333_v9  ;;  %v2737_v33 = vadd.f32 %v7617_v39, %v2540_v5  ;;  %v3116_v39 = vadd.f32 %v3093_v2, %v2927_v10  ;;  %v5270_v5 = vld [vmem:[%s7933_s7 + $0x20] sm:$0xff] }
 0x4a0   : > { %v3241_v47 = vpop.f32.mrf.mxu2  ;;  %v3275_v43 = vpop.f32.mrf.mxu3  ;;  %v5501_v10 = vld [vmem:[%s7932_s6] ss:$0 sm:$0xff] }
 0x4a1   : > { %v3346_v20 = vpack.c.bf16 %v3341_v56, %v3341_v56  ;;  %v3298_v38 = vadd.f32 %v3241_v47, %v3109_v18  ;;  %v3299_v12 = vadd.f32 %v3275_v43, %v3110_v37  ;;  %v2926_v40 = vadd.f32 %v7713_v57, %v2737_v33 }
 0x4a3   : > { %v3318_v21 = vmax.f32 %v3298_v38, 0.0  ;;  %v3319_v60 = vmax.f32 %v3299_v12, 0.0  ;;  %3505 = vmatmul.bf16.vlgmr.msra.gmra.mxu1 %v3346_v20  ;;  %v3115_v42 = vadd.f32 %v3059_v13, %v2926_v40  ;;  %v3062_v9 = vpop.f32.mrf.mxu0  ;;  %v3096_v56 = vpop.f32.mrf.mxu1  ;;  %v5276_v40 = vld [vmem:[%s7935_s9 + $0x18] sm:$0xff] }
 0x4a4   : > { %v3117_v61 = vadd.f32 %v3062_v9, %v7730_v17  ;;  %v3118_v37 = vadd.f32 %v3096_v56, %v7733_v19  ;;  %v5273_v9 = vld [vmem:[%s7935_s9] sm:$0xff] }
 0x4a5   : > { %v3334_v36 = vmax.f32 %v3318_v21, %v3319_v60  ;;  %v5502_v56 = vld [vmem:[%s7934_s8] ss:$0 sm:$0xff] }
 0x4a8   : > { %v3243_v3 = vpop.f32.mrf.mxu2  ;;  %v3277_v15 = vpop.f32.mrf.mxu3 }
 0x4a9   : > { %v3300_v0 = vadd.f32 %v3243_v3, %v3111_v28  ;;  %v3301_v1 = vadd.f32 %v3277_v15, %v3112_v54 }
 0x4ab   : > { %v3320_v44 = vmax.f32 %v3300_v0, 0.0  ;;  %v3321_v22 = vmax.f32 %v3301_v1, 0.0  ;;  %v3064_v62 = vpop.f32.mrf.mxu0  ;;  %v3098_v21 = vpop.f32.mrf.mxu1 }
 0x4ac   : > { %v3119_v60 = vadd.f32 %v3064_v62, %v7752_v4  ;;  %v3120_v35 = vadd.f32 %v3098_v21, %v7755_v32 }
 0x4ad   : > { %v3335_v23 = vmax.f32 %v3320_v44, %v3321_v22  ;;  %v3806_v44 = vpack.c.b16 %v3798_v49, %v3798_v49  ;;  %v5272_v22 = vld [vmem:[%s7933_s7 + $0x30] sm:$0xff] }
 0x4af   : > { %v3342_v41 = vmax.f32 %v3334_v36, %v3335_v23  ;;  %v3820_v32 = vsel %vm3818_vm1, %v3806_v44, 0 }
 0x4b0   : > { %v3246_v8 = vpop.f32.mrf.mxu2  ;;  %v3280_v52 = vpop.f32.mrf.mxu3  ;;  %3822 = vmatpush.bf16.msrb.mxu1 %v3820_v32 }
 0x4b1   : > { %v3347_v30 = vpack.c.bf16 %v3342_v41, %v3342_v41  ;;  %v3302_v6 = vadd.f32 %v3246_v8, %v3113_v45  ;;  %v3303_v25 = vadd.f32 %v3280_v52, %v3114_v7  ;;  %v5268_v45 = vld [vmem:[%s7933_s7 + $0x10] sm:$0xff]  ;;  %v5267_v7 = vld [vmem:[%s7933_s7 + $0x8] sm:$0xff] }
 0x4b2   : > { %v3847_v8 = vld [vmem:[%s7935_s9 + $0x28] sm:$0x3] }
 0x4b3   : > { %v3322_v59 = vmax.f32 %v3302_v6, 0.0  ;;  %v3323_v31 = vmax.f32 %v3303_v25, 0.0  ;;  %3584 = vmatmul.bf16.vlgmr.msra.gmra.mxu2 %v3347_v30  ;;  %v3873_v52 = vunpack.c.l.b16 %v3847_v8  ;;  %v5277_v25 = vld [vmem:[%s7935_s9 + $0x20] sm:$0xff] }
 0x4b4   : > { %3823 = vmatpush.bf16.msrb.mxu1 %v5272_v22 }
 0x4b5   : > { %v3336_v14 = vmax.f32 %v3322_v59, %v3323_v31  ;;  %v3879_v53 = vpack.c.b16 %v3873_v52, %v3873_v52  ;;  %v5275_v31 = vld [vmem:[%s7935_s9 + $0x10] sm:$0xff] }
 0x4b7   : > { %v3891_v30 = vsel %vm3889_vm2, %v3879_v53, 0 }
 0x4b8   : > { %v3248_v51 = vpop.f32.mrf.mxu2  ;;  %v3282_v11 = vpop.f32.mrf.mxu3  ;;  %3824 = vmatpush.bf16.msrb.mxu1 %v5271_v55  ;;  %3895 = vmatpush.bf16.msrb.mxu2 %v3891_v30 }
 0x4b9   : > { %v3304_v29 = vadd.f32 %v3248_v51, %v3115_v42  ;;  %v3305_v48 = vadd.f32 %v3282_v11, %v3116_v39 }
 0x4bb   : > { %v3324_v58 = vmax.f32 %v3304_v29, 0.0  ;;  %v3325_v34 = vmax.f32 %v3305_v48, 0.0 }
 0x4bc   : > { %3825 = vmatpush.bf16.msrb.mxu1 %v5270_v5  ;;  %3896 = vmatpush.bf16.msrb.mxu2 %v5277_v25 }
 0x4bd   : > { %v3337_v18 = vmax.f32 %v3324_v58, %v3325_v34  ;;  %v5274_v34 = vld [vmem:[%s7935_s9 + $0x8] sm:$0xff] }
 0x4bf   : > { %v3343_v57 = vmax.f32 %v3336_v14, %v3337_v18 }
 0x4c0   : > { %v3251_v63 = vpop.f32.mrf.mxu2  ;;  %v3285_v16 = vpop.f32.mrf.mxu3  ;;  %3826 = vmatpush.bf16.msrb.mxu1 %v5269_v46  ;;  %3897 = vmatpush.bf16.msrb.mxu2 %v5276_v40 }
 0x4c1   : > { %v3348_v47 = vpack.c.bf16 %v3343_v57, %v3343_v57  ;;  %v3306_v43 = vadd.f32 %v3251_v63, %v3117_v61  ;;  %v3307_v20 = vadd.f32 %v3285_v16, %v3118_v37  ;;  %v5503_v16 = vld [vmem:[%s7936_s10] ss:$0 sm:$0xff] }
 0x4c3   : > { %v3326_v38 = vmax.f32 %v3306_v43, 0.0  ;;  %v3327_v12 = vmax.f32 %v3307_v20, 0.0  ;;  %3663 = vmatmul.bf16.vlgmr.msra.gmra.mxu3 %v3348_v47 }
 0x4c4   : > { %3827 = vmatpush.bf16.msrb.mxu1 %v5268_v45  ;;  %3898 = vmatpush.bf16.msrb.mxu2 %v5275_v31 }
 0x4c5   : > { %v3338_v27 = vmax.f32 %v3326_v38, %v3327_v12 }
 0x4c8   : > { %v3253_v36 = vpop.f32.mrf.mxu2  ;;  %v3287_v28 = vpop.f32.mrf.mxu3  ;;  %3828 = vmatpush.bf16.msrb.mxu1 %v5267_v7  ;;  %3899 = vmatpush.bf16.msrb.mxu2 %v5274_v34 }
 0x4c9   : > { %v3308_v17 = vadd.f32 %v3253_v36, %v3119_v60  ;;  %v3309_v54 = vadd.f32 %v3287_v28, %v3120_v35 }
 0x4cb   : > { %v3328_v19 = vmax.f32 %v3308_v17, 0.0  ;;  %v3329_v26 = vmax.f32 %v3309_v54, 0.0 }
 0x4cc   : > { %3829 = vmatpush.bf16.msrb.mxu1 %v5266_v50  ;;  %3900 = vmatpush.bf16.msrb.mxu2 %v5273_v9 }
 0x4cd   : > { %v3339_v3 = vmax.f32 %v3328_v19, %v3329_v26 }
 0x4cf   : > { %v3344_v15 = vmax.f32 %v3338_v27, %v3339_v3 }
 0x4d1   : > { %v3349_v0 = vpack.c.bf16 %v3344_v15, %v3344_v15 }
 0x4d3   : > { %3742 = vmatmul.bf16.vlgmr.msrb.gmra.mxu0 %v3349_v0 }
 0x510   : > { %v3427_v1 = vpop.f32.mrf.mxu0 }
 0x511   : > { %v3431_v13 = vadd.f32 %v5501_v10, %v3427_v1 }
 0x518   : > { %v3429_v4 = vpop.f32.mrf.mxu0 }
 0x520   : > { %v3506_v23 = vpop.f32.mrf.mxu1 }
 0x521   : > { %v3510_v2 = vadd.f32 %v3506_v23, %v3431_v13 }
 0x528   : > { %v3508_v41 = vpop.f32.mrf.mxu1 }
 0x536   : > { %v3585_v33 = vpop.f32.mrf.mxu2 }
 0x537   : > { %v3589_v14 = vadd.f32 %v3585_v33, %v3510_v2 }
 0x53e   : > { %v3587_v6 = vpop.f32.mrf.mxu2 }
 0x546   : > { %v3664_v59 = vpop.f32.mrf.mxu3 }
 0x547   : > { %v3668_v39 = vadd.f32 %v3664_v59, %v3589_v14 }
 0x54e   : > { %v3666_v42 = vpop.f32.mrf.mxu3 }
 0x550   : > { %v3743_v51 = vpop.f32.mrf.mxu0 }
 0x551   : > { %v3747_v11 = vadd.f32 %v3743_v51, %v3668_v39 }
 0x553   : > { %v3748_v29 = vmax.f32 %v3747_v11, 0.0 }
 0x555   : > { %v3749_v48 = vpack.c.bf16 %v3748_v29, %v3748_v29 }
 0x557   : > { %5060 = vmatmul.msk.bf16.vlgmr.msrb.gmra.mxu1 %vm3814_vm3, %v3749_v48 }
 0x558   : > { %v3745_v58 = vpop.f32.mrf.mxu0 }
 0x5d4   : > { %v3831_v18 = vpop.f32.mrf.mxu1 }
 0x5d5   : > { %v3832_v57 = vadd.f32 %v5502_v56, %v3831_v18 }
 0x5d7   : > { %v3835_v61 = vmax.f32 %v3832_v57, 0.0 }
 0x5d9   : > { %v3836_v37 = vpack.c.bf16 %v3835_v61, %v3835_v61 }
 0x5db   : > { %5081 = vmatmul.msk.bf16.vlgmr.msrb.gmra.mxu2 %vm3885_vm4, %v3836_v37 }
 0x5dc   : > { %v3833_v63 = vpop.f32.mrf.mxu1 }
 0x65e   : > { %v3902_v47 = vpop.f32.mrf.mxu2 }
 0x65f   : > { %v3903_v43 = vadd.f32 %v5503_v16, %v3902_v47 }
 0x661   : > { %3906 = vst [vmem:[%s551_s21] sm:$0xff] %v3903_v43 }
 0x662   : > { %5543 = shalt.err (!%p5540_p5)
}
 0x663   : > { %5462 = dma.vmem_to_hbm [thread:$0]  (%p5678_p6), %s3921_s16, 128, %s3923_s22, %s3908_s1  }
 0x666   : > { %v3904_v20 = vpop.f32.mrf.mxu2 }
 0x667 PF: > { %s3934_s13 = sand.u32 1, %s5566_s17   ;;  %p5465_p7 = pnand %p3990_p9, %p5682_p8 }
 0x668   : > { %s3935_s12 = scalar_lea.sflag [#allocation4], %s3934_s13 }
 0x669   : > { %p5466_p10 = pneg %p5465_p7 }
 0x66b   : > { %5561 = dma.done.wait (%p5466_p10), %s3935_s12, 128  }
 0x66c   : > { %5563 = vsyncadd (%p5466_p10), %s3935_s12, 4294967168  ;;  %p21_p11 = scmp.ge.s32.totalorder %s5663_s23, 4   ;;  %s8090_s17 = smov %s5570_s18 }
 0x66d   : > { %s8091_s18 = smov %s5574_s19  ;;  %s8092_s19 = smov %s5676_s26 }
 0x66e   : > { %s8093_s20 = smov %s5663_s23  ;;  %23 = sbr.rel (!%p21_p11) target bundleno = 7 (0x7), region = 157 }
 0x673   :  { %3941 = vsyncpa [#allocation4], 1 }
 0x674   :  { %3943 = vsyncpa [#allocation4 + $0x1], 1 }

</bundles_post_ra>
